<compile_context>
chip_gen: v6e
topology: v6e:2x2x1
jax: 0.10.0
libtpu: 0.0.40
codegen_flags: <defaults>
</compile_context>

<pallas_src>
import functools

import numpy as np
import jax
import jax.numpy as jnp
from jax.experimental import pallas as pl
from jax.experimental.pallas import tpu as pltpu


# ----------------------------------------------------------------------------
# Sinusoid position-encoding table (same as the PyTorch helper, padding_idx=0)
# ----------------------------------------------------------------------------
def get_sinusoid_encoding_table(n_position, d_hid, padding_idx=None):
    pos = np.arange(n_position, dtype=np.float64)[:, None]
    i = np.arange(d_hid, dtype=np.float64)[None, :]
    angle = pos / np.power(10000.0, 2.0 * (i // 2) / d_hid)
    table = np.zeros((n_position, d_hid), dtype=np.float64)
    table[:, 0::2] = np.sin(angle[:, 0::2])
    table[:, 1::2] = np.cos(angle[:, 1::2])
    if padding_idx is not None:
        table[padding_idx] = 0.0
    return jnp.asarray(table, dtype=jnp.float32)


# ----------------------------------------------------------------------------
# Fused Pallas kernel: pos-add + all conv heads + ReLU + time max-pool.
# ----------------------------------------------------------------------------
def _sent_conv_kernel(tok_ref, pos_ref, mask_ref, w_ref, b_ref, o_ref, *,
                      heights, c_out, compute_dtype):
    # tok_ref : (B, L, D) f32   gathered token embeddings (mbert stand-in)
    # pos_ref : (L, D)    f32   sinusoid rows 1..L (shared by all sentences)
    # mask_ref: (B, L)    f32   1.0 where t < sent_len else 0.0
    # w_ref   : (D, CT)   compute_dtype, CT = sum_h h*C (all heads/rows packed)
    # b_ref   : (1, H*C)  f32   per-head biases, head i at cols [i*C, (i+1)*C)
    # o_ref   : (B, H*C)  f32
    bb, l, d = tok_ref.shape
    ct = w_ref.shape[1]

    # Fused position-embedding add (f32), then a single cast for the MXU.
    x = tok_ref[...] + pos_ref[...][None, :, :] * mask_ref[...][:, :, None]
    xc = x.astype(compute_dtype)

    # One shared matmul for every head and every kernel row:
    #   p[b, t, wcol_h + r*C + c] = sum_d x[b, t, d] * W_h[r, d, c]
    p = jnp.dot(xc.reshape(bb * l, d), w_ref[...],
                preferred_element_type=jnp.float32).reshape(bb, l, ct)

    wcol = 0   # column offset into the packed weight / p
    ocol = 0   # column offset into the (B, H*C) output
    for h in heights:                                    # static unroll
        l_out = l - h + 1
        # conv output of head h at time t = sum_r p[:, t + r, row-r slice]
        acc = p[:, 0:l_out, wcol:wcol + c_out]
        for r in range(1, h):
            acc = acc + p[:, r:r + l_out,
                          wcol + r * c_out: wcol + (r + 1) * c_out]
        pooled = jnp.max(acc, axis=1)                    # (B, C) XLU reduce
        # max_t relu(y_t + b) == relu(max_t y_t + b): +bias and relu are
        # monotone, so bias/ReLU after the pool is exact and cheaper.
        bias = b_ref[:, ocol:ocol + c_out]               # (1, C)
        o_ref[:, ocol:ocol + c_out] = jnp.maximum(pooled + bias, 0.0)
        wcol += h * c_out
        ocol += c_out


def sent_conv_encode(tok_emb, pos_rows, mask, w_all, b_all, *, heights,
                     c_out=128, block_b=32, compute_dtype=jnp.bfloat16):
    """Fused conv(h=2..7)+ReLU+time-max-pool.  Returns (N, len(heights)*c_out) f32."""
    n, l, d = tok_emb.shape
    ct = w_all.shape[1]
    n_out = len(heights) * c_out

    # Batch block: multiple of 8 (sublane tiling of the 2-D mask/output
    # blocks); pad N up to a multiple of the block.  Keep the block modest so
    # double-buffered inputs + the (B*L, CT) f32 matmul intermediate stay well
    # under v7x's 64 MiB VMEM (block_b=32 -> ~8 MiB), and so there are >=2
    # parallel grid blocks for v7x's two TensorCores when N allows.
    bb = max(8, min(block_b, ((n + 7) // 8) * 8))
    bb -= bb % 8
    n_pad = ((n + bb - 1) // bb) * bb
    if n_pad != n:
        tok_emb = jnp.pad(tok_emb, ((0, n_pad - n), (0, 0), (0, 0)))
        mask = jnp.pad(mask, ((0, n_pad - n), (0, 0)))

    kernel = functools.partial(_sent_conv_kernel, heights=tuple(heights),
                               c_out=c_out, compute_dtype=compute_dtype)
    out = pl.pallas_call(
        kernel,
        out_shape=jax.ShapeDtypeStruct((n_pad, n_out), jnp.float32),
        grid_spec=pltpu.PrefetchScalarGridSpec(
            num_scalar_prefetch=0,
            grid=(n_pad // bb,),
            in_specs=[
                pl.BlockSpec((bb, l, d), lambda i: (i, 0, 0)),   # token emb
                pl.BlockSpec((l, d), lambda i: (0, 0)),          # sinusoid rows
                pl.BlockSpec((bb, l), lambda i: (i, 0)),         # valid mask
                pl.BlockSpec((d, ct), lambda i: (0, 0)),         # packed weights
                pl.BlockSpec((1, n_out), lambda i: (0, 0)),      # packed biases
            ],
            out_specs=pl.BlockSpec((bb, n_out), lambda i: (i, 0)),
        ),
        compiler_params=pltpu.CompilerParams(
            dimension_semantics=("parallel",)),
    )(tok_emb, pos_rows, mask, w_all, b_all)
    return out[:n]


# ----------------------------------------------------------------------------
# sentEncoder forward in JAX + Pallas
# ----------------------------------------------------------------------------
class SentEncoderPallas:
    def __init__(self, sent_max_len, word_emb_dim, vocab_size,
                 out_channels=128, min_kernel=2, max_kernel=7, seed=0,
                 compute_dtype=jnp.bfloat16, block_b=32):
        self.sent_max_len = sent_max_len
        self.word_emb_dim = word_emb_dim
        self.out_channels = out_channels
        self.heights = list(range(min_kernel, max_kernel + 1))
        self.compute_dtype = compute_dtype
        self.block_b = block_b

        key = jax.random.PRNGKey(seed)
        k_tok, k_w, k_b = jax.random.split(key, 3)

        # Stand-in for mbert's last_hidden_state: deterministic token embedding.
        self.token_embed = 0.1 * jax.random.normal(
            k_tok, (vocab_size, word_emb_dim), dtype=jnp.float32)

        # Frozen sinusoid position table (padding_idx=0 row is zeros).
        self.pos_table = get_sinusoid_encoding_table(
            sent_max_len + 1, word_emb_dim, padding_idx=0)
        # Rows 1..L: pos embedding of valid position t is pos_rows[t];
        # padded positions map to the all-zero row 0 -> handled with a mask.
        self.pos_rows = self.pos_table[1:sent_max_len + 1]        # (L, D)

        # Conv weights: xavier_normal_(gain=sqrt(6)) on PyTorch shape
        # (C, 1, h, D), stored as (h, D, C) f32 masters.
        self.conv_w = []
        self.conv_b = []
        wkeys = jax.random.split(k_w, len(self.heights))
        bkeys = jax.random.split(k_b, len(self.heights))
        for h, wk, bk in zip(self.heights, wkeys, bkeys):
            fan_in = 1 * h * word_emb_dim
            fan_out = out_channels * h * word_emb_dim
            std = np.sqrt(6.0) * np.sqrt(2.0 / (fan_in + fan_out))
            w = std * jax.random.normal(
                wk, (h, word_emb_dim, out_channels), dtype=jnp.float32)
            # PyTorch Conv2d default bias init: U(-1/sqrt(fan_in), 1/sqrt(fan_in))
            bound = 1.0 / np.sqrt(fan_in)
            b = jax.random.uniform(bk, (1, out_channels), dtype=jnp.float32,
                                   minval=-bound, maxval=bound)
            self.conv_w.append(w)
            self.conv_b.append(b)

        # Packed parameters for the fused kernel:
        #   W_all (D, CT): for head i, kernel row r occupies columns
        #   [col_i + r*C, col_i + (r+1)*C).   b_all (1, H*C).
        self.w_all = jnp.concatenate(
            [jnp.concatenate([w[r] for r in range(h)], axis=1)    # (D, h*C)
             for h, w in zip(self.heights, self.conv_w)],
            axis=1).astype(compute_dtype)                          # (D, CT)
        self.b_all = jnp.concatenate(self.conv_b, axis=1)          # (1, H*C)

    def __call__(self, input_ids):
        n, l = input_ids.shape
        assert l == self.sent_max_len

        # input_sent_len = (input != 0).sum(dim=1)
        sent_len = jnp.sum((input_ids != 0).astype(jnp.int32), axis=1)

        # Stand-in for mbert(...).last_hidden_state (plain JAX glue).
        tok_emb = self.token_embed[input_ids]                      # (N, L, D) f32

        # Validity mask replaces the explicit position-id gather:
        # pos_emb[b, t] = pos_table[t+1] if t < sent_len[b] else 0 (row 0 = 0).
        pos_idx = jnp.arange(l, dtype=jnp.int32)[None, :]
        mask = (pos_idx < sent_len[:, None]).astype(jnp.float32)   # (N, L)

        # Fused pos-add + Conv2d(1, C, (h, D)) for h=2..7 + ReLU + max_pool1d.
        return sent_conv_encode(tok_emb, self.pos_rows, mask,
                                self.w_all, self.b_all,
                                heights=self.heights, c_out=self.out_channels,
                                block_b=self.block_b,
                                compute_dtype=self.compute_dtype)  # (N, 6*C)

    # Pure-JAX reference of the hot path (original op order: bias, ReLU, max).
    # compute_dtype=None -> exact f32 semantics of the PyTorch module;
    # compute_dtype=bf16 -> matches the kernel's MXU rounding for tight checks.
    def reference(self, input_ids, compute_dtype=None):
        n, l = input_ids.shape
        sent_len = jnp.sum((input_ids != 0).astype(jnp.int32), axis=1)
        tok = self.token_embed[input_ids]
        pos_idx = jnp.arange(l, dtype=jnp.int32)[None, :]
        input_pos = jnp.where(pos_idx < sent_len[:, None], pos_idx + 1, 0)
        x = tok + self.pos_table[input_pos]                        # (N, L, D) f32
        xc = x.astype(compute_dtype) if compute_dtype is not None else x
        outs = []
        for h, w, b in zip(self.heights, self.conv_w, self.conv_b):
            wc = w.astype(compute_dtype) if compute_dtype is not None else w
            l_out = l - h + 1
            y = jnp.zeros((n, l_out, self.out_channels), jnp.float32)
            for r in range(h):
                y = y + jnp.einsum('nld,dc->nlc', xc[:, r:r + l_out, :], wc[r],
                                   preferred_element_type=jnp.float32)
            y = jnp.maximum(y + b[0][None, None, :], 0.0)          # bias + ReLU
            outs.append(jnp.max(y, axis=1))                        # max over time
        return jnp.concatenate(outs, axis=1)


# ----------------------------------------------------------------------------
if __name__ == "__main__":
    N = 16           # number of sentences (batch)
    L = 16           # sent_max_len
    D = 32           # word_emb_dim
    VOCAB = 64

    enc = SentEncoderPallas(sent_max_len=L, word_emb_dim=D, vocab_size=VOCAB,
                            out_channels=128, min_kernel=2, max_kernel=7,
                            seed=0, compute_dtype=jnp.bfloat16,
                            block_b=8)   # 8 sentences/block -> grid=(2,) parallel

    # Deterministic token ids with per-sentence padding (0 = pad token).
    key = jax.random.PRNGKey(0)
    k_ids, k_len = jax.random.split(key)
    ids = jax.random.randint(k_ids, (N, L), minval=1, maxval=VOCAB,
                             dtype=jnp.int32)
    lengths = jax.random.randint(k_len, (N,), minval=3, maxval=L + 1,
                                 dtype=jnp.int32)
    valid = jnp.arange(L, dtype=jnp.int32)[None, :] < lengths[:, None]
    input_ids = jnp.where(valid, ids, 0)

    out = jax.block_until_ready(enc(input_ids))
    assert out.shape == (N, 6 * 128), out.shape

    # Tight check against a reference that uses the same bf16 MXU rounding.
    ref_matched = enc.reference(input_ids, compute_dtype=jnp.bfloat16)
    np.testing.assert_allclose(np.asarray(out), np.asarray(ref_matched),
                               rtol=1e-3, atol=1e-3)
    # Looser check against the exact f32 semantics of the original module.
    ref_f32 = enc.reference(input_ids)
    np.testing.assert_allclose(np.asarray(out), np.asarray(ref_f32),
                               rtol=5e-2, atol=5e-2)

    print("KERNEL_OK")
</pallas_src>

<mosaic_0001>
module attributes {stable_mosaic.version = 11 : i64} {
  func.func @_sent_conv_kernel(%arg0: i32, %arg1: memref<8x16x32xf32, #tpu.memory_space<vmem>>, %arg2: memref<16x32xf32, #tpu.memory_space<vmem>>, %arg3: memref<8x16xf32, #tpu.memory_space<vmem>>, %arg4: memref<32x3456xbf16, #tpu.memory_space<vmem>>, %arg5: memref<1x768xf32, #tpu.memory_space<vmem>>, %arg6: memref<8x768xf32, #tpu.memory_space<vmem>>) attributes {dimension_semantics = [#tpu.dimension_semantics<parallel>], iteration_bounds = array<i64: 2>, scalar_prefetch = 0 : i64, scratch_operands = 0 : i64, tpu.core_type = #tpu.core_type<tc>, window_params = [{transform_indices = @transform_0, window_bounds = array<i64: 8, 16, 32>}, {pipeline_mode = #tpu.pipeline_mode<synchronous>, transform_indices = @transform_1, window_bounds = array<i64: 16, 32>}, {transform_indices = @transform_2, window_bounds = array<i64: 8, 16>}, {pipeline_mode = #tpu.pipeline_mode<synchronous>, transform_indices = @transform_3, window_bounds = array<i64: 32, 3456>}, {pipeline_mode = #tpu.pipeline_mode<synchronous>, transform_indices = @transform_4, window_bounds = array<i64: 1, 768>}, {transform_indices = @transform_5, window_bounds = array<i64: 8, 768>}]} {
    %c0 = arith.constant 0 : index
    %c0_0 = arith.constant 0 : index
    %c0_1 = arith.constant 0 : index
    %0 = vector.load %arg1[%c0, %c0_0, %c0_1] : memref<8x16x32xf32, #tpu.memory_space<vmem>>, vector<8x16x32xf32>
    %c0_2 = arith.constant 0 : index
    %c0_3 = arith.constant 0 : index
    %1 = vector.load %arg2[%c0_2, %c0_3] : memref<16x32xf32, #tpu.memory_space<vmem>>, vector<16x32xf32>
    %2 = vector.shape_cast %1 : vector<16x32xf32> to vector<1x16x32xf32>
    %c0_4 = arith.constant 0 : index
    %c0_5 = arith.constant 0 : index
    %3 = vector.load %arg3[%c0_4, %c0_5] : memref<8x16xf32, #tpu.memory_space<vmem>>, vector<8x16xf32>
    %4 = vector.shape_cast %3 : vector<8x16xf32> to vector<8x16x1xf32>
    %5 = vector.broadcast %2 : vector<1x16x32xf32> to vector<8x16x32xf32>
    %6 = vector.broadcast %4 : vector<8x16x1xf32> to vector<8x16x32xf32>
    %7 = arith.mulf %5, %6 : vector<8x16x32xf32>
    %8 = arith.addf %0, %7 : vector<8x16x32xf32>
    %9 = arith.truncf %8 : vector<8x16x32xf32> to vector<8x16x32xbf16>
    %10 = vector.shape_cast %9 : vector<8x16x32xbf16> to vector<128x32xbf16>
    %c0_6 = arith.constant 0 : index
    %c0_7 = arith.constant 0 : index
    %11 = vector.load %arg4[%c0_6, %c0_7] : memref<32x3456xbf16, #tpu.memory_space<vmem>>, vector<32x3456xbf16>
    %cst = arith.constant dense<0.000000e+00> : vector<128x3456xf32>
    %12 = tpu.matmul %10, %11, %cst {dimension_numbers = #tpu.dot_dimension_numbers<[1], [0], [0], [1], [0, 0, 1, 1], [], []>} : vector<128x32xbf16>, vector<32x3456xbf16>, vector<128x3456xf32> -> vector<128x3456xf32>
    %13 = vector.shape_cast %12 : vector<128x3456xf32> to vector<8x16x3456xf32>
    %14 = vector.extract_strided_slice %13 {offsets = [0, 0, 0], sizes = [8, 15, 128], strides = [1, 1, 1]} : vector<8x16x3456xf32> to vector<8x15x128xf32>
    %15 = vector.extract_strided_slice %13 {offsets = [0, 1, 128], sizes = [8, 15, 128], strides = [1, 1, 1]} : vector<8x16x3456xf32> to vector<8x15x128xf32>
    %16 = arith.addf %14, %15 : vector<8x15x128xf32>
    %cst_8 = arith.constant dense<0xFF800000> : vector<8x128xf32>
    %17 = vector.multi_reduction <maximumf>, %16, %cst_8 [1] : vector<8x15x128xf32> to vector<8x128xf32>
    %c0_9 = arith.constant 0 : index
    %c0_10 = arith.constant 0 : index
    %18 = vector.load %arg5[%c0_9, %c0_10] : memref<1x768xf32, #tpu.memory_space<vmem>>, vector<1x128xf32>
    %19 = vector.broadcast %18 : vector<1x128xf32> to vector<8x128xf32>
    %20 = arith.addf %17, %19 : vector<8x128xf32>
    %cst_11 = arith.constant 0.000000e+00 : f32
    %21 = vector.broadcast %cst_11 : f32 to vector<8x128xf32>
    %22 = arith.maximumf %20, %21 : vector<8x128xf32>
    %c0_12 = arith.constant 0 : index
    %c0_13 = arith.constant 0 : index
    %23 = vector.load %arg6[%c0_12, %c0_13] : memref<8x768xf32, #tpu.memory_space<vmem>>, vector<8x128xf32>
    tpu.vector_store %arg6[%c0_12, %c0_13], %22 {strides = array<i32>} : memref<8x768xf32, #tpu.memory_space<vmem>>, vector<8x128xf32>,
    %24 = vector.extract_strided_slice %13 {offsets = [0, 0, 256], sizes = [8, 14, 128], strides = [1, 1, 1]} : vector<8x16x3456xf32> to vector<8x14x128xf32>
    %25 = vector.extract_strided_slice %13 {offsets = [0, 1, 384], sizes = [8, 14, 128], strides = [1, 1, 1]} : vector<8x16x3456xf32> to vector<8x14x128xf32>
    %26 = arith.addf %24, %25 : vector<8x14x128xf32>
    %27 = vector.extract_strided_slice %13 {offsets = [0, 2, 512], sizes = [8, 14, 128], strides = [1, 1, 1]} : vector<8x16x3456xf32> to vector<8x14x128xf32>
    %28 = arith.addf %26, %27 : vector<8x14x128xf32>
    %cst_14 = arith.constant dense<0xFF800000> : vector<8x128xf32>
    %29 = vector.multi_reduction <maximumf>, %28, %cst_14 [1] : vector<8x14x128xf32> to vector<8x128xf32>
    %c0_15 = arith.constant 0 : index
    %c128 = arith.constant 128 : index
    %30 = vector.load %arg5[%c0_15, %c128] : memref<1x768xf32, #tpu.memory_space<vmem>>, vector<1x128xf32>
    %31 = vector.broadcast %30 : vector<1x128xf32> to vector<8x128xf32>
    %32 = arith.addf %29, %31 : vector<8x128xf32>
    %cst_16 = arith.constant 0.000000e+00 : f32
    %33 = vector.broadcast %cst_16 : f32 to vector<8x128xf32>
    %34 = arith.maximumf %32, %33 : vector<8x128xf32>
    %c0_17 = arith.constant 0 : index
    %c128_18 = arith.constant 128 : index
    %35 = vector.load %arg6[%c0_17, %c128_18] : memref<8x768xf32, #tpu.memory_space<vmem>>, vector<8x128xf32>
    tpu.vector_store %arg6[%c0_17, %c128_18], %34 {strides = array<i32>} : memref<8x768xf32, #tpu.memory_space<vmem>>, vector<8x128xf32>,
    %36 = vector.extract_strided_slice %13 {offsets = [0, 0, 640], sizes = [8, 13, 128], strides = [1, 1, 1]} : vector<8x16x3456xf32> to vector<8x13x128xf32>
    %37 = vector.extract_strided_slice %13 {offsets = [0, 1, 768], sizes = [8, 13, 128], strides = [1, 1, 1]} : vector<8x16x3456xf32> to vector<8x13x128xf32>
    %38 = arith.addf %36, %37 : vector<8x13x128xf32>
    %39 = vector.extract_strided_slice %13 {offsets = [0, 2, 896], sizes = [8, 13, 128], strides = [1, 1, 1]} : vector<8x16x3456xf32> to vector<8x13x128xf32>
    %40 = arith.addf %38, %39 : vector<8x13x128xf32>
    %41 = vector.extract_strided_slice %13 {offsets = [0, 3, 1024], sizes = [8, 13, 128], strides = [1, 1, 1]} : vector<8x16x3456xf32> to vector<8x13x128xf32>
    %42 = arith.addf %40, %41 : vector<8x13x128xf32>
    %cst_19 = arith.constant dense<0xFF800000> : vector<8x128xf32>
    %43 = vector.multi_reduction <maximumf>, %42, %cst_19 [1] : vector<8x13x128xf32> to vector<8x128xf32>
    %c0_20 = arith.constant 0 : index
    %c256 = arith.constant 256 : index
    %44 = vector.load %arg5[%c0_20, %c256] : memref<1x768xf32, #tpu.memory_space<vmem>>, vector<1x128xf32>
    %45 = vector.broadcast %44 : vector<1x128xf32> to vector<8x128xf32>
    %46 = arith.addf %43, %45 : vector<8x128xf32>
    %cst_21 = arith.constant 0.000000e+00 : f32
    %47 = vector.broadcast %cst_21 : f32 to vector<8x128xf32>
    %48 = arith.maximumf %46, %47 : vector<8x128xf32>
    %c0_22 = arith.constant 0 : index
    %c256_23 = arith.constant 256 : index
    %49 = vector.load %arg6[%c0_22, %c256_23] : memref<8x768xf32, #tpu.memory_space<vmem>>, vector<8x128xf32>
    tpu.vector_store %arg6[%c0_22, %c256_23], %48 {strides = array<i32>} : memref<8x768xf32, #tpu.memory_space<vmem>>, vector<8x128xf32>,
    %50 = vector.extract_strided_slice %13 {offsets = [0, 0, 1152], sizes = [8, 12, 128], strides = [1, 1, 1]} : vector<8x16x3456xf32> to vector<8x12x128xf32>
    %51 = vector.extract_strided_slice %13 {offsets = [0, 1, 1280], sizes = [8, 12, 128], strides = [1, 1, 1]} : vector<8x16x3456xf32> to vector<8x12x128xf32>
    %52 = arith.addf %50, %51 : vector<8x12x128xf32>
    %53 = vector.extract_strided_slice %13 {offsets = [0, 2, 1408], sizes = [8, 12, 128], strides = [1, 1, 1]} : vector<8x16x3456xf32> to vector<8x12x128xf32>
    %54 = arith.addf %52, %53 : vector<8x12x128xf32>
    %55 = vector.extract_strided_slice %13 {offsets = [0, 3, 1536], sizes = [8, 12, 128], strides = [1, 1, 1]} : vector<8x16x3456xf32> to vector<8x12x128xf32>
    %56 = arith.addf %54, %55 : vector<8x12x128xf32>
    %57 = vector.extract_strided_slice %13 {offsets = [0, 4, 1664], sizes = [8, 12, 128], strides = [1, 1, 1]} : vector<8x16x3456xf32> to vector<8x12x128xf32>
    %58 = arith.addf %56, %57 : vector<8x12x128xf32>
    %cst_24 = arith.constant dense<0xFF800000> : vector<8x128xf32>
    %59 = vector.multi_reduction <maximumf>, %58, %cst_24 [1] : vector<8x12x128xf32> to vector<8x128xf32>
    %c0_25 = arith.constant 0 : index
    %c384 = arith.constant 384 : index
    %60 = vector.load %arg5[%c0_25, %c384] : memref<1x768xf32, #tpu.memory_space<vmem>>, vector<1x128xf32>
    %61 = vector.broadcast %60 : vector<1x128xf32> to vector<8x128xf32>
    %62 = arith.addf %59, %61 : vector<8x128xf32>
    %cst_26 = arith.constant 0.000000e+00 : f32
    %63 = vector.broadcast %cst_26 : f32 to vector<8x128xf32>
    %64 = arith.maximumf %62, %63 : vector<8x128xf32>
    %c0_27 = arith.constant 0 : index
    %c384_28 = arith.constant 384 : index
    %65 = vector.load %arg6[%c0_27, %c384_28] : memref<8x768xf32, #tpu.memory_space<vmem>>, vector<8x128xf32>
    tpu.vector_store %arg6[%c0_27, %c384_28], %64 {strides = array<i32>} : memref<8x768xf32, #tpu.memory_space<vmem>>, vector<8x128xf32>,
    %66 = vector.extract_strided_slice %13 {offsets = [0, 0, 1792], sizes = [8, 11, 128], strides = [1, 1, 1]} : vector<8x16x3456xf32> to vector<8x11x128xf32>
    %67 = vector.extract_strided_slice %13 {offsets = [0, 1, 1920], sizes = [8, 11, 128], strides = [1, 1, 1]} : vector<8x16x3456xf32> to vector<8x11x128xf32>
    %68 = arith.addf %66, %67 : vector<8x11x128xf32>
    %69 = vector.extract_strided_slice %13 {offsets = [0, 2, 2048], sizes = [8, 11, 128], strides = [1, 1, 1]} : vector<8x16x3456xf32> to vector<8x11x128xf32>
    %70 = arith.addf %68, %69 : vector<8x11x128xf32>
    %71 = vector.extract_strided_slice %13 {offsets = [0, 3, 2176], sizes = [8, 11, 128], strides = [1, 1, 1]} : vector<8x16x3456xf32> to vector<8x11x128xf32>
    %72 = arith.addf %70, %71 : vector<8x11x128xf32>
    %73 = vector.extract_strided_slice %13 {offsets = [0, 4, 2304], sizes = [8, 11, 128], strides = [1, 1, 1]} : vector<8x16x3456xf32> to vector<8x11x128xf32>
    %74 = arith.addf %72, %73 : vector<8x11x128xf32>
    %75 = vector.extract_strided_slice %13 {offsets = [0, 5, 2432], sizes = [8, 11, 128], strides = [1, 1, 1]} : vector<8x16x3456xf32> to vector<8x11x128xf32>
    %76 = arith.addf %74, %75 : vector<8x11x128xf32>
    %cst_29 = arith.constant dense<0xFF800000> : vector<8x128xf32>
    %77 = vector.multi_reduction <maximumf>, %76, %cst_29 [1] : vector<8x11x128xf32> to vector<8x128xf32>
    %c0_30 = arith.constant 0 : index
    %c512 = arith.constant 512 : index
    %78 = vector.load %arg5[%c0_30, %c512] : memref<1x768xf32, #tpu.memory_space<vmem>>, vector<1x128xf32>
    %79 = vector.broadcast %78 : vector<1x128xf32> to vector<8x128xf32>
    %80 = arith.addf %77, %79 : vector<8x128xf32>
    %cst_31 = arith.constant 0.000000e+00 : f32
    %81 = vector.broadcast %cst_31 : f32 to vector<8x128xf32>
    %82 = arith.maximumf %80, %81 : vector<8x128xf32>
    %c0_32 = arith.constant 0 : index
    %c512_33 = arith.constant 512 : index
    %83 = vector.load %arg6[%c0_32, %c512_33] : memref<8x768xf32, #tpu.memory_space<vmem>>, vector<8x128xf32>
    tpu.vector_store %arg6[%c0_32, %c512_33], %82 {strides = array<i32>} : memref<8x768xf32, #tpu.memory_space<vmem>>, vector<8x128xf32>,
    %84 = vector.extract_strided_slice %13 {offsets = [0, 0, 2560], sizes = [8, 10, 128], strides = [1, 1, 1]} : vector<8x16x3456xf32> to vector<8x10x128xf32>
    %85 = vector.extract_strided_slice %13 {offsets = [0, 1, 2688], sizes = [8, 10, 128], strides = [1, 1, 1]} : vector<8x16x3456xf32> to vector<8x10x128xf32>
    %86 = arith.addf %84, %85 : vector<8x10x128xf32>
    %87 = vector.extract_strided_slice %13 {offsets = [0, 2, 2816], sizes = [8, 10, 128], strides = [1, 1, 1]} : vector<8x16x3456xf32> to vector<8x10x128xf32>
    %88 = arith.addf %86, %87 : vector<8x10x128xf32>
    %89 = vector.extract_strided_slice %13 {offsets = [0, 3, 2944], sizes = [8, 10, 128], strides = [1, 1, 1]} : vector<8x16x3456xf32> to vector<8x10x128xf32>
    %90 = arith.addf %88, %89 : vector<8x10x128xf32>
    %91 = vector.extract_strided_slice %13 {offsets = [0, 4, 3072], sizes = [8, 10, 128], strides = [1, 1, 1]} : vector<8x16x3456xf32> to vector<8x10x128xf32>
    %92 = arith.addf %90, %91 : vector<8x10x128xf32>
    %93 = vector.extract_strided_slice %13 {offsets = [0, 5, 3200], sizes = [8, 10, 128], strides = [1, 1, 1]} : vector<8x16x3456xf32> to vector<8x10x128xf32>
    %94 = arith.addf %92, %93 : vector<8x10x128xf32>
    %95 = vector.extract_strided_slice %13 {offsets = [0, 6, 3328], sizes = [8, 10, 128], strides = [1, 1, 1]} : vector<8x16x3456xf32> to vector<8x10x128xf32>
    %96 = arith.addf %94, %95 : vector<8x10x128xf32>
    %cst_34 = arith.constant dense<0xFF800000> : vector<8x128xf32>
    %97 = vector.multi_reduction <maximumf>, %96, %cst_34 [1] : vector<8x10x128xf32> to vector<8x128xf32>
    %c0_35 = arith.constant 0 : index
    %c640 = arith.constant 640 : index
    %98 = vector.load %arg5[%c0_35, %c640] : memref<1x768xf32, #tpu.memory_space<vmem>>, vector<1x128xf32>
    %99 = vector.broadcast %98 : vector<1x128xf32> to vector<8x128xf32>
    %100 = arith.addf %97, %99 : vector<8x128xf32>
    %cst_36 = arith.constant 0.000000e+00 : f32
    %101 = vector.broadcast %cst_36 : f32 to vector<8x128xf32>
    %102 = arith.maximumf %100, %101 : vector<8x128xf32>
    %c0_37 = arith.constant 0 : index
    %c640_38 = arith.constant 640 : index
    %103 = vector.load %arg6[%c0_37, %c640_38] : memref<8x768xf32, #tpu.memory_space<vmem>>, vector<8x128xf32>
    tpu.vector_store %arg6[%c0_37, %c640_38], %102 {strides = array<i32>} : memref<8x768xf32, #tpu.memory_space<vmem>>, vector<8x128xf32>,
    return
  }
  func.func @transform_0(%arg0: i32) -> (i32, i32, i32) {
    %c0_i32 = arith.constant 0 : i32
    %c0_i32_0 = arith.constant 0 : i32
    %c0_i32_1 = arith.constant 0 : i32
    return %arg0, %c0_i32, %c0_i32_0 : i32, i32, i32
  }
  func.func @transform_1(%arg0: i32) -> (i32, i32) {
    %c0_i32 = arith.constant 0 : i32
    %c0_i32_0 = arith.constant 0 : i32
    %c0_i32_1 = arith.constant 0 : i32
    return %c0_i32, %c0_i32_0 : i32, i32
  }
  func.func @transform_2(%arg0: i32) -> (i32, i32) {
    %c0_i32 = arith.constant 0 : i32
    %c0_i32_0 = arith.constant 0 : i32
    return %arg0, %c0_i32 : i32, i32
  }
  func.func @transform_3(%arg0: i32) -> (i32, i32) {
    %c0_i32 = arith.constant 0 : i32
    %c0_i32_0 = arith.constant 0 : i32
    %c0_i32_1 = arith.constant 0 : i32
    return %c0_i32, %c0_i32_0 : i32, i32
  }
  func.func @transform_4(%arg0: i32) -> (i32, i32) {
    %c0_i32 = arith.constant 0 : i32
    %c0_i32_0 = arith.constant 0 : i32
    %c0_i32_1 = arith.constant 0 : i32
    return %c0_i32, %c0_i32_0 : i32, i32
  }
  func.func @transform_5(%arg0: i32) -> (i32, i32) {
    %c0_i32 = arith.constant 0 : i32
    %c0_i32_0 = arith.constant 0 : i32
    return %arg0, %c0_i32 : i32, i32
  }
}

</mosaic_0001>

<bundles_post_ra>
// kernel: tpu_custom_call.1
= control target key start
LH: loop header
LB: loop body
LE: loop exit
PB: predicated region body
PF: predicated region fallthrough
CT: control target
= control target key end

     0   :  { %s6965_s0 = inlined_call_operand.hbm [shape: f32[16,16,32], index: 0, kind: input, shape index: {}]   ;;  %s6966_s1 = inlined_call_operand.hbm [shape: f32[16,32], index: 1, kind: input, shape index: {}]   ;;  %s6967_s2 = inlined_call_operand.hbm [shape: f32[16,16], index: 2, kind: input, shape index: {}]   ;;  %s6968_s3 = inlined_call_operand.hbm [shape: bf16[32,3456], index: 3, kind: input, shape index: {}]   ;;  %s6969_s4 = inlined_call_operand.vmem [shape: f32[1,768], index: 4, kind: input, shape index: {}]   ;;  %s6970_s5 = inlined_call_operand.hbm [shape: f32[16,768], index: 5, kind: output, shape index: {}]  }
   0x1   :  { %6982 = sst [smem:[#allocation17_spill]] %s6965_s0 }
   0x2   :  { %6983 = sst [smem:[#allocation18_spill]] %s6966_s1 }
   0x3   :  { %10 = vsyncpa [#allocation3], 0 }
   0x4   :  { %12 = vsyncpa [#allocation3 + $0x1], 0 }
   0x5   :  { %13 = vsyncpa [#allocation6], 0 }
   0x6   :  { %14 = vsyncpa [#allocation4], 0 }
   0x7   :  { %16 = vsyncpa [#allocation4 + $0x1], 0  ;;  %s5302_s18 = smov 0   ;;  %s5304_s19 = smov 0  }
   0x8   :  { %s5306_s20 = smov 0   ;;  %s5308_s21 = smov 0  }
   0x9 LB: > { %s5323_s22 = sadd.s32 4294967295, %s5260_s21   ;;  %s4690_s23 = sadd.s32 4294967294, %s5260_s21   ;;  %s5260_s21 = sphi %s5308_s21, %s7008_s21   ;;  %s5256_s20 = sphi %s5306_s20, %s7012_s20   ;;  %s5252_s19 = sphi %s5304_s19, %s7011_s19   ;;  %s5248_s18 = sphi %s5302_s18, %s7010_s18  }
   0xa   : > { %p42_p0 = scmp.ne.s32.totalorder %s5252_s19, %s5248_s18  ;;  %p6974_p1 = scmp.eq.s32.totalorder %s5323_s22, 0 }
   0xb   : > { %p155_p2 = scmp.eq.s32.totalorder %s5323_s22, 1  ;;  %p161_p3 = scmp.eq.s32.totalorder %s4690_s23, 1 }
   0xc   : > { %p5332_p4 = por %p6974_p1, %p42_p0  ;;  %p4691_p5 = scmp.ge.s32.totalorder %s5260_s21, 1 }
   0xd   : > { %p5337_p6 = por %p161_p3, %p42_p0  ;;  %p168_p7 = scmp.lt.s32.totalorder %s5260_s21, 3 }
   0xe   : > { %s6984_s24 = scalar_select %p5332_p4, 1, 0 }
   0xf   : > { %s6985_s25 = scalar_select %p5337_p6, 1, 0 }
  0x10   : > { %p5342_p8 = pnand %p4691_p5, %p168_p7  ;;  %s5262_s27 = smov [#allocation5]  }
  0x11   : > { %s180_s28 = sshll.u32 %s5262_s27, 4  ;;  %s5356_s30 = sadd.s32 1, %s5260_s21   ;;  %s181_s28 = int_to_ptr.vmem [resolvable:$true] %s180_s28 }
  0x12   : > { %s6986_s26 = scalar_select %p5342_p8, 1, 0 }
  0x13   : > { %p4933_p9 = pneg %p5342_p8  ;;  %6988 = sst [smem:[#allocation15_spill]] %s5356_s30 }
  0x14   : > { %s29_s6 = sadd.s32 1, %s5256_s20  ;;  %s26_s7 = ssub.s32 %s5260_s21, %s5356_s30 }
  0x15   : > { %p5351_p11 = pnand %p4933_p9, %p6974_p1  ;;  %s5087_s8 = scalar_lea.vmem %s181_s28, 256 }
  0x16   : > { %p5088_p13 = scmp.ne.s32.totalorder %s181_s28, %s5087_s8  ;;  %p5095_p5 = scmp.lt.s32.totalorder %s181_s28, %s181_s28 }
  0x17   : > { %p6975_p12 = pneg %p5351_p11  ;;  %p5096_p7 = scmp.lt.s32.totalorder %s5087_s8, %s5087_s8 }
  0x19   : > { %p5090_p0 = pnand %p5088_p13, %p6975_p12  ;;  %p5097_p9 = por %p5096_p7, %p5095_p5 }
  0x1b   : > { %p5091_p3 = pneg %p5090_p0 }
  0x1d   : > { %p5098_p10 = pnand %p5097_p9, %p5091_p3 }
  0x1f   : > { %5101 = shalt.err (!%p5098_p10)
}
  0x20   : > { %s6972_s9 = smov 128   ;;  %s6973_s10 = smov 8  }
  0x21   : > { %s6989_s1 = sld [smem:[#allocation18_spill]]  ;;  %p27_p10 = scmp.eq.s32.totalorder %s26_s7, 0 }
  0x22   : > { %p36_p13 = scmp.ne.s32.totalorder %s5256_s20, %s5252_s19  ;;  %p37_p0 = scmp.eq.s32.totalorder %s5260_s21, 0 }
  0x23   : > { %p4953_p3 = scmp.lt.s32.totalorder %s5260_s21, 2  ;;  %s210_s15 = sand.u32 1, %s5260_s21  }
  0x24   : > { %s5379_s13 = scalar_select %p27_p10, %s5256_s20, %s29_s6  }
  0x25   : > { %p38_p5 = por %p37_p0, %p36_p13  ;;  %p5383_p7 = por %p155_p2, %p36_p13 }
  0x26   : > { %6990 = sst [smem:[#allocation16_spill]] %s5379_s13  ;;  %s6971_s16 = sand.u32 1, %s5256_s20  }
  0x27   : > { %4936 = dma.hbm_to_vmem [thread:$0]  (!%p5351_p11), %s6989_s1, 256, %s181_s28, [#allocation6], %s6972_s9, %s6972_s9, %s6973_s10  }
  0x28   : > { %s6991_s14 = scalar_select %p5383_p7, 1, 0 }
  0x29   : > { %s4695_s17 = sshll.u32 %s6971_s16, 7  ;;  %s4882_s23 = sshll.u32 %s5260_s21, 11 }
  0x2a   : > { %s6992_s0 = sld [smem:[#allocation17_spill]]  ;;  %s214_s6 = scalar_lea.vmem [#allocation2], %s4695_s17 }
  0x2b   : > { %s222_s7 = sshll.u32 %s214_s6, 4  ;;  %p5399_p2 = pnand %p4953_p3, %p38_p5  ;;  %s5397_s7 = int_to_ptr.vmem [resolvable:$true] %s222_s7 }
  0x2c   : > { %s5265_s12 = smov [#allocation8]   ;;  %s5405_s9 = scalar_lea.sflag [#allocation3], %s210_s15 }
  0x2d   : > { %s5403_s16 = sshll.u32 %s5265_s12, 4  ;;  %p5104_p10 = pneg %p5399_p2  ;;  %s194_s16 = int_to_ptr.vmem [resolvable:$true] %s5403_s16 }
  0x30   : > { %s5395_s28 = scalar_lea.hbm %s6992_s0, %s4882_s23  ;;  %s5107_s8 = scalar_lea.hbm %s6992_s0, 4096 }
  0x31   : > { %s5102_s23 = scalar_lea.hbm %s5395_s28, 2048  ;;  %p5108_p3 = scmp.lt.s32.totalorder %s5395_s28, %s6992_s0 }
  0x32   : > { %p5103_p9 = scmp.ne.s32.totalorder %s5395_s28, %s5102_s23  ;;  %p5109_p5 = scmp.lt.s32.totalorder %s5107_s8, %s5102_s23 }
  0x34   : > { %p5105_p13 = pnand %p5104_p10, %p5103_p9  ;;  %p5110_p1 = por %p5109_p5, %p5108_p3 }
  0x36   : > { %p5106_p0 = pneg %p5105_p13 }
  0x38   : > { %p5111_p12 = pnand %p5110_p1, %p5106_p0 }
  0x3a   : > { %5114 = shalt.err (!%p5111_p12)
}
  0x3b   : > { %s5115_s15 = scalar_lea.vmem %s5397_s7, 2048  ;;  %s5266_s12 = smov [#allocation2]  }
  0x3c   : > { %p5116_p6 = scmp.ne.s32.totalorder %s5397_s7, %s5115_s15  ;;  %s5120_s17 = sshll.u32 %s5266_s12, 4  ;;  %s5121_s17 = int_to_ptr.vmem [resolvable:$false] %s5120_s17 }
  0x3d   : > { %s5122_s27 = scalar_lea.vmem %s5121_s17, 4096  ;;  %p5123_p7 = scmp.lt.s32.totalorder %s5397_s7, %s5121_s17 }
  0x3e   : > { %p5118_p9 = pnand %p5116_p6, %p5104_p10  ;;  %p5124_p4 = scmp.lt.s32.totalorder %s5122_s27, %s5115_s15 }
  0x40   : > { %p5119_p13 = pneg %p5118_p9  ;;  %p5125_p8 = por %p5124_p4, %p5123_p7 }
  0x42   : > { %p5126_p3 = pnand %p5125_p8, %p5119_p13 }
  0x44   : > { %5129 = shalt.err (!%p5126_p3)
}
  0x45   : > { %s6994_s10 = smov 8   ;;  %s6995_s23 = smov 128  }
  0x46   : > { %4943 = dma.hbm_to_vmem [thread:$0]  (!%p5399_p2), %s5395_s28, 2048, %s5397_s7, %s5405_s9, %s6995_s23, %s6995_s23, %s6994_s10  }
  0x47   : > { %s5141_s8 = scalar_lea.vmem %s194_s16, 6912  ;;  %p6996_p6 = pneg %p5351_p11 }
  0x48   : > { %p5142_p1 = scmp.ne.s32.totalorder %s194_s16, %s5141_s8  ;;  %p5149_p8 = scmp.lt.s32.totalorder %s194_s16, %s194_s16 }
  0x49   : > { %p5150_p7 = scmp.lt.s32.totalorder %s5141_s8, %s5141_s8 }
  0x4a   : > { %p5144_p12 = pnand %p5142_p1, %p6996_p6 }
  0x4b   : > { %p5151_p0 = por %p5150_p7, %p5149_p8 }
  0x4c   : > { %p5145_p4 = pneg %p5144_p12 }
  0x4e   : > { %p5152_p5 = pnand %p5151_p0, %p5145_p4 }
  0x50   : > { %5155 = shalt.err (!%p5152_p5)
}
  0x51   : > { %s5267_s6 = smov 1728   ;;  %s5268_s15 = smov 108  }
  0x52   : > { %4939 = dma.hbm_to_vmem [thread:$0]  (!%p5351_p11), %s6968_s3, 6912, %s194_s16, [#allocation6], %s5267_s6, %s5267_s6, %s5268_s15  }
  0x53   : > { %s6997_s12 = sand.u32 1, %s5256_s20   ;;  %s4700_s27 = sshll.u32 %s5260_s21, 7 }
  0x54   : > { %s4699_s17 = sshll.u32 %s6997_s12, 3  ;;  %s241_s8 = scalar_lea.hbm %s6967_s2, %s4700_s27 }
  0x55   : > { %s236_s0 = scalar_lea.vmem [#allocation7], %s4699_s17  ;;  %s5156_s13 = scalar_lea.hbm %s241_s8, 128 }
  0x56   : > { %s243_s1 = sshll.u32 %s236_s0, 4  ;;  %p5157_p9 = scmp.ne.s32.totalorder %s241_s8, %s5156_s13  ;;  %s244_s1 = int_to_ptr.vmem [resolvable:$true] %s243_s1 }
  0x57   : > { %s5161_s16 = scalar_lea.hbm %s6967_s2, 256  ;;  %p5162_p11 = scmp.lt.s32.totalorder %s241_s8, %s6967_s2 }
  0x58   : > { %p5159_p13 = pnand %p5157_p9, %p5104_p10  ;;  %p5163_p1 = scmp.lt.s32.totalorder %s5161_s16, %s5156_s13 }
  0x5a   : > { %p5160_p3 = pneg %p5159_p13  ;;  %p5164_p6 = por %p5163_p1, %p5162_p11 }
  0x5c   : > { %p5165_p12 = pnand %p5164_p6, %p5160_p3 }
  0x5e   : > { %5168 = shalt.err (!%p5165_p12)
}
  0x5f   : > { %s5169_s0 = scalar_lea.vmem %s244_s1, 128  ;;  %s5269_s28 = smov [#allocation7]  }
  0x60   : > { %p5170_p4 = scmp.ne.s32.totalorder %s244_s1, %s5169_s0  ;;  %s5174_s7 = sshll.u32 %s5269_s28, 4  ;;  %s5175_s7 = int_to_ptr.vmem [resolvable:$false] %s5174_s7 }
  0x61   : > { %s5176_s30 = scalar_lea.vmem %s5175_s7, 256  ;;  %p5177_p0 = scmp.lt.s32.totalorder %s244_s1, %s5175_s7 }
  0x62   : > { %p5172_p8 = pnand %p5170_p4, %p5104_p10  ;;  %p5178_p5 = scmp.lt.s32.totalorder %s5176_s30, %s5169_s0 }
  0x64   : > { %p5173_p7 = pneg %p5172_p8  ;;  %p5179_p9 = por %p5178_p5, %p5177_p0 }
  0x66   : > { %p5180_p13 = pnand %p5179_p9, %p5173_p7 }
  0x68   : > { %5183 = shalt.err (!%p5180_p13)
}
  0x69   : > { %4946 = dma.hbm_to_vmem [thread:$0]  (!%p5399_p2), %s241_s8, 128, %s244_s1, %s5405_s9  }
  0x6a   : > { %p6998_p3 = scmp.ne.s32.totalorder %s6986_s26, 0 }
  0x6b   : > { %s254_s13 = sand.u32 (!%p6998_p3), 1, %s5323_s22   ;;  %s5469_s12 = sand.u32 (!%p6998_p3), 1, %s5252_s19  }
  0x6c   : > { %252 = sbr.rel (%p6998_p3) target bundleno = 926 (0x39e), region = 40  ;;  %s4702_s17 = sshll.u32 (!%p6998_p3), %s5469_s12, 7 }
  0x6d   : > { %s255_s27 = scalar_lea.sflag (!%p6998_p3), [#allocation3], %s254_s13  ;;  %s5472_s10 = scalar_lea.vmem (!%p6998_p3), [#allocation2], %s4702_s17 }
  0x6e   : > { %p6999_p10 = scmp.ne.s32.totalorder (!%p6998_p3), %s6984_s24, 0 }
  0x71   : > { %5227 = dma.done.wait (%p6999_p10), %s255_s27, 2048  }
  0x72   : > { %5229 = vsyncadd (%p6999_p10), %s255_s27, 4294965248  ;;  %p7000_p2 = scmp.eq.s32.totalorder %s5323_s22, 0 }
  0x74   : > { %5231 = dma.done.wait (%p7000_p2), [#allocation6], 256   ;;  %p7001_p11 = pmov %p7000_p2 }
  0x75   : > { %s4704_s1 = sshll.u32 %s5469_s12, 3 }
  0x76   : > { %5233 = vsyncadd (%p7001_p11), [#allocation6], 4294967040  ;;  %s271_s26 = scalar_lea.vmem [#allocation7], %s4704_s1 }
  0x77   : > { %5235 = dma.done.wait (%p6999_p10), %s255_s27, 128  }
  0x78   : > { %5237 = vsyncadd (%p6999_p10), %s255_s27, 4294967168  ;;  %p7002_p1 = pmov %p7000_p2 }
  0x7a   : > { %5239 = dma.done.wait (%p7002_p1), [#allocation6], 6912   ;;  %p7003_p6 = pmov %p7002_p1 }
  0x7b   : > { %v328_v0 = vlaneseq  ;;  %v327_v4 = vld [vmem:[%s271_s26] sm:$0xff]  ;;  %v5270_v5 = vmov 0   ;;  %v5001_v12 = vld [vmem:[#allocation8] ss:$108 sps:$4 sm:$0xff]   ;;  %vm784_vm0 = vcmask 261120   ;;  %vm2391_vm1 = vcmask 1046528  }
  0x7c   : > { %5241 = vsyncadd (%p7003_p6), [#allocation6], 4294960384  ;;  %841 = vmatprep.mubr.bf16.mxu0 %v5270_v5  ;;  %901 = vmatprep.mubr.bf16.mxu1 %v5270_v5  ;;  %v4996_v8 = vld [vmem:[#allocation8 + $0xdc] ss:$108 sps:$4 sm:$0xff]   ;;  %v4998_v9 = vld [vmem:[#allocation8 + $0xd8] ss:$108 sps:$4 sm:$0xff]  }
  0x7d   : > { %v329_v1 = vshrl.u32 %v328_v0, 7  ;;  %821 = vmatprep.subr.bf16.mxu0 %v4996_v8  ;;  %4913 = vmatprep.subr.bf16.mxu1 %v4996_v8  ;;  %v4999_v11 = vld [vmem:[#allocation8 + $0x4] ss:$108 sps:$4 sm:$0xff]   ;;  %v5004_v13 = vld [vmem:[#allocation8 + $0xec] ss:$108 sps:$4 sm:$0xff]   ;;  %vm2654_vm2 = vcmask 1045504  }
  0x7e   : > { %822 = vmatpush1.bf16.msra.mxu0 %v4998_v9  ;;  %4915 = vmatpush1.bf16.msra.mxu1 %v4998_v9  ;;  %v5007_v16 = vld [vmem:[#allocation8 + $0xe4] ss:$108 sps:$4 sm:$0xff]   ;;  %v5495_v29 = vld [vmem:[#allocation5 + $0x8] sm:$0xff]  ;;  %v312_v50 = vld [vmem:[%s5472_s10 + $0x18] sm:$0xff]  ;;  %vm2544_vm3 = vcmask 1041409   ;;  %vm2547_vm4 = vcmask 1042434  }
  0x7f   : > { %v396_v2 = vsub.s32 6, %v329_v1  ;;  %v330_v3 = vsub.s32 0, %v329_v1  ;;  %v341_v10 = vsub.s32 1, %v329_v1  ;;  %823 = vmatprep.subr.bf16.mxu0 %v4999_v11  ;;  %4914 = vmatprep.subr.bf16.mxu1 %v4999_v11  ;;  %v407_v15 = vsub.s32 7, %v329_v1  ;;  %v5493_v27 = vld [vmem:[#allocation5] sm:$0xff]  ;;  %v322_v35 = vld [vmem:[%s5472_s10 + $0x68] sm:$0xff] }
  0x80   : > { %v352_v18 = vsub.s32 2, %v329_v1  ;;  %v363_v20 = vsub.s32 3, %v329_v1  ;;  %v374_v22 = vsub.s32 4, %v329_v1  ;;  %v385_v24 = vsub.s32 5, %v329_v1  ;;  %v321_v30 = vld [vmem:[%s5472_s10 + $0x60] sm:$0xff]  ;;  %v310_v37 = vld [vmem:[%s5472_s10 + $0x8] sm:$0xff] }
  0x81   : > { %v397_v6 = vrot.slane %v327_v4, %v396_v2  ;;  %v331_v7 = vrot.slane %v327_v4, %v330_v3  ;;  %v342_v14 = vrot.slane %v327_v4, %v341_v10  ;;  %v408_v17 = vrot.slane %v327_v4, %v407_v15  ;;  %v309_v33 = vld [vmem:[%s5472_s10] sm:$0xff]  ;;  %v5002_v46 = vld [vmem:[#allocation8 + $0xe8] ss:$108 sps:$4 sm:$0xff]   ;;  %v5010_v54 = vld [vmem:[#allocation8 + $0xc] ss:$108 sps:$4 sm:$0xff]   ;;  %s4917_s11 = smul.u32 48, %s5469_s12 }
  0x82   : > { %824 = vmatpush1.bf16.msra.mxu0 %v5001_v12  ;;  %4916 = vmatpush1.bf16.msra.mxu1 %v5001_v12  ;;  %v353_v19 = vrot.slane %v327_v4, %v352_v18  ;;  %v364_v21 = vrot.slane %v327_v4, %v363_v20  ;;  %v375_v23 = vrot.slane %v327_v4, %v374_v22  ;;  %v5005_v47 = vld [vmem:[#allocation8 + $0xe0] ss:$108 sps:$4 sm:$0xff]   ;;  %v311_v52 = vld [vmem:[%s5472_s10 + $0x10] sm:$0xff]  ;;  %v324_v56 = vld [vmem:[%s5472_s10 + $0x78] sm:$0xff]  ;;  %vm2550_vm5 = vcmask 1043459   ;;  %s4918_s17 = smul.u32 768, %s5323_s22 }
  0x83   : > { %399 = vbcast.lane.b32.xlu1 %v397_v6, 256  ;;  %333 = vbcast.lane.b32.xlu0 %v331_v7, 256  ;;  %v386_v25 = vrot.slane %v327_v4, %v385_v24  ;;  %v5016_v55 = vld [vmem:[#allocation8 + $0x14] ss:$108 sps:$4 sm:$0xff]   ;;  %v5014_v63 = vld [vmem:[#allocation8 + $0x10] ss:$108 sps:$4 sm:$0xff]  }
  0x84   : > { %1047 = vmatprep.subr.bf16.mxu0 %v5004_v13  ;;  %934 = vmatprep.subr.bf16.mxu1 %v5007_v16  ;;  %v323_v61 = vld [vmem:[%s5472_s10 + $0x70] sm:$0xff]  ;;  %v5019_v3 = vld [vmem:[#allocation8 + $0xfc] ss:$108 sps:$4 sm:$0xff]   ;;  %v313_v11 = vld [vmem:[%s5472_s10 + $0x20] sm:$0xff]  ;;  %vm2553_vm6 = vcmask 1044484   ;;  %vm2556_vm7 = vcmask 1045509   ;;  %s6926_s26 = scalar_lea.hbm %s6970_s5, %s4918_s17 }
  0x85   : > { %v5008_v62 = vld [vmem:[#allocation8 + $0x8] ss:$108 sps:$4 sm:$0xff]   ;;  %v5011_v22 = vld [vmem:[#allocation8 + $0xf0] ss:$108 sps:$4 sm:$0xff]   ;;  %vm2559_vm8 = vcmask 1046534   ;;  %vm2562_vm9 = vcmask 1047559  }
  0x86   : > { %v5013_v2 = vld [vmem:[#allocation8 + $0xf4] ss:$108 sps:$4 sm:$0xff]   ;;  %v314_v9 = vld [vmem:[%s5472_s10 + $0x28] sm:$0xff]  ;;  %s5888_s23 = scalar_lea.vmem [#allocation9], %s4917_s11  ;;  %vm2982_vm10 = vcmask 1044480   ;;  %vm3382_vm11 = vcmask 1043456  }
  0x87   : > { %403 = vbcast.lane.b32.xlu1 %v397_v6, 264  ;;  %337 = vbcast.lane.b32.xlu0 %v331_v7, 264  ;;  %v315_v24 = vld [vmem:[%s5472_s10 + $0x30] sm:$0xff]  ;;  %vm3854_vm12 = vcmask 1042432   ;;  %vm4398_vm13 = vcmask 1041408   ;;  %s4581_s27 = sshll.u32 %s5888_s23, 4  ;;  %s4582_s27 = int_to_ptr.vmem [resolvable:$true] %s4581_s27 }
  0x88   : > { %s4567_s24 = scalar_lea.sflag [#allocation4], %s5469_s12  ;;  %s5184_s9 = scalar_lea.vmem %s4582_s27, 768 }
  0x89   : > { %p5185_p12 = scmp.ne.s32.totalorder %s4582_s27, %s5184_s9  ;;  %p7005_p4 = scmp.ne.s32.totalorder %s6991_s14, 0 }
  0x8a   : > { %s5271_s22 = smov [#allocation9]  }
  0x8b   : > { %348 = vbcast.lane.b32.xlu1 %v342_v14, 264  ;;  %344 = vbcast.lane.b32.xlu0 %v342_v14, 256  ;;  %p5186_p8 = pnand %p5185_p12, %p7005_p4  ;;  %s5188_s11 = sshll.u32 %s5271_s22, 4  ;;  %s5189_s11 = int_to_ptr.vmem [resolvable:$false] %s5188_s11 }
  0x8c   : > { %s5190_s8 = scalar_lea.vmem %s5189_s11, 1536  ;;  %p5191_p0 = scmp.lt.s32.totalorder %s4582_s27, %s5189_s11 }
  0x8d   : > { %p5187_p7 = pneg %p5186_p8  ;;  %p5192_p5 = scmp.lt.s32.totalorder %s5190_s8, %s5184_s9 }
  0x8f   : > { %414 = vbcast.lane.b32.xlu1 %v408_v17, 264  ;;  %410 = vbcast.lane.b32.xlu0 %v408_v17, 256  ;;  %p5193_p9 = por %p5192_p5, %p5191_p0 }
  0x91   : > { %p5194_p13 = pnand %p5193_p9, %p5187_p7 }
  0x93   : > { %359 = vbcast.lane.b32.xlu1 %v353_v19, 264  ;;  %355 = vbcast.lane.b32.xlu0 %v353_v19, 256 }
  0x97   : > { %370 = vbcast.lane.b32.xlu1 %v364_v21, 264  ;;  %366 = vbcast.lane.b32.xlu0 %v364_v21, 256 }
  0x9b   : > { %381 = vbcast.lane.b32.xlu1 %v375_v23, 264  ;;  %377 = vbcast.lane.b32.xlu0 %v375_v23, 256  ;;  %v316_v23 = vld [vmem:[%s5472_s10 + $0x38] sm:$0xff] }
  0x9f   : > { %392 = vbcast.lane.b32.xlu1 %v386_v25, 264  ;;  %388 = vbcast.lane.b32.xlu0 %v386_v25, 256  ;;  %v5022_v25 = vld [vmem:[#allocation8 + $0x1c] ss:$108 sps:$4 sm:$0xff]  }
  0xf5   : > { %v400_v26 = vpop.permute.xlu1 %399  ;;  %v334_v28 = vpop.permute.xlu0 %333 }
  0xf6   : > { %v428_v31 = vmul.f32 %v400_v26, %v5493_v27  ;;  %v416_v32 = vmul.f32 %v334_v28, %v5493_v27 }
  0xf8   : > { %v444_v40 = vadd.f32 %v428_v31, %v321_v30  ;;  %v432_v41 = vadd.f32 %v416_v32, %v309_v33  ;;  %v5020_v32 = vld [vmem:[#allocation8 + $0x18] ss:$108 sps:$4 sm:$0xff]  }
  0xf9   : > { %v404_v34 = vpop.permute.xlu1 %403  ;;  %v338_v36 = vpop.permute.xlu0 %337  ;;  %v5028_v33 = vld [vmem:[#allocation8 + $0x104] ss:$108 sps:$4 sm:$0xff]  }
  0xfa   : > { %v429_v38 = vmul.f32 %v404_v34, %v5495_v29  ;;  %v417_v39 = vmul.f32 %v338_v36, %v5495_v29 }
  0xfc   : > { %v445_v42 = vadd.f32 %v429_v38, %v322_v35  ;;  %v433_v43 = vadd.f32 %v417_v39, %v310_v37  ;;  %v318_v37 = vld [vmem:[%s5472_s10 + $0x48] sm:$0xff]  ;;  %v317_v38 = vld [vmem:[%s5472_s10 + $0x40] sm:$0xff] }
  0xfd   : > { %v349_v44 = vpop.permute.xlu1 %348  ;;  %v345_v45 = vpop.permute.xlu0 %344 }
  0xfe   : > { %v5505_v48 = vpack.c.bf16 %v445_v42, %v444_v40  ;;  %v5507_v49 = vpack.c.bf16 %v433_v43, %v432_v41  ;;  %v419_v51 = vmul.f32 %v349_v44, %v5495_v29  ;;  %v418_v53 = vmul.f32 %v345_v45, %v5493_v27 }
 0x100   : > { %4760 = vmatmul.mubr.msk.bf16.vlgmr.msra.gmra.mxu0 %vm784_vm0, %v5507_v49  ;;  %4766 = vmatmul.mubr.msk.bf16.vlgmr.msra.gmra.mxu1 %vm784_vm0, %v5505_v48  ;;  %v435_v57 = vadd.f32 %v419_v51, %v312_v50  ;;  %v434_v58 = vadd.f32 %v418_v53, %v311_v52  ;;  %v5023_v53 = vld [vmem:[#allocation8 + $0x20] ss:$108 sps:$4 sm:$0xff]  }
 0x101   : > { %1048 = vmatpush1.bf16.msra.mxu0 %v5002_v46  ;;  %v415_v59 = vpop.permute.xlu1 %414  ;;  %v411_v60 = vpop.permute.xlu0 %410  ;;  %935 = vmatpush1.bf16.msra.mxu1 %v5005_v47  ;;  %v320_v46 = vld [vmem:[%s5472_s10 + $0x58] sm:$0xff]  ;;  %v319_v47 = vld [vmem:[%s5472_s10 + $0x50] sm:$0xff] }
 0x102   : > { %v431_v0 = vmul.f32 %v415_v59, %v5495_v29  ;;  %v430_v1 = vmul.f32 %v411_v60, %v5493_v27  ;;  %851 = vmatprep.mubr.bf16.mxu0 %v5270_v5  ;;  %911 = vmatprep.mubr.bf16.mxu1 %v5270_v5  ;;  %v5523_v7 = vpack.c.bf16 %v435_v57, %v434_v58  ;;  %v5032_v57 = vld [vmem:[#allocation8 + $0x28] ss:$108 sps:$4 sm:$0xff]  }
 0x103   : > { %936 = vmatprep.subr.bf16.mxu1 %v5010_v54  ;;  %1049 = vmatprep.subr.bf16.mxu0 %v5016_v55  ;;  %v5031_v54 = vld [vmem:[#allocation8 + $0x10c] ss:$108 sps:$4 sm:$0xff]   ;;  %v5040_v58 = vld [vmem:[#allocation8 + $0x114] ss:$108 sps:$4 sm:$0xff]  }
 0x104   : > { %v447_v4 = vadd.f32 %v431_v0, %v324_v56  ;;  %v446_v6 = vadd.f32 %v430_v1, %v323_v61  ;;  %v5026_v55 = vld [vmem:[#allocation8 + $0x100] ss:$108 sps:$4 sm:$0xff]   ;;  %v5029_v59 = vld [vmem:[#allocation8 + $0x108] ss:$108 sps:$4 sm:$0xff]   ;;  %v5035_v61 = vld [vmem:[#allocation8 + $0x30] ss:$108 sps:$4 sm:$0xff]  }
 0x105   : > { %v360_v8 = vpop.permute.xlu1 %359  ;;  %v356_v10 = vpop.permute.xlu0 %355  ;;  %937 = vmatpush1.bf16.msra.mxu1 %v5008_v62  ;;  %1050 = vmatpush1.bf16.msra.mxu0 %v5014_v63  ;;  %v5034_v56 = vld [vmem:[#allocation8 + $0x2c] ss:$108 sps:$4 sm:$0xff]   ;;  %v5037_v60 = vld [vmem:[#allocation8 + $0x34] ss:$108 sps:$4 sm:$0xff]   ;;  %v5043_v62 = vld [vmem:[#allocation8 + $0x11c] ss:$108 sps:$4 sm:$0xff]  }
 0x106   : > { %v5527_v12 = vpack.c.bf16 %v447_v4, %v446_v6  ;;  %v421_v13 = vmul.f32 %v360_v8, %v5495_v29  ;;  %v420_v14 = vmul.f32 %v356_v10, %v5493_v27  ;;  %1160 = vmatprep.subr.bf16.mxu1 %v5013_v2  ;;  %1273 = vmatprep.subr.bf16.mxu0 %v5019_v3  ;;  %v5038_v63 = vld [vmem:[#allocation8 + $0x110] ss:$108 sps:$4 sm:$0xff]   ;;  %v5044_v1 = vld [vmem:[#allocation8 + $0x38] ss:$108 sps:$4 sm:$0xff]   ;;  %v5047_v6 = vld [vmem:[#allocation8 + $0x40] ss:$108 sps:$4 sm:$0xff]  }
 0x107   : > { %v5046_v0 = vld [vmem:[#allocation8 + $0x3c] ss:$108 sps:$4 sm:$0xff]   ;;  %v5052_v2 = vld [vmem:[#allocation8 + $0x124] ss:$108 sps:$4 sm:$0xff]   ;;  %v5055_v8 = vld [vmem:[#allocation8 + $0x12c] ss:$108 sps:$4 sm:$0xff]  }
 0x108   : > { %4761 = vmatmul.mubr.msk.bf16.gmra.mxu0 %vm784_vm0, %v5523_v7  ;;  %4767 = vmatmul.mubr.msk.bf16.gmra.mxu1 %vm784_vm0, %v5527_v12  ;;  %v437_v15 = vadd.f32 %v421_v13, %v314_v9  ;;  %v436_v16 = vadd.f32 %v420_v14, %v313_v11  ;;  %v5041_v3 = vld [vmem:[#allocation8 + $0x118] ss:$108 sps:$4 sm:$0xff]  }
 0x109   : > { %861 = vmatprep.mubr.bf16.mxu0 %v5270_v5  ;;  %954 = vmatprep.mubr.bf16.mxu1 %v5270_v5  ;;  %v371_v17 = vpop.permute.xlu1 %370  ;;  %v367_v18 = vpop.permute.xlu0 %366  ;;  %v5049_v4 = vld [vmem:[#allocation8 + $0x44] ss:$108 sps:$4 sm:$0xff]  }
 0x10a   : > { %v5537_v19 = vpack.c.bf16 %v437_v15, %v436_v16  ;;  %v423_v20 = vmul.f32 %v371_v17, %v5495_v29  ;;  %v422_v21 = vmul.f32 %v367_v18, %v5493_v27 }
 0x10c   : > { %v439_v26 = vadd.f32 %v423_v20, %v316_v23  ;;  %v438_v28 = vadd.f32 %v422_v21, %v315_v24 }
 0x10d   : > { %v382_v30 = vpop.permute.xlu1 %381  ;;  %v378_v31 = vpop.permute.xlu0 %377 }
 0x10e   : > { %v5549_v34 = vpack.c.bf16 %v439_v26, %v438_v28  ;;  %v425_v35 = vmul.f32 %v382_v30, %v5495_v29  ;;  %v424_v36 = vmul.f32 %v378_v31, %v5493_v27  ;;  %v5058_v30 = vld [vmem:[#allocation8 + $0x4c] ss:$108 sps:$4 sm:$0xff]  }
 0x110   : > { %4762 = vmatmul.mubr.msk.bf16.gmra.mxu0 %vm784_vm0, %v5537_v19  ;;  %4768 = vmatmul.mubr.msk.bf16.vlgmr.msra.gmra.mxu1 %vm784_vm0, %v5507_v49  ;;  %v441_v39 = vadd.f32 %v425_v35, %v318_v37  ;;  %v440_v40 = vadd.f32 %v424_v36, %v317_v38  ;;  %v5056_v35 = vld [vmem:[#allocation8 + $0x48] ss:$108 sps:$4 sm:$0xff]  }
 0x111   : > { %1161 = vmatpush1.bf16.msra.mxu1 %v5011_v22  ;;  %871 = vmatprep.mubr.bf16.mxu0 %v5270_v5  ;;  %v393_v41 = vpop.permute.xlu1 %392  ;;  %v389_v42 = vpop.permute.xlu0 %388 }
 0x112   : > { %964 = vmatprep.mubr.bf16.mxu1 %v5270_v5  ;;  %1162 = vmatprep.subr.bf16.mxu1 %v5022_v25  ;;  %v5561_v43 = vpack.c.bf16 %v441_v39, %v440_v40  ;;  %v427_v44 = vmul.f32 %v393_v41, %v5495_v29  ;;  %v426_v45 = vmul.f32 %v389_v42, %v5493_v27  ;;  %v5017_v27 = vld [vmem:[#allocation8 + $0xf8] ss:$108 sps:$4 sm:$0xff]   ;;  %v5050_v25 = vld [vmem:[#allocation8 + $0x120] ss:$108 sps:$4 sm:$0xff]  }
 0x113   : > { %v5025_v29 = vld [vmem:[#allocation8 + $0x24] ss:$108 sps:$4 sm:$0xff]   ;;  %v5064_v40 = vld [vmem:[#allocation8 + $0x134] ss:$108 sps:$4 sm:$0xff]  }
 0x114   : > { %v443_v50 = vadd.f32 %v427_v44, %v320_v46  ;;  %v442_v51 = vadd.f32 %v426_v45, %v319_v47 }
 0x115   : > { %1163 = vmatpush1.bf16.msra.mxu1 %v5020_v32 }
 0x116   : > { %1386 = vmatprep.subr.bf16.mxu1 %v5028_v33  ;;  %v5573_v52 = vpack.c.bf16 %v443_v50, %v442_v51 }
 0x118   : > { %4763 = vmatmul.mubr.msk.bf16.gmra.mxu0 %vm784_vm0, %v5549_v34  ;;  %4769 = vmatmul.mubr.msk.bf16.gmra.mxu1 %vm784_vm0, %v5523_v7 }
 0x119   : > { %881 = vmatprep.mubr.bf16.mxu0 %v5270_v5  ;;  %974 = vmatprep.mubr.bf16.mxu1 %v5270_v5 }
 0x120   : > { %4764 = vmatmul.mubr.msk.bf16.gmra.mxu0 %vm784_vm0, %v5561_v43  ;;  %4770 = vmatmul.mubr.msk.bf16.gmra.mxu1 %vm784_vm0, %v5537_v19 }
 0x121   : > { %891 = vmatprep.mubr.bf16.mxu0 %v5270_v5  ;;  %984 = vmatprep.mubr.bf16.mxu1 %v5270_v5 }
 0x128   : > { %4765 = vmatmul.mubr.msk.bf16.gmra.mxu0 %vm784_vm0, %v5573_v52  ;;  %4771 = vmatmul.mubr.msk.bf16.gmra.mxu1 %vm784_vm0, %v5549_v34 }
 0x129   : > { %994 = vmatprep.mubr.bf16.mxu1 %v5270_v5  ;;  %1067 = vmatprep.mubr.bf16.mxu0 %v5270_v5 }
 0x130   : > { %4772 = vmatmul.mubr.msk.bf16.gmra.mxu1 %vm784_vm0, %v5561_v43  ;;  %4776 = vmatmul.mubr.msk.bf16.vlgmr.msra.gmra.mxu0 %vm784_vm0, %v5507_v49 }
 0x131   : > { %1274 = vmatpush1.bf16.msra.mxu0 %v5017_v27  ;;  %1004 = vmatprep.mubr.bf16.mxu1 %v5270_v5 }
 0x132   : > { %1077 = vmatprep.mubr.bf16.mxu0 %v5270_v5  ;;  %1275 = vmatprep.subr.bf16.mxu0 %v5025_v29 }
 0x135   : > { %1276 = vmatpush1.bf16.msra.mxu0 %v5023_v53 }
 0x136   : > { %1499 = vmatprep.subr.bf16.mxu0 %v5031_v54 }
 0x138   : > { %4773 = vmatmul.mubr.msk.bf16.gmra.mxu1 %vm784_vm0, %v5573_v52  ;;  %4777 = vmatmul.mubr.msk.bf16.gmra.mxu0 %vm784_vm0, %v5523_v7 }
 0x139   : > { %1014 = vmatprep.mubr.bf16.mxu1 %v5270_v5  ;;  %1087 = vmatprep.mubr.bf16.mxu0 %v5270_v5 }
 0x140   : > { %4774 = vmatmul.mubr.msk.bf16.gmra.mxu1 %vm784_vm0, %v5505_v48  ;;  %4778 = vmatmul.mubr.msk.bf16.gmra.mxu0 %vm784_vm0, %v5537_v19 }
 0x141   : > { %1024 = vmatprep.mubr.bf16.mxu1 %v5270_v5  ;;  %1097 = vmatprep.mubr.bf16.mxu0 %v5270_v5 }
 0x148   : > { %4775 = vmatmul.mubr.msk.bf16.gmra.mxu1 %vm784_vm0, %v5527_v12  ;;  %4779 = vmatmul.mubr.msk.bf16.gmra.mxu0 %vm784_vm0, %v5549_v34 }
 0x149   : > { %1107 = vmatprep.mubr.bf16.mxu0 %v5270_v5  ;;  %1180 = vmatprep.mubr.bf16.mxu1 %v5270_v5 }
 0x150   : > { %4780 = vmatmul.mubr.msk.bf16.gmra.mxu0 %vm784_vm0, %v5561_v43  ;;  %4784 = vmatmul.mubr.msk.bf16.vlgmr.msra.gmra.mxu1 %vm784_vm0, %v5507_v49 }
 0x151   : > { %1387 = vmatpush1.bf16.msra.mxu1 %v5026_v55  ;;  %1117 = vmatprep.mubr.bf16.mxu0 %v5270_v5 }
 0x152   : > { %1190 = vmatprep.mubr.bf16.mxu1 %v5270_v5  ;;  %1388 = vmatprep.subr.bf16.mxu1 %v5034_v56 }
 0x155   : > { %1389 = vmatpush1.bf16.msra.mxu1 %v5032_v57 }
 0x156   : > { %1612 = vmatprep.subr.bf16.mxu1 %v5040_v58 }
 0x158   : > { %4781 = vmatmul.mubr.msk.bf16.gmra.mxu0 %vm784_vm0, %v5573_v52  ;;  %4785 = vmatmul.mubr.msk.bf16.gmra.mxu1 %vm784_vm0, %v5523_v7 }
 0x159   : > { %1127 = vmatprep.mubr.bf16.mxu0 %v5270_v5  ;;  %1200 = vmatprep.mubr.bf16.mxu1 %v5270_v5 }
 0x160   : > { %4782 = vmatmul.mubr.msk.bf16.gmra.mxu0 %vm784_vm0, %v5505_v48  ;;  %4786 = vmatmul.mubr.msk.bf16.gmra.mxu1 %vm784_vm0, %v5537_v19 }
 0x161   : > { %1137 = vmatprep.mubr.bf16.mxu0 %v5270_v5  ;;  %1210 = vmatprep.mubr.bf16.mxu1 %v5270_v5 }
 0x168   : > { %4783 = vmatmul.mubr.msk.bf16.gmra.mxu0 %vm784_vm0, %v5527_v12  ;;  %4787 = vmatmul.mubr.msk.bf16.gmra.mxu1 %vm784_vm0, %v5549_v34 }
 0x169   : > { %1220 = vmatprep.mubr.bf16.mxu1 %v5270_v5  ;;  %1293 = vmatprep.mubr.bf16.mxu0 %v5270_v5 }
 0x170   : > { %4788 = vmatmul.mubr.msk.bf16.gmra.mxu1 %vm784_vm0, %v5561_v43  ;;  %4792 = vmatmul.mubr.msk.bf16.vlgmr.msra.gmra.mxu0 %vm784_vm0, %v5507_v49 }
 0x171   : > { %1500 = vmatpush1.bf16.msra.mxu0 %v5029_v59  ;;  %1230 = vmatprep.mubr.bf16.mxu1 %v5270_v5 }
 0x172   : > { %1303 = vmatprep.mubr.bf16.mxu0 %v5270_v5  ;;  %1501 = vmatprep.subr.bf16.mxu0 %v5037_v60 }
 0x175   : > { %1502 = vmatpush1.bf16.msra.mxu0 %v5035_v61 }
 0x176   : > { %1725 = vmatprep.subr.bf16.mxu0 %v5043_v62 }
 0x178   : > { %4789 = vmatmul.mubr.msk.bf16.gmra.mxu1 %vm784_vm0, %v5573_v52  ;;  %4793 = vmatmul.mubr.msk.bf16.gmra.mxu0 %vm784_vm0, %v5523_v7 }
 0x179   : > { %1240 = vmatprep.mubr.bf16.mxu1 %v5270_v5  ;;  %1313 = vmatprep.mubr.bf16.mxu0 %v5270_v5 }
 0x180   : > { %4790 = vmatmul.mubr.msk.bf16.gmra.mxu1 %vm784_vm0, %v5505_v48  ;;  %4794 = vmatmul.mubr.msk.bf16.gmra.mxu0 %vm784_vm0, %v5537_v19 }
 0x181   : > { %1250 = vmatprep.mubr.bf16.mxu1 %v5270_v5  ;;  %1323 = vmatprep.mubr.bf16.mxu0 %v5270_v5 }
 0x188   : > { %4791 = vmatmul.mubr.msk.bf16.gmra.mxu1 %vm784_vm0, %v5527_v12  ;;  %4795 = vmatmul.mubr.msk.bf16.gmra.mxu0 %vm784_vm0, %v5549_v34 }
 0x189   : > { %1333 = vmatprep.mubr.bf16.mxu0 %v5270_v5  ;;  %1406 = vmatprep.mubr.bf16.mxu1 %v5270_v5 }
 0x190   : > { %4796 = vmatmul.mubr.msk.bf16.gmra.mxu0 %vm784_vm0, %v5561_v43  ;;  %4800 = vmatmul.mubr.msk.bf16.vlgmr.msra.gmra.mxu1 %vm784_vm0, %v5507_v49 }
 0x191   : > { %1613 = vmatpush1.bf16.msra.mxu1 %v5038_v63  ;;  %1343 = vmatprep.mubr.bf16.mxu0 %v5270_v5 }
 0x192   : > { %1416 = vmatprep.mubr.bf16.mxu1 %v5270_v5  ;;  %1614 = vmatprep.subr.bf16.mxu1 %v5046_v0 }
 0x195   : > { %1615 = vmatpush1.bf16.msra.mxu1 %v5044_v1 }
 0x196   : > { %1838 = vmatprep.subr.bf16.mxu1 %v5052_v2 }
 0x198   : > { %4797 = vmatmul.mubr.msk.bf16.gmra.mxu0 %vm784_vm0, %v5573_v52  ;;  %4801 = vmatmul.mubr.msk.bf16.gmra.mxu1 %vm784_vm0, %v5523_v7 }
 0x199   : > { %1353 = vmatprep.mubr.bf16.mxu0 %v5270_v5  ;;  %1426 = vmatprep.mubr.bf16.mxu1 %v5270_v5 }
 0x1a0   : > { %4798 = vmatmul.mubr.msk.bf16.gmra.mxu0 %vm784_vm0, %v5505_v48  ;;  %4802 = vmatmul.mubr.msk.bf16.gmra.mxu1 %vm784_vm0, %v5537_v19 }
 0x1a1   : > { %1363 = vmatprep.mubr.bf16.mxu0 %v5270_v5  ;;  %1436 = vmatprep.mubr.bf16.mxu1 %v5270_v5 }
 0x1a8   : > { %4799 = vmatmul.mubr.msk.bf16.gmra.mxu0 %vm784_vm0, %v5527_v12  ;;  %4803 = vmatmul.mubr.msk.bf16.gmra.mxu1 %vm784_vm0, %v5549_v34 }
 0x1a9   : > { %1446 = vmatprep.mubr.bf16.mxu1 %v5270_v5  ;;  %1519 = vmatprep.mubr.bf16.mxu0 %v5270_v5 }
 0x1b0   : > { %4804 = vmatmul.mubr.msk.bf16.gmra.mxu1 %vm784_vm0, %v5561_v43  ;;  %4808 = vmatmul.mubr.msk.bf16.vlgmr.msra.gmra.mxu0 %vm784_vm0, %v5507_v49 }
 0x1b1   : > { %1726 = vmatpush1.bf16.msra.mxu0 %v5041_v3  ;;  %1456 = vmatprep.mubr.bf16.mxu1 %v5270_v5 }
 0x1b2   : > { %1529 = vmatprep.mubr.bf16.mxu0 %v5270_v5  ;;  %1727 = vmatprep.subr.bf16.mxu0 %v5049_v4 }
 0x1b5   : > { %1728 = vmatpush1.bf16.msra.mxu0 %v5047_v6 }
 0x1b6   : > { %1951 = vmatprep.subr.bf16.mxu0 %v5055_v8 }
 0x1b8   : > { %4805 = vmatmul.mubr.msk.bf16.gmra.mxu1 %vm784_vm0, %v5573_v52  ;;  %4809 = vmatmul.mubr.msk.bf16.gmra.mxu0 %vm784_vm0, %v5523_v7 }
 0x1b9   : > { %1466 = vmatprep.mubr.bf16.mxu1 %v5270_v5  ;;  %1539 = vmatprep.mubr.bf16.mxu0 %v5270_v5 }
 0x1c0   : > { %v5689_v9 = vpop.f32.mrf.mxu0  ;;  %v5691_v10 = vpop.f32.mrf.mxu1  ;;  %4806 = vmatmul.mubr.msk.bf16.gmra.mxu1 %vm784_vm0, %v5505_v48  ;;  %4810 = vmatmul.mubr.msk.bf16.gmra.mxu0 %vm784_vm0, %v5537_v19 }
 0x1c1   : > { %1476 = vmatprep.mubr.bf16.mxu1 %v5270_v5  ;;  %1549 = vmatprep.mubr.bf16.mxu0 %v5270_v5 }
 0x1c2   : > { %v845_v11 = vpop.f32.mrf.mxu0  ;;  %v905_v13 = vpop.f32.mrf.mxu1 }
 0x1c3   : > { %v2392_v42 = vrot.slane %v845_v11, 1  ;;  %v2410_v44 = vrot.slane %v905_v13, 1 }
 0x1c4   : > { %v847_v14 = vpop.f32.mrf.mxu0  ;;  %v907_v15 = vpop.f32.mrf.mxu1 }
 0x1c6   : > { %v849_v16 = vpop.f32.mrf.mxu0  ;;  %v909_v17 = vpop.f32.mrf.mxu1 }
 0x1c7   : > { %v2393_v36 = vrot.slane %v849_v16, 1  ;;  %v2411_v37 = vrot.slane %v909_v17, 1 }
 0x1c8   : > { %v853_v18 = vpop.f32.mrf.mxu0  ;;  %v5699_v20 = vpop.f32.mrf.mxu1  ;;  %4807 = vmatmul.mubr.msk.bf16.gmra.mxu1 %vm784_vm0, %v5527_v12  ;;  %4811 = vmatmul.mubr.msk.bf16.gmra.mxu0 %vm784_vm0, %v5549_v34 }
 0x1c9   : > { %1559 = vmatprep.mubr.bf16.mxu0 %v5270_v5  ;;  %1632 = vmatprep.mubr.bf16.mxu1 %v5270_v5  ;;  %v2394_v51 = vsel %vm2391_vm1, %v2392_v42, %v2393_v36  ;;  %v2412_v27 = vsel %vm2391_vm1, %v2410_v44, %v2411_v37  ;;  %v2445_v29 = vadd.f32 %v2411_v37, %v907_v15 }
 0x1ca   : > { %v855_v21 = vpop.f32.mrf.mxu0  ;;  %v5706_v22 = vpop.f32.mrf.mxu1  ;;  %v2433_v60 = vadd.f32 %v2393_v36, %v847_v14  ;;  %v2444_v8 = vadd.f32 %v2412_v27, %v5691_v10 }
 0x1cb   : > { %v2395_v41 = vrot.slane %v855_v21, 1  ;;  %v2413_v61 = vrot.slane %v5706_v22, 1  ;;  %v2496_v11 = vsel %vm2391_vm1, %v2445_v29, -inf  ;;  %v2432_v22 = vadd.f32 %v2394_v51, %v5689_v9 }
 0x1cc   : > { %v857_v23 = vpop.f32.mrf.mxu0  ;;  %v917_v24 = vpop.f32.mrf.mxu1 }
 0x1ce   : > { %v859_v26 = vpop.f32.mrf.mxu0  ;;  %v919_v28 = vpop.f32.mrf.mxu1 }
 0x1cf   : > { %v2396_v31 = vrot.slane %v859_v26, 1  ;;  %v2414_v53 = vrot.slane %v919_v28, 1  ;;  %v2497_v28 = vmax.f32 %v2444_v8, %v2496_v11 }
 0x1d0   : > { %v863_v32 = vpop.f32.mrf.mxu0  ;;  %v956_v33 = vpop.f32.mrf.mxu1  ;;  %4812 = vmatmul.mubr.msk.bf16.gmra.mxu0 %vm784_vm0, %v5561_v43  ;;  %4816 = vmatmul.mubr.msk.bf16.vlgmr.msra.gmra.mxu1 %vm784_vm0, %v5507_v49 }
 0x1d1   : > { %1839 = vmatpush1.bf16.msra.mxu1 %v5050_v25  ;;  %1569 = vmatprep.mubr.bf16.mxu0 %v5270_v5  ;;  %v2435_v45 = vadd.f32 %v2396_v31, %v857_v23  ;;  %v2397_v50 = vsel %vm2391_vm1, %v2395_v41, %v2396_v31  ;;  %v2447_v13 = vadd.f32 %v2414_v53, %v917_v24  ;;  %v2448_v24 = vsel %vm2391_vm1, %v2433_v60, -inf }
 0x1d2   : > { %v865_v38 = vpop.f32.mrf.mxu0  ;;  %v958_v39 = vpop.f32.mrf.mxu1  ;;  %1642 = vmatprep.mubr.bf16.mxu1 %v5270_v5  ;;  %1840 = vmatprep.subr.bf16.mxu1 %v5058_v30  ;;  %v2434_v62 = vadd.f32 %v2397_v50, %v853_v18  ;;  %v2415_v16 = vsel %vm2391_vm1, %v2413_v61, %v2414_v53 }
 0x1d3   : > { %v2398_v56 = vrot.slane %v865_v38, 1  ;;  %v2582_v57 = vrot.slane %v958_v39, 1  ;;  %v2456_v63 = vsel %vm2391_vm1, %v2435_v45, -inf  ;;  %v2446_v30 = vadd.f32 %v2415_v16, %v5699_v20 }
 0x1d4   : > { %v867_v46 = vpop.f32.mrf.mxu0  ;;  %v960_v47 = vpop.f32.mrf.mxu1  ;;  %v2457_v23 = vmax.f32 %v2434_v62, %v2456_v63  ;;  %v2504_v31 = vsel %vm2391_vm1, %v2447_v13, -inf  ;;  %v2449_v39 = vmax.f32 %v2432_v22, %v2448_v24 }
 0x1d5   : > { %1841 = vmatpush1.bf16.msra.mxu1 %v5056_v35 }
 0x1d6   : > { %v869_v54 = vpop.f32.mrf.mxu0  ;;  %v962_v55 = vpop.f32.mrf.mxu1  ;;  %2064 = vmatprep.subr.bf16.mxu1 %v5064_v40  ;;  %v2458_v40 = vrot.slane %v2457_v23, 4 }
 0x1d7   : > { %v2399_v58 = vrot.slane %v869_v54, 1  ;;  %v2583_v59 = vrot.slane %v962_v55, 1  ;;  %v2450_v55 = vrot.slane %v2449_v39, 4 }
 0x1d8   : > { %v873_v0 = vpop.f32.mrf.mxu0  ;;  %v966_v1 = vpop.f32.mrf.mxu1  ;;  %4813 = vmatmul.mubr.msk.bf16.gmra.mxu0 %vm784_vm0, %v5573_v52  ;;  %4817 = vmatmul.mubr.msk.bf16.gmra.mxu1 %vm784_vm0, %v5523_v7 }
 0x1d9   : > { %v2400_v2 = vsel %vm2391_vm1, %v2398_v56, %v2399_v58  ;;  %v2437_v3 = vadd.f32 %v2399_v58, %v867_v46  ;;  %v2584_v4 = vsel %vm2391_vm1, %v2582_v57, %v2583_v59  ;;  %v5724_v6 = vadd.f32 %v2583_v59, %v960_v47  ;;  %1579 = vmatprep.mubr.bf16.mxu0 %v5270_v5 }
 0x1da   : > { %v875_v14 = vpop.f32.mrf.mxu0  ;;  %v968_v15 = vpop.f32.mrf.mxu1  ;;  %1652 = vmatprep.mubr.bf16.mxu1 %v5270_v5  ;;  %v2436_v17 = vadd.f32 %v2400_v2, %v863_v32  ;;  %v5734_v21 = vadd.f32 %v2584_v4, %v956_v33  ;;  %v2498_v46 = vrot.slane %v2497_v28, 4  ;;  %v2505_v47 = vmax.f32 %v2446_v30, %v2504_v31 }
 0x1db   : > { %v2464_v18 = vsel %vm2391_vm1, %v2437_v3, -inf  ;;  %v2401_v32 = vrot.slane %v875_v14, 1  ;;  %v2585_v37 = vrot.slane %v968_v15, 1  ;;  %v2459_v56 = vmax.f32 %v2457_v23, %v2458_v40 }
 0x1dc   : > { %v877_v10 = vpop.f32.mrf.mxu0  ;;  %v970_v25 = vpop.f32.mrf.mxu1  ;;  %v2465_v26 = vmax.f32 %v2436_v17, %v2464_v18  ;;  %v2499_v61 = vmax.f32 %v2497_v28, %v2498_v46  ;;  %v2506_v62 = vrot.slane %v2505_v47, 4  ;;  %v2451_v11 = vmax.f32 %v2449_v39, %v2450_v55 }
 0x1dd   : > { %v2460_v13 = vrot.slane %v2459_v56, 2 }
 0x1de   : > { %v879_v35 = vpop.f32.mrf.mxu0  ;;  %v972_v36 = vpop.f32.mrf.mxu1  ;;  %v2466_v42 = vrot.slane %v2465_v26, 4  ;;  %v2500_v31 = vrot.slane %v2499_v61, 2 }
 0x1df   : > { %v2402_v38 = vrot.slane %v879_v35, 1  ;;  %v2586_v33 = vrot.slane %v972_v36, 1  ;;  %v2461_v36 = vmax.f32 %v2459_v56, %v2460_v13 }
 0x1e0   : > { %v883_v9 = vpop.f32.mrf.mxu0  ;;  %v976_v41 = vpop.f32.mrf.mxu1  ;;  %4814 = vmatmul.mubr.msk.bf16.gmra.mxu0 %vm784_vm0, %v5505_v48  ;;  %4818 = vmatmul.mubr.msk.bf16.gmra.mxu1 %vm784_vm0, %v5537_v19  ;;  %v2467_v60 = vmax.f32 %v2465_v26, %v2466_v42 }
 0x1e1   : > { %v2403_v44 = vsel %vm2391_vm1, %v2401_v32, %v2402_v38  ;;  %v2439_v45 = vadd.f32 %v2402_v38, %v877_v10  ;;  %v2587_v20 = vsel %vm2391_vm1, %v2585_v37, %v2586_v33  ;;  %1589 = vmatprep.mubr.bf16.mxu0 %v5270_v5  ;;  %v5750_v54 = vadd.f32 %v2586_v33, %v970_v25 }
 0x1e2   : > { %v2438_v50 = vadd.f32 %v2403_v44, %v873_v0  ;;  %v5746_v51 = vadd.f32 %v2587_v20, %v966_v1  ;;  %v885_v27 = vpop.f32.mrf.mxu0  ;;  %v978_v29 = vpop.f32.mrf.mxu1  ;;  %1662 = vmatprep.mubr.bf16.mxu1 %v5270_v5  ;;  %v2468_v17 = vrot.slane %v2467_v60, 2  ;;  %v2507_v10 = vmax.f32 %v2505_v47, %v2506_v62 }
 0x1e3   : > { %v2472_v53 = vsel %vm2391_vm1, %v2439_v45, -inf  ;;  %v2404_v2 = vrot.slane %v885_v27, 1  ;;  %v2588_v3 = vrot.slane %v978_v29, 1  ;;  %v2452_v33 = vrot.slane %v2451_v11, 2  ;;  %v5053_v45 = vld [vmem:[#allocation8 + $0x128] ss:$108 sps:$4 sm:$0xff]  }
 0x1e4   : > { %v2473_v57 = vmax.f32 %v2438_v50, %v2472_v53  ;;  %v887_v58 = vpop.f32.mrf.mxu0  ;;  %v5753_v59 = vpop.f32.mrf.mxu1  ;;  %v2469_v39 = vmax.f32 %v2467_v60, %v2468_v17  ;;  %v2508_v40 = vrot.slane %v2507_v10, 2  ;;  %v2501_v20 = vmax.f32 %v2499_v61, %v2500_v31  ;;  %v5061_v50 = vld [vmem:[#allocation8 + $0x54] ss:$108 sps:$4 sm:$0xff]  }
 0x1e5   : > { %v2462_v27 = vrot.slane %v2461_v36, 1  ;;  %v2453_v56 = vmax.f32 %v2451_v11, %v2452_v33 }
 0x1e6   : > { %v2474_v63 = vrot.slane %v2473_v57, 4  ;;  %v889_v0 = vpop.f32.mrf.mxu0  ;;  %v5755_v1 = vpop.f32.mrf.mxu1  ;;  %v2509_v61 = vmax.f32 %v2507_v10, %v2508_v40  ;;  %v2502_v11 = vrot.slane %v2501_v20, 1 }
 0x1e7   : > { %v2405_v4 = vrot.slane %v889_v0, 1  ;;  %v2589_v8 = vrot.slane %v5755_v1, 1  ;;  %v2463_v17 = vmax.f32 %v2461_v36, %v2462_v27  ;;  %v2454_v10 = vrot.slane %v2453_v56, 1  ;;  %v5802_v36 = vld [vmem:[%s6969_s4] ss:$0 sm:$0xff] }
 0x1e8   : > { %v2475_v14 = vmax.f32 %v2473_v57, %v2474_v63  ;;  %v893_v15 = vpop.f32.mrf.mxu0  ;;  %v5758_v16 = vpop.f32.mrf.mxu1  ;;  %4815 = vmatmul.mubr.msk.bf16.gmra.mxu0 %vm784_vm0, %v5527_v12  ;;  %4819 = vmatmul.mubr.msk.bf16.gmra.mxu1 %vm784_vm0, %v5549_v34  ;;  %v2470_v57 = vrot.slane %v2469_v39, 1  ;;  %v2510_v31 = vrot.slane %v2509_v61, 1 }
 0x1e9   : > { %v2406_v18 = vsel %vm2391_vm1, %v2404_v2, %v2405_v4  ;;  %v2441_v22 = vadd.f32 %v2405_v4, %v887_v58  ;;  %v2590_v23 = vsel %vm2391_vm1, %v2588_v3, %v2589_v8  ;;  %1672 = vmatprep.mubr.bf16.mxu1 %v5270_v5  ;;  %1745 = vmatprep.mubr.bf16.mxu0 %v5270_v5  ;;  %v5059_v4 = vld [vmem:[#allocation8 + $0x50] ss:$108 sps:$4 sm:$0xff]  }
 0x1ea   : > { %v2476_v25 = vrot.slane %v2475_v14, 2  ;;  %v2440_v24 = vadd.f32 %v2406_v18, %v883_v9  ;;  %v5768_v26 = vadd.f32 %v2590_v23, %v976_v41  ;;  %v895_v28 = vpop.f32.mrf.mxu0  ;;  %v5770_v30 = vpop.f32.mrf.mxu1 }
 0x1eb   : > { %v2480_v35 = vsel %vm2391_vm1, %v2441_v22, -inf  ;;  %v2407_v46 = vrot.slane %v895_v28, 1 }
 0x1ec   : > { %v2481_v32 = vmax.f32 %v2440_v24, %v2480_v35  ;;  %v897_v37 = vpop.f32.mrf.mxu0  ;;  %v5775_v38 = vpop.f32.mrf.mxu1  ;;  %v2477_v9 = vmax.f32 %v2475_v14, %v2476_v25  ;;  %v5067_v14 = vld [vmem:[#allocation8 + $0x13c] ss:$108 sps:$4 sm:$0xff]   ;;  %v2471_v25 = vmax.f32 %v2469_v39, %v2470_v57 }
 0x1ee   : > { %v2482_v41 = vrot.slane %v2481_v32, 4  ;;  %v899_v42 = vpop.f32.mrf.mxu0  ;;  %v5777_v44 = vpop.f32.mrf.mxu1  ;;  %v2478_v62 = vrot.slane %v2477_v9, 1 }
 0x1ef   : > { %v2408_v47 = vrot.slane %v899_v42, 1 }
 0x1f0   : > { %v2483_v29 = vmax.f32 %v2481_v32, %v2482_v41  ;;  %v5779_v53 = vpop.f32.mrf.mxu1  ;;  %v1069_v55 = vpop.f32.mrf.mxu0  ;;  %4824 = vmatmul.mubr.msk.bf16.vlgmr.msra.gmra.mxu0 %vm784_vm0, %v5507_v49  ;;  %4820 = vmatmul.mubr.msk.bf16.gmra.mxu1 %vm784_vm0, %v5561_v43  ;;  %v2479_v35 = vmax.f32 %v2477_v9, %v2478_v62  ;;  %v2503_v41 = vmax.f32 %v2501_v20, %v2502_v11 }
 0x1f1   : > { %v2409_v58 = vsel %vm2391_vm1, %v2407_v46, %v2408_v47  ;;  %v2443_v60 = vadd.f32 %v2408_v47, %v897_v37  ;;  %1952 = vmatpush1.bf16.msra.mxu0 %v5053_v45  ;;  %1682 = vmatprep.mubr.bf16.mxu1 %v5270_v5  ;;  %v2655_v24 = vrot.slane %v1069_v55, 2  ;;  %v2520_v9 = vadd.f32 %v5802_v36, %v2463_v17 }
 0x1f2   : > { %v2484_v63 = vrot.slane %v2483_v29, 2  ;;  %v2442_v0 = vadd.f32 %v2409_v58, %v893_v15  ;;  %v5786_v2 = vpop.f32.mrf.mxu1  ;;  %v5788_v3 = vpop.f32.mrf.mxu0  ;;  %1755 = vmatprep.mubr.bf16.mxu0 %v5270_v5  ;;  %1953 = vmatprep.subr.bf16.mxu0 %v5061_v50  ;;  %v2521_v20 = vadd.f32 %v5802_v36, %v2471_v25 }
 0x1f3   : > { %v2488_v13 = vsel %vm2391_vm1, %v2443_v60, -inf }
 0x1f4   : > { %v2485_v18 = vmax.f32 %v2483_v29, %v2484_v63  ;;  %v2489_v22 = vmax.f32 %v2442_v0, %v2488_v13  ;;  %v5793_v23 = vpop.f32.mrf.mxu1  ;;  %v1073_v15 = vpop.f32.mrf.mxu0  ;;  %v2455_v29 = vmax.f32 %v2453_v56, %v2454_v10  ;;  %v2525_v56 = vadd.f32 %v5802_v36, %v2503_v41 }
 0x1f5   : > { %v2656_v28 = vrot.slane %v1073_v15, 2  ;;  %1954 = vmatpush1.bf16.msra.mxu0 %v5059_v4  ;;  %v2528_v0 = vmax.f32 %v2520_v9, 0.0  ;;  %v2529_v17 = vmax.f32 %v2521_v20, 0.0 }
 0x1f6   : > { %v2486_v32 = vrot.slane %v2485_v18, 1  ;;  %v2490_v37 = vrot.slane %v2489_v22, 4  ;;  %v5795_v33 = vpop.f32.mrf.mxu1  ;;  %v5797_v40 = vpop.f32.mrf.mxu0  ;;  %2177 = vmatprep.subr.bf16.mxu0 %v5067_v14  ;;  %v2519_v14 = vadd.f32 %v5802_v36, %v2455_v29 }
 0x1f7   : > { %v2657_v42 = vsel %vm2654_vm2, %v2655_v24, %v2656_v28  ;;  %v2696_v39 = vadd.f32 %v2656_v28, %v5724_v6  ;;  %v2511_v6 = vmax.f32 %v2509_v61, %v2510_v31  ;;  %v2546_v29 = vrot.slane %v2529_v17, 6 }
 0x1f8   : > { %v2487_v45 = vmax.f32 %v2485_v18, %v2486_v32  ;;  %v2491_v46 = vmax.f32 %v2489_v22, %v2490_v37  ;;  %v2695_v47 = vadd.f32 %v2657_v42, %v5734_v21  ;;  %v5808_v50 = vpop.f32.mrf.mxu1  ;;  %v1079_v27 = vpop.f32.mrf.mxu0  ;;  %4825 = vmatmul.mubr.msk.bf16.gmra.mxu0 %vm784_vm0, %v5523_v7  ;;  %4821 = vmatmul.mubr.msk.bf16.gmra.mxu1 %vm784_vm0, %v5573_v52  ;;  %v2543_v42 = vrot.slane %v2528_v0, 7 }
 0x1f9   : > { %v2711_v55 = vsel %vm2654_vm2, %v2696_v39, -inf  ;;  %1765 = vmatprep.mubr.bf16.mxu0 %v5270_v5  ;;  %v2522_v21 = vadd.f32 %v5802_v36, %v2479_v35  ;;  %1692 = vmatprep.mubr.bf16.mxu1 %v5270_v5  ;;  %v2658_v18 = vrot.slane %v1079_v27, 2  ;;  %v2526_v15 = vadd.f32 %v5802_v36, %v2511_v6 }
 0x1fa   : > { %v2492_v57 = vrot.slane %v2491_v46, 2  ;;  %v2712_v58 = vmax.f32 %v2695_v47, %v2711_v55  ;;  %v5818_v60 = vpop.f32.mrf.mxu1  ;;  %v5820_v62 = vpop.f32.mrf.mxu0  ;;  %v2523_v63 = vadd.f32 %v5802_v36, %v2487_v45  ;;  %v2533_v35 = vmax.f32 %v2525_v56, 0.0 }
 0x1fb   : > { %v2530_v10 = vmax.f32 %v2522_v21, 0.0  ;;  %v2527_v27 = vmax.f32 %v2519_v14, 0.0  ;;  %v2627_v17 = vadd.f32 %v2589_v8, %v5753_v59 }
 0x1fc   : > { %v2493_v4 = vmax.f32 %v2491_v46, %v2492_v57  ;;  %v2713_v61 = vrot.slane %v2712_v58, 4  ;;  %v5825_v11 = vpop.f32.mrf.mxu1  ;;  %v1083_v13 = vpop.f32.mrf.mxu0  ;;  %v2531_v32 = vmax.f32 %v2523_v63, 0.0 }
 0x1fd   : > { %v2659_v22 = vrot.slane %v1083_v13, 2  ;;  %v2549_v55 = vrot.slane %v2530_v10, 5  ;;  %v2545_v63 = vsel %vm2544_vm3, %v2543_v42, %v2527_v27  ;;  %v2591_v27 = vrot.slane %v5770_v30, 1 }
 0x1fe   : > { %v2494_v25 = vrot.slane %v2493_v4, 1  ;;  %v2714_v24 = vmax.f32 %v2712_v58, %v2713_v61  ;;  %v5829_v28 = vpop.f32.mrf.mxu1  ;;  %v5831_v31 = vpop.f32.mrf.mxu0  ;;  %v2558_v58 = vrot.slane %v2533_v35, 2  ;;  %v2552_v56 = vrot.slane %v2531_v32, 4 }
 0x1ff   : > { %v2660_v37 = vsel %vm2654_vm2, %v2658_v18, %v2659_v22  ;;  %v2698_v41 = vadd.f32 %v2659_v22, %v5750_v54  ;;  %v2534_v54 = vmax.f32 %v2526_v15, 0.0 }
 0x200   : > { %v2495_v39 = vmax.f32 %v2493_v4, %v2494_v25  ;;  %v2715_v9 = vrot.slane %v2714_v24, 2  ;;  %v2697_v45 = vadd.f32 %v2660_v37, %v5746_v51  ;;  %v5836_v46 = vpop.f32.mrf.mxu1  ;;  %v1089_v47 = vpop.f32.mrf.mxu0  ;;  %4826 = vmatmul.mubr.msk.bf16.gmra.mxu0 %vm784_vm0, %v5537_v19  ;;  %4822 = vmatmul.mubr.msk.bf16.gmra.mxu1 %vm784_vm0, %v5505_v48 }
 0x201   : > { %v2719_v20 = vsel %vm2654_vm2, %v2698_v41, -inf  ;;  %1775 = vmatprep.mubr.bf16.mxu0 %v5270_v5  ;;  %1702 = vmatprep.mubr.bf16.mxu1 %v5270_v5  ;;  %v2661_v18 = vrot.slane %v1089_v47, 2  ;;  %v2561_v15 = vrot.slane %v2534_v54, 1  ;;  %v2592_v41 = vrot.slane %v5777_v44, 1 }
 0x202   : > { %v2524_v51 = vadd.f32 %v5802_v36, %v2495_v39  ;;  %v2720_v6 = vmax.f32 %v2697_v45, %v2719_v20  ;;  %v5845_v21 = vpop.f32.mrf.mxu1  ;;  %v5847_v57 = vpop.f32.mrf.mxu0  ;;  %v2716_v4 = vmax.f32 %v2714_v24, %v2715_v9  ;;  %v2548_v36 = vsel %vm2547_vm4, %v2546_v29, %v2545_v63 }
 0x203   : > { %v2551_v10 = vsel %vm2550_vm5, %v2549_v55, %v2548_v36  ;;  %v2593_v30 = vsel %vm2391_vm1, %v2591_v27, %v2592_v41  ;;  %v2594_v36 = vrot.slane %v5786_v2, 1 }
 0x204   : > { %v2532_v0 = vmax.f32 %v2524_v51, 0.0  ;;  %v2721_v61 = vrot.slane %v2720_v6, 4  ;;  %v5851_v13 = vpop.f32.mrf.mxu1  ;;  %v1093_v14 = vpop.f32.mrf.mxu0  ;;  %v2554_v37 = vsel %vm2553_vm6, %v2552_v56, %v2551_v10  ;;  %v2717_v1 = vrot.slane %v2716_v4, 1 }
 0x205   : > { %v2662_v22 = vrot.slane %v1093_v14, 2  ;;  %v2629_v14 = vadd.f32 %v2592_v41, %v5775_v38  ;;  %v5070_v41 = vld [vmem:[#allocation8 + $0x5c] ss:$108 sps:$4 sm:$0xff]  }
 0x206   : > { %v2555_v25 = vrot.slane %v2532_v0, 3  ;;  %v2722_v35 = vmax.f32 %v2720_v6, %v2721_v61  ;;  %v5859_v32 = vpop.f32.mrf.mxu1  ;;  %v5861_v24 = vpop.f32.mrf.mxu0  ;;  %v2595_v6 = vrot.slane %v5795_v33, 1 }
 0x207   : > { %v2663_v42 = vsel %vm2654_vm2, %v2661_v18, %v2662_v22  ;;  %v2700_v39 = vadd.f32 %v2662_v22, %v2627_v17  ;;  %v5898_v17 = vld [vmem:[%s6969_s4 + $0x1] ss:$0 sm:$0xff]  ;;  %v2628_v22 = vadd.f32 %v2593_v30, %v5758_v16 }
 0x208   : > { %v2557_v59 = vsel %vm2556_vm7, %v2555_v25, %v2554_v37  ;;  %v2723_v8 = vrot.slane %v2722_v35, 2  ;;  %v2699_v9 = vadd.f32 %v2663_v42, %v5768_v26  ;;  %v5868_v45 = vpop.f32.mrf.mxu1  ;;  %v1099_v47 = vpop.f32.mrf.mxu0  ;;  %4827 = vmatmul.mubr.msk.bf16.gmra.mxu0 %vm784_vm0, %v5549_v34  ;;  %4823 = vmatmul.mubr.msk.bf16.gmra.mxu1 %vm784_vm0, %v5527_v12  ;;  %v2596_v38 = vsel %vm2391_vm1, %v2594_v36, %v2595_v6 }
 0x209   : > { %v2560_v44 = vsel %vm2559_vm8, %v2558_v58, %v2557_v59  ;;  %v2727_v29 = vsel %vm2654_vm2, %v2700_v39, -inf  ;;  %1785 = vmatprep.mubr.bf16.mxu0 %v5270_v5  ;;  %1858 = vmatprep.mubr.bf16.mxu1 %v5270_v5  ;;  %v2718_v58 = vmax.f32 %v2716_v4, %v2717_v1  ;;  %v2664_v33 = vrot.slane %v1099_v47, 2 }
 0x20a   : > { %v2563_v26 = vsel %vm2562_vm9, %v2561_v15, %v2560_v44  ;;  %v2724_v20 = vmax.f32 %v2722_v35, %v2723_v8  ;;  %v2728_v54 = vmax.f32 %v2699_v9, %v2727_v29  ;;  %v5879_v55 = vpop.f32.mrf.mxu1  ;;  %v5881_v51 = vpop.f32.mrf.mxu0  ;;  %v5062_v35 = vld [vmem:[#allocation8 + $0x130] ss:$108 sps:$4 sm:$0xff]   ;;  %v2631_v30 = vadd.f32 %v2595_v6, %v5793_v23 }
 0x20b   : > { %2565 = vst [vmem:[%s5888_s23] sm:$0xff] %v2563_v26  ;;  %v2782_v42 = vadd.f32 %v5898_v17, %v2718_v58  ;;  %v2598_v58 = vrot.slane %v5829_v28, 1 }
 0x20c   : > { %v2725_v56 = vrot.slane %v2724_v20, 1  ;;  %v2729_v63 = vrot.slane %v2728_v54, 4  ;;  %v5891_v0 = vpop.f32.mrf.mxu1  ;;  %v1103_v61 = vpop.f32.mrf.mxu0 }
 0x20d   : > { %v2665_v18 = vrot.slane %v1103_v61, 2 }
 0x20e   : > { %v2726_v15 = vmax.f32 %v2724_v20, %v2725_v56  ;;  %v2730_v4 = vmax.f32 %v2728_v54, %v2729_v63  ;;  %v5901_v10 = vpop.f32.mrf.mxu1  ;;  %v5903_v25 = vpop.f32.mrf.mxu0  ;;  %v5068_v20 = vld [vmem:[#allocation8 + $0x58] ss:$108 sps:$4 sm:$0xff]   ;;  %v2630_v54 = vadd.f32 %v2596_v38, %v5779_v53  ;;  %v5921_v56 = vld [vmem:[#allocation8 + $0x140] ss:$108 sps:$4 sm:$0xff]   ;;  %v2790_v63 = vmax.f32 %v2782_v42, 0.0 }
 0x20f   : > { %v2666_v2 = vsel %vm2654_vm2, %v2664_v33, %v2665_v18  ;;  %v2702_v37 = vadd.f32 %v2665_v18, %v2629_v14 }
 0x210   : > { %v2783_v39 = vadd.f32 %v5898_v17, %v2726_v15  ;;  %v2731_v59 = vrot.slane %v2730_v4, 2  ;;  %v2701_v1 = vadd.f32 %v2666_v2, %v2628_v22  ;;  %v1109_v16 = vpop.f32.mrf.mxu0  ;;  %v1182_v8 = vpop.f32.mrf.mxu1  ;;  %4828 = vmatmul.mubr.msk.bf16.gmra.mxu0 %vm784_vm0, %v5561_v43  ;;  %4832 = vmatmul.mubr.msk.bf16.vlgmr.msra.gmra.mxu1 %vm784_vm0, %v5507_v49  ;;  %v2597_v2 = vrot.slane %v5818_v60, 1 }
 0x211   : > { %v2735_v9 = vsel %vm2654_vm2, %v2702_v37, -inf  ;;  %1795 = vmatprep.mubr.bf16.mxu0 %v5270_v5  ;;  %2065 = vmatpush1.bf16.msra.mxu1 %v5062_v35  ;;  %v2667_v22 = vrot.slane %v1109_v16, 2  ;;  %v2838_v15 = vrot.slane %v1182_v8, 1 }
 0x212   : > { %v2791_v47 = vmax.f32 %v2783_v39, 0.0  ;;  %v2732_v27 = vmax.f32 %v2730_v4, %v2731_v59  ;;  %v2736_v44 = vmax.f32 %v2701_v1, %v2735_v9  ;;  %v5915_v29 = vpop.f32.mrf.mxu0  ;;  %v1184_v26 = vpop.f32.mrf.mxu1  ;;  %1868 = vmatprep.mubr.bf16.mxu1 %v5270_v5  ;;  %2066 = vmatprep.subr.bf16.mxu1 %v5070_v41 }
 0x214   : > { %v2806_v61 = vrot.slane %v2791_v47, 7  ;;  %v2733_v14 = vrot.slane %v2732_v27, 1  ;;  %v2737_v36 = vrot.slane %v2736_v44, 4  ;;  %v1113_v33 = vpop.f32.mrf.mxu0  ;;  %v1186_v18 = vpop.f32.mrf.mxu1  ;;  %v2599_v47 = vsel %vm2391_vm1, %v2597_v2, %v2598_v58 }
 0x215   : > { %v2668_v4 = vrot.slane %v1113_v33, 2  ;;  %v2839_v35 = vrot.slane %v1186_v18, 1  ;;  %2067 = vmatpush1.bf16.msra.mxu1 %v5068_v20 }
 0x216   : > { %v2807_v53 = vsel %vm2544_vm3, %v2806_v61, %v2790_v63  ;;  %v2734_v23 = vmax.f32 %v2732_v27, %v2733_v14  ;;  %v2738_v6 = vmax.f32 %v2736_v44, %v2737_v36  ;;  %v5925_v28 = vpop.f32.mrf.mxu0  ;;  %v1188_v38 = vpop.f32.mrf.mxu1  ;;  %4893 = vmatprep.subr.bf16.mxu1 %v5921_v56  ;;  %v2910_v27 = vrot.slane %v1184_v26, 2 }
 0x217   : > { %v2669_v37 = vsel %vm2654_vm2, %v2667_v22, %v2668_v4  ;;  %v2704_v41 = vadd.f32 %v2668_v4, %v2631_v30  ;;  %v2840_v42 = vsel %vm2391_vm1, %v2838_v15, %v2839_v35  ;;  %v2879_v39 = vadd.f32 %v2839_v35, %v5797_v40 }
 0x218   : > { %v2784_v59 = vadd.f32 %v5898_v17, %v2734_v23  ;;  %v2739_v60 = vrot.slane %v2738_v6, 2  ;;  %v2703_v1 = vadd.f32 %v2669_v37, %v2630_v54  ;;  %v2878_v16 = vadd.f32 %v2840_v42, %v5788_v3  ;;  %v1119_v8 = vpop.f32.mrf.mxu0  ;;  %v1192_v9 = vpop.f32.mrf.mxu1  ;;  %4829 = vmatmul.mubr.msk.bf16.gmra.mxu0 %vm784_vm0, %v5573_v52  ;;  %4833 = vmatmul.mubr.msk.bf16.gmra.mxu1 %vm784_vm0, %v5523_v7 }
 0x219   : > { %v2743_v44 = vsel %vm2654_vm2, %v2704_v41, -inf  ;;  %v2911_v20 = vrot.slane %v1188_v38, 2  ;;  %1805 = vmatprep.mubr.bf16.mxu0 %v5270_v5  ;;  %1878 = vmatprep.mubr.bf16.mxu1 %v5270_v5  ;;  %v2633_v61 = vadd.f32 %v2598_v58, %v5825_v11  ;;  %v2632_v36 = vadd.f32 %v2599_v47, %v5808_v50 }
 0x21a   : > { %v2792_v40 = vmax.f32 %v2784_v59, 0.0  ;;  %v2740_v54 = vmax.f32 %v2738_v6, %v2739_v60  ;;  %v2744_v30 = vmax.f32 %v2703_v1, %v2743_v44  ;;  %v5940_v3 = vpop.f32.mrf.mxu0  ;;  %v1194_v63 = vpop.f32.mrf.mxu1  ;;  %v2670_v35 = vrot.slane %v1119_v8, 2 }
 0x21b   : > { %v2912_v26 = vsel %vm2654_vm2, %v2910_v27, %v2911_v20  ;;  %v5945_v14 = vadd.f32 %v2911_v20, %v2879_v39  ;;  %v2841_v2 = vrot.slane %v1192_v9, 1  ;;  %v2601_v11 = vrot.slane %v5859_v32, 1 }
 0x21c   : > { %v2808_v33 = vrot.slane %v2792_v40, 6  ;;  %v2741_v18 = vrot.slane %v2740_v54, 1  ;;  %v5948_v22 = vadd.f32 %v2912_v26, %v2878_v16  ;;  %v1123_v15 = vpop.f32.mrf.mxu0  ;;  %v1196_v4 = vpop.f32.mrf.mxu1  ;;  %v2745_v37 = vrot.slane %v2744_v30, 4 }
 0x21d   : > { %v2671_v23 = vrot.slane %v1123_v15, 2  ;;  %v2842_v6 = vrot.slane %v1196_v4, 1  ;;  %v2600_v32 = vrot.slane %v5845_v21, 1  ;;  %v2913_v47 = vrot.slane %v1194_v63, 2 }
 0x21e   : > { %v2809_v38 = vsel %vm2547_vm4, %v2808_v33, %v2807_v53  ;;  %v2742_v58 = vmax.f32 %v2740_v54, %v2741_v18  ;;  %v5952_v41 = vpop.f32.mrf.mxu0  ;;  %v1198_v42 = vpop.f32.mrf.mxu1  ;;  %v2635_v26 = vadd.f32 %v2601_v11, %v5851_v13 }
 0x21f   : > { %v2672_v50 = vsel %vm2654_vm2, %v2670_v35, %v2671_v23  ;;  %v2706_v39 = vadd.f32 %v2671_v23, %v2633_v61  ;;  %v2843_v59 = vsel %vm2391_vm1, %v2841_v2, %v2842_v6  ;;  %v2881_v60 = vadd.f32 %v2842_v6, %v5831_v31 }
 0x220   : > { %v2785_v1 = vadd.f32 %v5898_v17, %v2742_v58  ;;  %v2705_v16 = vadd.f32 %v2672_v50, %v2632_v36  ;;  %v2880_v8 = vadd.f32 %v2843_v59, %v5820_v62  ;;  %v1129_v53 = vpop.f32.mrf.mxu0  ;;  %v1202_v9 = vpop.f32.mrf.mxu1  ;;  %4830 = vmatmul.mubr.msk.bf16.gmra.mxu0 %vm784_vm0, %v5505_v48  ;;  %v2914_v44 = vrot.slane %v1198_v42, 2  ;;  %4834 = vmatmul.mubr.msk.bf16.gmra.mxu1 %vm784_vm0, %v5537_v19 }
 0x221   : > { %v2751_v27 = vsel %vm2654_vm2, %v2706_v39, -inf  ;;  %1815 = vmatprep.mubr.bf16.mxu0 %v5270_v5  ;;  %1888 = vmatprep.mubr.bf16.mxu1 %v5270_v5  ;;  %v2602_v54 = vsel %vm2391_vm1, %v2600_v32, %v2601_v11  ;;  %v2746_v61 = vmax.f32 %v2744_v30, %v2745_v37  ;;  %v2673_v35 = vrot.slane %v1129_v53, 2 }
 0x222   : > { %v2793_v31 = vmax.f32 %v2785_v1, 0.0  ;;  %v2752_v20 = vmax.f32 %v2705_v16, %v2751_v27  ;;  %v5966_v40 = vpop.f32.mrf.mxu0  ;;  %v1204_v62 = vpop.f32.mrf.mxu1  ;;  %v2915_v21 = vsel %vm2654_vm2, %v2913_v47, %v2914_v44  ;;  %v5971_v63 = vadd.f32 %v2914_v44, %v2881_v60 }
 0x223   : > { %v5974_v18 = vadd.f32 %v2915_v21, %v2880_v8  ;;  %v2844_v2 = vrot.slane %v1202_v9, 1  ;;  %v2634_v30 = vadd.f32 %v2602_v54, %v5836_v46  ;;  %v2604_v37 = vrot.slane %v5901_v10, 1 }
 0x224   : > { %v2810_v36 = vrot.slane %v2793_v31, 5  ;;  %v2753_v33 = vrot.slane %v2752_v20, 4  ;;  %v1133_v15 = vpop.f32.mrf.mxu0  ;;  %v5976_v4 = vpop.f32.mrf.mxu1  ;;  %v2747_v50 = vrot.slane %v2746_v61, 2  ;;  %v2603_v10 = vrot.slane %v5879_v55, 1 }
 0x225   : > { %v2674_v23 = vrot.slane %v1133_v15, 2  ;;  %v2845_v6 = vrot.slane %v5976_v4, 1  ;;  %v2916_v53 = vrot.slane %v1204_v62, 2 }
 0x226   : > { %v5981_v58 = vsel %vm2550_vm5, %v2810_v36, %v2809_v38  ;;  %v2754_v13 = vmax.f32 %v2752_v20, %v2753_v33  ;;  %v5984_v11 = vpop.f32.mrf.mxu0  ;;  %v5986_v42 = vpop.f32.mrf.mxu1  ;;  %v2605_v44 = vsel %vm2391_vm1, %v2603_v10, %v2604_v37  ;;  %v2748_v55 = vmax.f32 %v2746_v61, %v2747_v50 }
 0x227   : > { %v2675_v39 = vsel %vm2654_vm2, %v2673_v35, %v2674_v23  ;;  %v2708_v59 = vadd.f32 %v2674_v23, %v2635_v26  ;;  %v2846_v60 = vsel %vm2391_vm1, %v2844_v2, %v2845_v6  ;;  %v6981_v32 = vrot.slane %v5986_v42, 2  ;;  %v5065_v35 = vld [vmem:[#allocation8 + $0x138] ss:$108 sps:$4 sm:$0xff]  }
 0x228   : > { %v2755_v1 = vrot.slane %v2754_v13, 2  ;;  %v2707_v46 = vadd.f32 %v2675_v39, %v2634_v30  ;;  %v2882_v38 = vadd.f32 %v2846_v60, %v5847_v57  ;;  %v1139_v16 = vpop.f32.mrf.mxu0  ;;  %v5993_v8 = vpop.f32.mrf.mxu1  ;;  %4831 = vmatmul.mubr.msk.bf16.gmra.mxu0 %vm784_vm0, %v5527_v12  ;;  %4835 = vmatmul.mubr.msk.bf16.gmra.mxu1 %vm784_vm0, %v5549_v34  ;;  %v2637_v36 = vadd.f32 %v2604_v37, %v5891_v0  ;;  %v5071_v37 = vld [vmem:[#allocation8 + $0x60] ss:$108 sps:$4 sm:$0xff]  }
 0x229   : > { %v2759_v9 = vsel %vm2654_vm2, %v2708_v59, -inf  ;;  %1971 = vmatprep.mubr.bf16.mxu0 %v5270_v5  ;;  %1898 = vmatprep.mubr.bf16.mxu1 %v5270_v5  ;;  %v2918_v31 = vsel %vm2654_vm2, %v2916_v53, %v6981_v32  ;;  %v2676_v33 = vrot.slane %v1139_v16, 2  ;;  %v2636_v2 = vadd.f32 %v2605_v44, %v5868_v45  ;;  %v5073_v59 = vld [vmem:[#allocation8 + $0x64] ss:$108 sps:$4 sm:$0xff]  }
 0x22a   : > { %v2760_v47 = vmax.f32 %v2707_v46, %v2759_v9  ;;  %v6003_v57 = vpop.f32.mrf.mxu0  ;;  %v6005_v27 = vpop.f32.mrf.mxu1  ;;  %v2756_v20 = vmax.f32 %v2754_v13, %v2755_v1  ;;  %v6012_v54 = vadd.f32 %v2918_v31, %v2882_v38  ;;  %v2749_v50 = vrot.slane %v2748_v55, 1 }
 0x22c   : > { %v2761_v62 = vrot.slane %v2760_v47, 4  ;;  %v1143_v21 = vpop.f32.mrf.mxu0  ;;  %v6014_v26 = vpop.f32.mrf.mxu1  ;;  %v2757_v60 = vrot.slane %v2756_v20, 1 }
 0x22d   : > { %v2677_v15 = vrot.slane %v1143_v21, 2 }
 0x22e   : > { %v2762_v23 = vmax.f32 %v2760_v47, %v2761_v62  ;;  %v6018_v61 = vpop.f32.mrf.mxu0  ;;  %v6020_v30 = vpop.f32.mrf.mxu1  ;;  %v2750_v47 = vmax.f32 %v2748_v55, %v2749_v50  ;;  %v2758_v44 = vmax.f32 %v2756_v20, %v2757_v60 }
 0x22f   : > { %v2678_v13 = vsel %vm2654_vm2, %v2676_v33, %v2677_v15  ;;  %v2710_v39 = vadd.f32 %v2677_v15, %v2637_v36 }
 0x230   : > { %v2763_v1 = vrot.slane %v2762_v23, 2  ;;  %v2709_v46 = vadd.f32 %v2678_v13, %v2636_v2  ;;  %v6023_v38 = vpop.f32.mrf.mxu1  ;;  %v1295_v0 = vpop.f32.mrf.mxu0  ;;  %4840 = vmatmul.mubr.msk.bf16.vlgmr.msra.gmra.mxu0 %vm784_vm0, %v5507_v49  ;;  %4836 = vmatmul.mubr.msk.bf16.gmra.mxu1 %vm784_vm0, %v5561_v43  ;;  %v2787_v50 = vadd.f32 %v5898_v17, %v2758_v44 }
 0x231   : > { %v2767_v45 = vsel %vm2654_vm2, %v2710_v39, -inf  ;;  %2178 = vmatpush1.bf16.msra.mxu0 %v5065_v35  ;;  %1908 = vmatprep.mubr.bf16.mxu1 %v5270_v5  ;;  %v2983_v33 = vrot.slane %v1295_v0, 3  ;;  %v2786_v39 = vadd.f32 %v5898_v17, %v2750_v47 }
 0x232   : > { %v2764_v16 = vmax.f32 %v2762_v23, %v2763_v1  ;;  %v2768_v10 = vmax.f32 %v2709_v46, %v2767_v45  ;;  %v6030_v53 = vpop.f32.mrf.mxu1  ;;  %v6032_v9 = vpop.f32.mrf.mxu0  ;;  %1981 = vmatprep.mubr.bf16.mxu0 %v5270_v5  ;;  %2179 = vmatprep.subr.bf16.mxu0 %v5073_v59  ;;  %v2795_v47 = vmax.f32 %v2787_v50, 0.0  ;;  %v2848_v50 = vrot.slane %v6014_v26, 1 }
 0x234   : > { %v2765_v31 = vrot.slane %v2764_v16, 1  ;;  %v2769_v62 = vrot.slane %v2768_v10, 4  ;;  %v6036_v21 = vpop.f32.mrf.mxu1  ;;  %v1299_v36 = vpop.f32.mrf.mxu0 }
 0x235   : > { %v2984_v15 = vrot.slane %v1299_v36, 3  ;;  %2180 = vmatpush1.bf16.msra.mxu0 %v5071_v37 }
 0x236   : > { %v2766_v35 = vmax.f32 %v2764_v16, %v2765_v31  ;;  %v2770_v2 = vmax.f32 %v2768_v10, %v2769_v62  ;;  %v6038_v23 = vpop.f32.mrf.mxu1  ;;  %v6040_v13 = vpop.f32.mrf.mxu0  ;;  %v2794_v10 = vmax.f32 %v2786_v39, 0.0 }
 0x237   : > { %v2985_v55 = vsel %vm2982_vm10, %v2983_v33, %v2984_v15  ;;  %v3024_v20 = vadd.f32 %v2984_v15, %v5945_v14 }
 0x238   : > { %v2771_v59 = vrot.slane %v2770_v2, 2  ;;  %v3023_v60 = vadd.f32 %v2985_v55, %v5948_v22  ;;  %v6047_v1 = vpop.f32.mrf.mxu1  ;;  %v1305_v46 = vpop.f32.mrf.mxu0  ;;  %4841 = vmatmul.mubr.msk.bf16.gmra.mxu0 %vm784_vm0, %v5523_v7  ;;  %v2788_v0 = vadd.f32 %v5898_v17, %v2766_v35  ;;  %4837 = vmatmul.mubr.msk.bf16.gmra.mxu1 %vm784_vm0, %v5573_v52  ;;  %v2812_v39 = vrot.slane %v2794_v10, 4 }
 0x239   : > { %v3039_v45 = vsel %vm2982_vm10, %v3024_v20, -inf  ;;  %1991 = vmatprep.mubr.bf16.mxu0 %v5270_v5  ;;  %1918 = vmatprep.mubr.bf16.mxu1 %v5270_v5  ;;  %v2986_v15 = vrot.slane %v1305_v46, 3 }
 0x23a   : > { %v2772_v14 = vmax.f32 %v2770_v2, %v2771_v59  ;;  %v3040_v37 = vmax.f32 %v3023_v60, %v3039_v45  ;;  %v6056_v16 = vpop.f32.mrf.mxu1  ;;  %v6058_v22 = vpop.f32.mrf.mxu0  ;;  %v2796_v33 = vmax.f32 %v2788_v0, 0.0  ;;  %v2883_v2 = vadd.f32 %v2845_v6, %v5861_v24 }
 0x23b   : > { %v2814_v0 = vrot.slane %v2795_v47, 3 }
 0x23c   : > { %v2773_v44 = vrot.slane %v2772_v14, 1  ;;  %v3041_v31 = vrot.slane %v3040_v37, 4  ;;  %v6061_v62 = vpop.f32.mrf.mxu1  ;;  %v1309_v36 = vpop.f32.mrf.mxu0 }
 0x23d   : > { %v2987_v35 = vrot.slane %v1309_v36, 3 }
 0x23e   : > { %v2774_v55 = vmax.f32 %v2772_v14, %v2773_v44  ;;  %v3042_v20 = vmax.f32 %v3040_v37, %v3041_v31  ;;  %v6066_v59 = vpop.f32.mrf.mxu1  ;;  %v6068_v60 = vpop.f32.mrf.mxu0  ;;  %v2816_v14 = vrot.slane %v2796_v33, 2  ;;  %v2847_v37 = vrot.slane %v5993_v8, 1 }
 0x23f   : > { %v2988_v45 = vsel %vm2982_vm10, %v2986_v15, %v2987_v35  ;;  %v3026_v32 = vadd.f32 %v2987_v35, %v5971_v63  ;;  %v2813_v8 = vsel %vm2553_vm6, %v2812_v39, %v5981_v58  ;;  %v2885_v33 = vadd.f32 %v2848_v50, %v5903_v25 }
 0x240   : > { %v2789_v46 = vadd.f32 %v5898_v17, %v2774_v55  ;;  %v3043_v36 = vrot.slane %v3042_v20, 2  ;;  %v3025_v4 = vadd.f32 %v2988_v45, %v5974_v18  ;;  %v6075_v24 = vpop.f32.mrf.mxu1  ;;  %v1315_v6 = vpop.f32.mrf.mxu0  ;;  %4842 = vmatmul.mubr.msk.bf16.gmra.mxu0 %vm784_vm0, %v5537_v19  ;;  %4838 = vmatmul.mubr.msk.bf16.gmra.mxu1 %vm784_vm0, %v5505_v48  ;;  %v7004_v17 = vrot.slane %v5986_v42, 2 }
 0x241   : > { %v3047_v26 = vsel %vm2982_vm10, %v3026_v32, -inf  ;;  %2001 = vmatprep.mubr.bf16.mxu0 %v5270_v5  ;;  %v2919_v18 = vrot.slane %v6005_v27, 2  ;;  %1928 = vmatprep.mubr.bf16.mxu1 %v5270_v5  ;;  %v2849_v32 = vsel %vm2391_vm1, %v2847_v37, %v2848_v50  ;;  %v2920_v42 = vrot.slane %v6020_v30, 2 }
 0x242   : > { %v2955_v63 = vadd.f32 %v7004_v17, %v2883_v2  ;;  %v2797_v10 = vmax.f32 %v2789_v46, 0.0  ;;  %v3048_v47 = vmax.f32 %v3025_v4, %v3047_v26  ;;  %v6087_v44 = vpop.f32.mrf.mxu1  ;;  %v6089_v31 = vpop.f32.mrf.mxu0  ;;  %v2815_v27 = vsel %vm2556_vm7, %v2814_v0, %v2813_v8 }
 0x243   : > { %v3044_v35 = vmax.f32 %v3042_v20, %v3043_v36  ;;  %v2817_v46 = vsel %vm2559_vm8, %v2816_v14, %v2815_v27  ;;  %v2851_v4 = vrot.slane %v6036_v21, 1  ;;  %v2989_v58 = vrot.slane %v1315_v6, 3 }
 0x244   : > { %v2818_v15 = vrot.slane %v2797_v10, 1  ;;  %v3049_v2 = vrot.slane %v3048_v47, 4  ;;  %v6098_v55 = vpop.f32.mrf.mxu1  ;;  %v1319_v45 = vpop.f32.mrf.mxu0  ;;  %v2884_v25 = vadd.f32 %v2849_v32, %v5881_v51  ;;  %v2921_v20 = vsel %vm2654_vm2, %v2919_v18, %v2920_v42 }
 0x245   : > { %v2990_v39 = vrot.slane %v1319_v45, 3  ;;  %v2850_v36 = vrot.slane %v6023_v38, 1  ;;  %v3045_v21 = vrot.slane %v3044_v35, 1  ;;  %v2854_v6 = vrot.slane %v6061_v62, 1 }
 0x246   : > { %v2819_v37 = vsel %vm2562_vm9, %v2818_v15, %v2817_v46  ;;  %v3050_v30 = vmax.f32 %v3048_v47, %v3049_v2  ;;  %v6104_v50 = vpop.f32.mrf.mxu1  ;;  %v6106_v0 = vpop.f32.mrf.mxu0  ;;  %v2957_v8 = vadd.f32 %v2920_v42, %v2885_v33  ;;  %v2923_v62 = vrot.slane %v6038_v23, 2 }
 0x247   : > { %2821 = vst [vmem:[%s5888_s23 + $0x8] sm:$0xff] %v2819_v37  ;;  %v2991_v14 = vsel %vm2982_vm10, %v2989_v58, %v2990_v39  ;;  %v3028_v26 = vadd.f32 %v2990_v39, %v2955_v63  ;;  %v2852_v18 = vsel %vm2391_vm1, %v2850_v36, %v2851_v4  ;;  %v2956_v33 = vadd.f32 %v2921_v20, %v2884_v25  ;;  %v6140_v25 = vld [vmem:[%s6969_s4 + $0x2] ss:$0 sm:$0xff] }
 0x248   : > { %v3051_v17 = vrot.slane %v3050_v30, 2  ;;  %v3027_v10 = vadd.f32 %v2991_v14, %v6012_v54  ;;  %v6114_v51 = vpop.f32.mrf.mxu1  ;;  %v1325_v47 = vpop.f32.mrf.mxu0  ;;  %4843 = vmatmul.mubr.msk.bf16.gmra.mxu0 %vm784_vm0, %v5549_v34  ;;  %4839 = vmatmul.mubr.msk.bf16.gmra.mxu1 %vm784_vm0, %v5527_v12  ;;  %v2853_v54 = vrot.slane %v6047_v1, 1  ;;  %v2922_v42 = vrot.slane %v6030_v53, 2 }
 0x249   : > { %v3055_v38 = vsel %vm2982_vm10, %v3028_v26, -inf  ;;  %2011 = vmatprep.mubr.bf16.mxu0 %v5270_v5  ;;  %2084 = vmatprep.mubr.bf16.mxu1 %v5270_v5  ;;  %v2887_v2 = vadd.f32 %v2851_v4, %v5925_v28  ;;  %v2926_v45 = vrot.slane %v6066_v59, 2  ;;  %v3046_v46 = vmax.f32 %v3044_v35, %v3045_v21 }
 0x24a   : > { %v3052_v63 = vmax.f32 %v3050_v30, %v3051_v17  ;;  %v3056_v32 = vmax.f32 %v3027_v10, %v3055_v38  ;;  %v6125_v27 = vpop.f32.mrf.mxu1  ;;  %v6127_v15 = vpop.f32.mrf.mxu0  ;;  %v2855_v23 = vsel %vm2391_vm1, %v2853_v54, %v2854_v6  ;;  %v2886_v30 = vadd.f32 %v2852_v18, %v5915_v29 }
 0x24b   : > { %v2925_v53 = vrot.slane %v6056_v16, 2  ;;  %v2992_v28 = vrot.slane %v1325_v47, 3  ;;  %v2924_v59 = vsel %vm2654_vm2, %v2922_v42, %v2923_v62  ;;  %v2889_v35 = vadd.f32 %v2854_v6, %v5952_v41  ;;  %v5075_v16 = vld [vmem:[#allocation8 + $0x68] ss:$108 sps:$4 sm:$0xff]  }
 0x24c   : > { %v3053_v58 = vrot.slane %v3052_v63, 1  ;;  %v3057_v1 = vrot.slane %v3056_v32, 4  ;;  %v6134_v39 = vpop.f32.mrf.mxu1  ;;  %v1329_v37 = vpop.f32.mrf.mxu0  ;;  %v2888_v29 = vadd.f32 %v2855_v23, %v5940_v3  ;;  %v3110_v47 = vadd.f32 %v6140_v25, %v3046_v46 }
 0x24d   : > { %v2993_v4 = vrot.slane %v1329_v37, 3  ;;  %v2927_v21 = vsel %vm2654_vm2, %v2925_v53, %v2926_v45  ;;  %v2857_v42 = vrot.slane %v6098_v55, 1  ;;  %v2928_v37 = vrot.slane %v6087_v44, 2 }
 0x24e   : > { %v3054_v20 = vmax.f32 %v3052_v63, %v3053_v58  ;;  %v3058_v36 = vmax.f32 %v3056_v32, %v3057_v1  ;;  %v6145_v14 = vpop.f32.mrf.mxu1  ;;  %v6147_v26 = vpop.f32.mrf.mxu0  ;;  %v2958_v63 = vadd.f32 %v2924_v59, %v2886_v30  ;;  %v2959_v32 = vadd.f32 %v2923_v62, %v2887_v2 }
 0x24f   : > { %v2994_v17 = vsel %vm2982_vm10, %v2992_v28, %v2993_v4  ;;  %v3030_v10 = vadd.f32 %v2993_v4, %v2957_v8  ;;  %v6165_v62 = vadd.f32 %v2927_v21, %v2888_v29  ;;  %v6167_v2 = vadd.f32 %v2926_v45, %v2889_v35 }
 0x250   : > { %v3111_v18 = vadd.f32 %v6140_v25, %v3054_v20  ;;  %v3059_v38 = vrot.slane %v3058_v36, 2  ;;  %v3029_v41 = vadd.f32 %v2994_v17, %v2956_v33  ;;  %v1335_v6 = vpop.f32.mrf.mxu0  ;;  %v1408_v54 = vpop.f32.mrf.mxu1  ;;  %4844 = vmatmul.mubr.msk.bf16.gmra.mxu0 %vm784_vm0, %v5561_v43  ;;  %4848 = vmatmul.mubr.msk.bf16.vlgmr.msra.gmra.mxu1 %vm784_vm0, %v5507_v49  ;;  %v2856_v1 = vrot.slane %v6075_v24, 1 }
 0x251   : > { %v3063_v3 = vsel %vm2982_vm10, %v3030_v10, -inf  ;;  %2021 = vmatprep.mubr.bf16.mxu0 %v5270_v5  ;;  %4894 = vmatpush3.bf16.msra.mxu1 %v5921_v56  ;;  %v3118_v30 = vmax.f32 %v3110_v47, 0.0  ;;  %v2995_v59 = vrot.slane %v1335_v6, 3  ;;  %v3166_v20 = vrot.slane %v1408_v54, 1 }
 0x252   : > { %v3119_v8 = vmax.f32 %v3111_v18, 0.0  ;;  %v3060_v46 = vmax.f32 %v3058_v36, %v3059_v38  ;;  %v3064_v23 = vmax.f32 %v3029_v41, %v3063_v3  ;;  %v6162_v33 = vpop.f32.mrf.mxu0  ;;  %v1410_v58 = vpop.f32.mrf.mxu1  ;;  %2094 = vmatprep.mubr.bf16.mxu1 %v5270_v5  ;;  %4895 = vmatprep.subr.bf16.mxu1 %v5075_v16  ;;  %v2858_v45 = vsel %vm2391_vm1, %v2856_v1, %v2857_v42 }
 0x254   : > { %v3134_v55 = vrot.slane %v3119_v8, 7  ;;  %v3061_v53 = vrot.slane %v3060_v46, 1  ;;  %v3065_v28 = vrot.slane %v3064_v23, 4  ;;  %v1339_v4 = vpop.f32.mrf.mxu0  ;;  %v1412_v56 = vpop.f32.mrf.mxu1 }
 0x255   : > { %v2996_v36 = vrot.slane %v1339_v4, 3  ;;  %v3167_v17 = vrot.slane %v1412_v56, 1  ;;  %4896 = vmatpush3.bf16.msra.mxu1 %v5075_v16  ;;  %v2891_v16 = vadd.f32 %v2857_v42, %v5984_v11  ;;  %v2890_v11 = vadd.f32 %v2858_v45, %v5966_v40 }
 0x256   : > { %v3135_v29 = vsel %vm2544_vm3, %v3134_v55, %v3118_v30  ;;  %v3062_v35 = vmax.f32 %v3060_v46, %v3061_v53  ;;  %v3066_v21 = vmax.f32 %v3064_v23, %v3065_v28  ;;  %v6173_v24 = vpop.f32.mrf.mxu0  ;;  %v1414_v44 = vpop.f32.mrf.mxu1  ;;  %v3238_v23 = vrot.slane %v1410_v58, 2 }
 0x257   : > { %v2997_v10 = vsel %vm2982_vm10, %v2995_v59, %v2996_v36  ;;  %v3032_v47 = vadd.f32 %v2996_v36, %v2959_v32  ;;  %v3168_v18 = vsel %vm2391_vm1, %v3166_v20, %v3167_v17  ;;  %v3207_v38 = vadd.f32 %v3167_v17, %v6040_v13 }
 0x258   : > { %v3112_v41 = vadd.f32 %v6140_v25, %v3062_v35  ;;  %v3067_v6 = vrot.slane %v3066_v21, 2  ;;  %v3031_v54 = vadd.f32 %v2997_v10, %v2958_v63  ;;  %v3206_v3 = vadd.f32 %v3168_v18, %v6032_v9  ;;  %v1345_v8 = vpop.f32.mrf.mxu0  ;;  %v1418_v46 = vpop.f32.mrf.mxu1  ;;  %4845 = vmatmul.mubr.msk.bf16.gmra.mxu0 %vm784_vm0, %v5573_v52  ;;  %4849 = vmatmul.mubr.msk.bf16.gmra.mxu1 %vm784_vm0, %v5523_v7 }
 0x259   : > { %v3071_v32 = vsel %vm2982_vm10, %v3032_v47, -inf  ;;  %v3239_v1 = vrot.slane %v1414_v44, 2  ;;  %2031 = vmatprep.mubr.bf16.mxu0 %v5270_v5  ;;  %v2929_v63 = vrot.slane %v6104_v50, 2  ;;  %2104 = vmatprep.mubr.bf16.mxu1 %v5270_v5  ;;  %v2859_v42 = vrot.slane %v6114_v51, 1 }
 0x25a   : > { %v3120_v13 = vmax.f32 %v3112_v41, 0.0  ;;  %v3068_v9 = vmax.f32 %v3066_v21, %v3067_v6  ;;  %v3072_v30 = vmax.f32 %v3031_v54, %v3071_v32  ;;  %v6188_v55 = vpop.f32.mrf.mxu0  ;;  %v1420_v53 = vpop.f32.mrf.mxu1  ;;  %v2998_v17 = vrot.slane %v1345_v8, 3 }
 0x25b   : > { %v3240_v58 = vsel %vm2654_vm2, %v3238_v23, %v3239_v1  ;;  %v6194_v28 = vadd.f32 %v3239_v1, %v3207_v38  ;;  %v3169_v35 = vrot.slane %v1418_v46, 1  ;;  %v2930_v40 = vsel %vm2654_vm2, %v2928_v37, %v2929_v63 }
 0x25c   : > { %v3136_v4 = vrot.slane %v3120_v13, 6  ;;  %v3069_v56 = vrot.slane %v3068_v9, 1  ;;  %v3073_v59 = vrot.slane %v3072_v30, 4  ;;  %v6196_v20 = vadd.f32 %v3240_v58, %v3206_v3  ;;  %v1349_v50 = vpop.f32.mrf.mxu0  ;;  %v1422_v36 = vpop.f32.mrf.mxu1 }
 0x25d   : > { %v2999_v21 = vrot.slane %v1349_v50, 3  ;;  %v3170_v44 = vrot.slane %v1422_v36, 1  ;;  %v2963_v32 = vadd.f32 %v2929_v63, %v2891_v16  ;;  %v3241_v1 = vrot.slane %v1420_v53, 2 }
 0x25e   : > { %v3137_v10 = vsel %vm2547_vm4, %v3136_v4, %v3135_v29  ;;  %v3070_v51 = vmax.f32 %v3068_v9, %v3069_v56  ;;  %v3074_v45 = vmax.f32 %v3072_v30, %v3073_v59  ;;  %v6200_v47 = vpop.f32.mrf.mxu0  ;;  %v1424_v18 = vpop.f32.mrf.mxu1  ;;  %v2962_v16 = vadd.f32 %v2930_v40, %v2890_v11 }
 0x25f   : > { %v3000_v38 = vsel %vm2982_vm10, %v2998_v17, %v2999_v21  ;;  %v3034_v41 = vadd.f32 %v2999_v21, %v6167_v2  ;;  %v3171_v6 = vsel %vm2391_vm1, %v3169_v35, %v3170_v44  ;;  %v3209_v54 = vadd.f32 %v3170_v44, %v6068_v60 }
 0x260   : > { %v3113_v3 = vadd.f32 %v6140_v25, %v3070_v51  ;;  %v3075_v8 = vrot.slane %v3074_v45, 2  ;;  %v3033_v29 = vadd.f32 %v3000_v38, %v6165_v62  ;;  %v3208_v37 = vadd.f32 %v3171_v6, %v6058_v22  ;;  %v1355_v46 = vpop.f32.mrf.mxu0  ;;  %v1428_v23 = vpop.f32.mrf.mxu1  ;;  %4846 = vmatmul.mubr.msk.bf16.gmra.mxu0 %vm784_vm0, %v5505_v48  ;;  %4850 = vmatmul.mubr.msk.bf16.gmra.mxu1 %vm784_vm0, %v5537_v19 }
 0x261   : > { %v3079_v2 = vsel %vm2982_vm10, %v3034_v41, -inf  ;;  %v3242_v13 = vrot.slane %v1424_v18, 2  ;;  %2041 = vmatprep.mubr.bf16.mxu0 %v5270_v5  ;;  %v2860_v60 = vrot.slane %v6134_v39, 1  ;;  %2114 = vmatprep.mubr.bf16.mxu1 %v5270_v5  ;;  %v2931_v63 = vrot.slane %v6125_v27, 2 }
 0x262   : > { %v3121_v62 = vmax.f32 %v3113_v3, 0.0  ;;  %v3076_v9 = vmax.f32 %v3074_v45, %v3075_v8  ;;  %v3080_v22 = vmax.f32 %v3033_v29, %v3079_v2  ;;  %v6216_v30 = vpop.f32.mrf.mxu0  ;;  %v1430_v58 = vpop.f32.mrf.mxu1  ;;  %v3001_v35 = vrot.slane %v1355_v46, 3 }
 0x263   : > { %v3243_v53 = vsel %vm2654_vm2, %v3241_v1, %v3242_v13  ;;  %v6221_v4 = vadd.f32 %v3242_v13, %v3209_v54  ;;  %v3172_v21 = vrot.slane %v1428_v23, 1  ;;  %v2861_v11 = vsel %vm2391_vm1, %v2859_v42, %v2860_v60 }
 0x264   : > { %v3138_v56 = vrot.slane %v3121_v62, 5  ;;  %v3077_v59 = vrot.slane %v3076_v9, 1  ;;  %v3081_v50 = vrot.slane %v3080_v22, 4  ;;  %v6223_v36 = vadd.f32 %v3243_v53, %v3208_v37  ;;  %v1359_v39 = vpop.f32.mrf.mxu0  ;;  %v6225_v17 = vpop.f32.mrf.mxu1 }
 0x265   : > { %v3002_v44 = vrot.slane %v1359_v39, 3  ;;  %v3173_v51 = vrot.slane %v6225_v17, 1  ;;  %v2932_v41 = vrot.slane %v6145_v14, 2  ;;  %v2893_v14 = vadd.f32 %v2860_v60, %v6018_v61 }
 0x266   : > { %v3139_v27 = vsel %vm2550_vm5, %v3138_v56, %v3137_v10  ;;  %v3078_v40 = vmax.f32 %v3076_v9, %v3077_v59  ;;  %v3082_v45 = vmax.f32 %v3080_v22, %v3081_v50  ;;  %v6230_v18 = vpop.f32.mrf.mxu0  ;;  %v6232_v38 = vpop.f32.mrf.mxu1  ;;  %v3244_v23 = vrot.slane %v1430_v58, 2 }
 0x267   : > { %v3003_v6 = vsel %vm2982_vm10, %v3001_v35, %v3002_v44  ;;  %v3036_v54 = vadd.f32 %v3002_v44, %v2963_v32  ;;  %v3174_v3 = vsel %vm2391_vm1, %v3172_v21, %v3173_v51  ;;  %v3245_v1 = vrot.slane %v6232_v38, 2 }
 0x268   : > { %v3114_v8 = vadd.f32 %v6140_v25, %v3078_v40  ;;  %v3083_v42 = vrot.slane %v3082_v45, 2  ;;  %v3035_v29 = vadd.f32 %v3003_v6, %v2962_v16  ;;  %v3210_v10 = vadd.f32 %v3174_v3, %v6089_v31  ;;  %v1365_v37 = vpop.f32.mrf.mxu0  ;;  %v6241_v46 = vpop.f32.mrf.mxu1  ;;  %4847 = vmatmul.mubr.msk.bf16.gmra.mxu0 %vm784_vm0, %v5527_v12  ;;  %4851 = vmatmul.mubr.msk.bf16.gmra.mxu1 %vm784_vm0, %v5549_v34 }
 0x269   : > { %v3087_v32 = vsel %vm2982_vm10, %v3036_v54, -inf  ;;  %2197 = vmatprep.mubr.bf16.mxu0 %v5270_v5  ;;  %v2892_v31 = vadd.f32 %v2861_v11, %v6003_v57  ;;  %2124 = vmatprep.mubr.bf16.mxu1 %v5270_v5  ;;  %v2933_v61 = vsel %vm2654_vm2, %v2931_v63, %v2932_v41  ;;  %v3246_v60 = vsel %vm2654_vm2, %v3244_v23, %v3245_v1 }
 0x26a   : > { %v3122_v2 = vmax.f32 %v3114_v8, 0.0  ;;  %v3084_v13 = vmax.f32 %v3082_v45, %v3083_v42  ;;  %v3088_v62 = vmax.f32 %v3035_v29, %v3087_v32  ;;  %v6252_v9 = vpop.f32.mrf.mxu0  ;;  %v6254_v22 = vpop.f32.mrf.mxu1  ;;  %v6261_v56 = vadd.f32 %v3246_v60, %v3210_v10 }
 0x26b   : > { %v2965_v50 = vadd.f32 %v2932_v41, %v2893_v14  ;;  %v3004_v39 = vrot.slane %v1365_v37, 3  ;;  %v2964_v21 = vadd.f32 %v2933_v61, %v2892_v31 }
 0x26c   : > { %v3140_v58 = vrot.slane %v3122_v2, 4  ;;  %v3085_v16 = vrot.slane %v3084_v13, 1  ;;  %v3089_v53 = vrot.slane %v3088_v62, 4  ;;  %v1369_v57 = vpop.f32.mrf.mxu0  ;;  %v6263_v59 = vpop.f32.mrf.mxu1 }
 0x26d   : > { %v3005_v35 = vrot.slane %v1369_v57, 3 }
 0x26e   : > { %v3141_v44 = vsel %vm2553_vm6, %v3140_v58, %v3139_v27  ;;  %v3086_v11 = vmax.f32 %v3084_v13, %v3085_v16  ;;  %v3090_v63 = vmax.f32 %v3088_v62, %v3089_v53  ;;  %v6266_v40 = vpop.f32.mrf.mxu0  ;;  %v6268_v45 = vpop.f32.mrf.mxu1 }
 0x26f   : > { %v3006_v6 = vsel %vm2982_vm10, %v3004_v39, %v3005_v35  ;;  %v3038_v54 = vadd.f32 %v3005_v35, %v2965_v50 }
 0x270   : > { %v3115_v3 = vadd.f32 %v6140_v25, %v3086_v11  ;;  %v3091_v8 = vrot.slane %v3090_v63, 2  ;;  %v3037_v42 = vadd.f32 %v3006_v6, %v2964_v21  ;;  %v6272_v29 = vpop.f32.mrf.mxu1  ;;  %v1521_v41 = vpop.f32.mrf.mxu0  ;;  %4856 = vmatmul.mubr.msk.bf16.vlgmr.msra.gmra.mxu0 %vm784_vm0, %v5507_v49  ;;  %4852 = vmatmul.mubr.msk.bf16.gmra.mxu1 %vm784_vm0, %v5561_v43 }
 0x271   : > { %v3095_v27 = vsel %vm2982_vm10, %v3038_v54, -inf  ;;  %2207 = vmatprep.mubr.bf16.mxu0 %v5270_v5  ;;  %2134 = vmatprep.mubr.bf16.mxu1 %v5270_v5  ;;  %v3310_v60 = vrot.slane %v1521_v41, 3  ;;  %v3175_v41 = vrot.slane %v6241_v46, 1 }
 0x272   : > { %v3123_v10 = vmax.f32 %v3115_v3, 0.0  ;;  %v3092_v37 = vmax.f32 %v3090_v63, %v3091_v8  ;;  %v3096_v14 = vmax.f32 %v3037_v42, %v3095_v27  ;;  %v6280_v23 = vpop.f32.mrf.mxu1  ;;  %v1523_v32 = vpop.f32.mrf.mxu0  ;;  %v3211_v63 = vadd.f32 %v3173_v51, %v6106_v0 }
 0x273   : > { %v3176_v8 = vrot.slane %v6263_v59, 1  ;;  %v3383_v42 = vrot.slane %v1523_v32, 4 }
 0x274   : > { %v3142_v31 = vrot.slane %v3123_v10, 3  ;;  %v3093_v2 = vrot.slane %v3092_v37, 1  ;;  %v3097_v13 = vrot.slane %v3096_v14, 4  ;;  %v6283_v62 = vpop.f32.mrf.mxu1  ;;  %v1525_v61 = vpop.f32.mrf.mxu0 }
 0x275   : > { %v3311_v58 = vrot.slane %v1525_v61, 3  ;;  %v3179_v61 = vrot.slane %v6283_v62, 1 }
 0x276   : > { %v3143_v16 = vsel %vm2556_vm7, %v3142_v31, %v3141_v44  ;;  %v3094_v53 = vmax.f32 %v3092_v37, %v3093_v2  ;;  %v3098_v57 = vmax.f32 %v3096_v14, %v3097_v13  ;;  %v6286_v50 = vpop.f32.mrf.mxu1  ;;  %v1527_v39 = vpop.f32.mrf.mxu0  ;;  %v6310_v37 = vadd.f32 %v3245_v1, %v3211_v63 }
 0x277   : > { %v3312_v35 = vsel %vm2982_vm10, %v3310_v60, %v3311_v58  ;;  %v3351_v21 = vadd.f32 %v3311_v58, %v6194_v28  ;;  %v3384_v28 = vrot.slane %v1527_v39, 4  ;;  %v3177_v13 = vsel %vm2391_vm1, %v3175_v41, %v3176_v8 }
 0x278   : > { %v3116_v11 = vadd.f32 %v6140_v25, %v3094_v53  ;;  %v3099_v6 = vrot.slane %v3098_v57, 2  ;;  %v3350_v54 = vadd.f32 %v3312_v35, %v6196_v20  ;;  %v6295_v44 = vpop.f32.mrf.mxu1  ;;  %v1531_v3 = vpop.f32.mrf.mxu0  ;;  %4857 = vmatmul.mubr.msk.bf16.gmra.mxu0 %vm784_vm0, %v5523_v7  ;;  %4853 = vmatmul.mubr.msk.bf16.gmra.mxu1 %vm784_vm0, %v5573_v52  ;;  %v3247_v35 = vrot.slane %v6254_v22, 2 }
 0x279   : > { %2217 = vmatprep.mubr.bf16.mxu0 %v5270_v5  ;;  %2144 = vmatprep.mubr.bf16.mxu1 %v5270_v5  ;;  %v3385_v27 = vsel %vm3382_vm11, %v3383_v42, %v3384_v28  ;;  %v3424_v10 = vadd.f32 %v3384_v28, %v3351_v21  ;;  %v3313_v46 = vrot.slane %v1531_v3, 3  ;;  %v3248_v21 = vrot.slane %v6268_v45, 2 }
 0x27a   : > { %v3124_v17 = vmax.f32 %v3116_v11, 0.0  ;;  %v3100_v0 = vmax.f32 %v3098_v57, %v3099_v6  ;;  %v6303_v51 = vpop.f32.mrf.mxu1  ;;  %v1533_v20 = vpop.f32.mrf.mxu0  ;;  %v3423_v32 = vadd.f32 %v3385_v27, %v3350_v54  ;;  %v3178_v11 = vrot.slane %v6272_v29, 1 }
 0x27b   : > { %v3439_v60 = vsel %vm3382_vm11, %v3424_v10, -inf  ;;  %v3386_v54 = vrot.slane %v1533_v20, 4  ;;  %v3212_v28 = vadd.f32 %v3177_v13, %v6127_v15  ;;  %v3213_v22 = vadd.f32 %v3176_v8, %v6147_v26 }
 0x27c   : > { %v3144_v59 = vrot.slane %v3124_v17, 2  ;;  %v3101_v14 = vrot.slane %v3100_v0, 1  ;;  %v6312_v31 = vpop.f32.mrf.mxu1  ;;  %v1535_v2 = vpop.f32.mrf.mxu0  ;;  %v3440_v57 = vmax.f32 %v3423_v32, %v3439_v60  ;;  %v3180_v17 = vsel %vm2391_vm1, %v3178_v11, %v3179_v61 }
 0x27d   : > { %v3314_v39 = vrot.slane %v1535_v2, 3  ;;  %v3249_v15 = vsel %vm2654_vm2, %v3247_v35, %v3248_v21  ;;  %v3251_v26 = vrot.slane %v6286_v50, 2  ;;  %v3250_v10 = vrot.slane %v6280_v23, 2 }
 0x27e   : > { %v3145_v58 = vsel %vm2559_vm8, %v3144_v59, %v3143_v16  ;;  %v3102_v53 = vmax.f32 %v3100_v0, %v3101_v14  ;;  %v6318_v38 = vpop.f32.mrf.mxu1  ;;  %v1537_v1 = vpop.f32.mrf.mxu0  ;;  %v3441_v6 = vrot.slane %v3440_v57, 4  ;;  %v3215_v59 = vadd.f32 %v3179_v61, %v6173_v24 }
 0x27f   : > { %v3387_v63 = vrot.slane %v1537_v1, 4  ;;  %v3315_v3 = vsel %vm2982_vm10, %v3313_v46, %v3314_v39  ;;  %v3353_v29 = vadd.f32 %v3314_v39, %v6221_v4  ;;  %v3214_v13 = vadd.f32 %v3180_v17, %v6162_v33 }
 0x280   : > { %v3117_v62 = vadd.f32 %v6140_v25, %v3102_v53  ;;  %v6325_v16 = vpop.f32.mrf.mxu1  ;;  %v1541_v42 = vpop.f32.mrf.mxu0  ;;  %4858 = vmatmul.mubr.msk.bf16.gmra.mxu0 %vm784_vm0, %v5537_v19  ;;  %v3352_v45 = vadd.f32 %v3315_v3, %v6223_v36  ;;  %4854 = vmatmul.mubr.msk.bf16.gmra.mxu1 %vm784_vm0, %v5505_v48  ;;  %v3442_v0 = vmax.f32 %v3440_v57, %v3441_v6  ;;  %v3182_v39 = vrot.slane %v6312_v31, 1 }
 0x281   : > { %v3388_v20 = vsel %vm3382_vm11, %v3386_v54, %v3387_v63  ;;  %2154 = vmatprep.mubr.bf16.mxu1 %v5270_v5  ;;  %2227 = vmatprep.mubr.bf16.mxu0 %v5270_v5  ;;  %v3426_v36 = vadd.f32 %v3387_v63, %v3353_v29  ;;  %v3316_v46 = vrot.slane %v1541_v42, 3  ;;  %v3252_v24 = vsel %vm2654_vm2, %v3250_v10, %v3251_v26 }
 0x282   : > { %v3125_v25 = vmax.f32 %v3117_v62, 0.0  ;;  %v6337_v41 = vpop.f32.mrf.mxu1  ;;  %v1543_v27 = vpop.f32.mrf.mxu0  ;;  %v3425_v4 = vadd.f32 %v3388_v20, %v3352_v45  ;;  %v3443_v14 = vrot.slane %v3442_v0, 2  ;;  %v3181_v63 = vrot.slane %v6295_v44, 1  ;;  %v6380_v20 = vld [vmem:[%s6969_s4 + $0x3] ss:$0 sm:$0xff] }
 0x283   : > { %v3447_v60 = vsel %vm3382_vm11, %v3426_v36, -inf  ;;  %v3284_v54 = vadd.f32 %v3249_v15, %v3212_v28  ;;  %v3285_v3 = vadd.f32 %v3248_v21, %v3213_v22  ;;  %v3389_v42 = vrot.slane %v1543_v27, 4 }
 0x284   : > { %v3146_v8 = vrot.slane %v3125_v25, 1  ;;  %v6345_v32 = vpop.f32.mrf.mxu1  ;;  %v1545_v2 = vpop.f32.mrf.mxu0  ;;  %v3444_v57 = vmax.f32 %v3442_v0, %v3443_v14  ;;  %v3448_v1 = vmax.f32 %v3425_v4, %v3447_v60  ;;  %v6368_v44 = vadd.f32 %v3251_v26, %v3215_v59 }
 0x285   : > { %v3317_v53 = vrot.slane %v1545_v2, 3  ;;  %v3185_v22 = vrot.slane %v6345_v32, 1  ;;  %v3253_v27 = vrot.slane %v6303_v51, 2  ;;  %v3217_v15 = vadd.f32 %v3182_v39, %v6200_v47 }
 0x286   : > { %v3147_v50 = vsel %vm2562_vm9, %v3146_v8, %v3145_v58  ;;  %v6351_v35 = vpop.f32.mrf.mxu1  ;;  %v1547_v23 = vpop.f32.mrf.mxu0  ;;  %v3445_v11 = vrot.slane %v3444_v57, 1  ;;  %v3449_v62 = vrot.slane %v3448_v1, 4  ;;  %v3254_v10 = vrot.slane %v6318_v38, 2 }
 0x287   : > { %3149 = vst [vmem:[%s5888_s23 + $0x10] sm:$0xff] %v3147_v50  ;;  %v3318_v61 = vsel %vm2982_vm10, %v3316_v46, %v3317_v53  ;;  %v3355_v33 = vadd.f32 %v3317_v53, %v6310_v37  ;;  %v3390_v45 = vrot.slane %v1547_v23, 4  ;;  %v6366_v37 = vadd.f32 %v3252_v24, %v3214_v13 }
 0x288   : > { %v3354_v58 = vadd.f32 %v3318_v61, %v6261_v56  ;;  %v6359_v6 = vpop.f32.mrf.mxu1  ;;  %v1551_v31 = vpop.f32.mrf.mxu0  ;;  %4859 = vmatmul.mubr.msk.bf16.gmra.mxu0 %vm784_vm0, %v5549_v34  ;;  %4855 = vmatmul.mubr.msk.bf16.gmra.mxu1 %vm784_vm0, %v5527_v12  ;;  %v3183_v56 = vsel %vm2391_vm1, %v3181_v63, %v3182_v39  ;;  %v3450_v29 = vmax.f32 %v3448_v1, %v3449_v62  ;;  %v3184_v59 = vrot.slane %v6325_v16, 1 }
 0x289   : > { %2237 = vmatprep.mubr.bf16.mxu0 %v5270_v5  ;;  %4897 = vmatprep.mubr.msk.bf16.mxu1 %vm784_vm0, %v5507_v49  ;;  %v3446_v28 = vmax.f32 %v3444_v57, %v3445_v11  ;;  %v3391_v17 = vsel %vm3382_vm11, %v3389_v42, %v3390_v45  ;;  %v3428_v0 = vadd.f32 %v3390_v45, %v3355_v33  ;;  %v3319_v13 = vrot.slane %v1551_v31, 3 }
 0x28a   : > { %v6373_v25 = vpop.f32.mrf.mxu1  ;;  %v1553_v21 = vpop.f32.mrf.mxu0  ;;  %v3451_v26 = vrot.slane %v3450_v29, 2  ;;  %v3427_v49 = vadd.f32 %v3391_v17, %v3354_v58  ;;  %v6387_v8 = vadd.f32 %v3183_v56, %v6188_v55  ;;  %v3186_v53 = vsel %vm2391_vm1, %v3184_v59, %v3185_v22 }
 0x28b   : > { %v3455_v14 = vsel %vm3382_vm11, %v3428_v0, -inf  ;;  %v3510_v46 = vadd.f32 %v6380_v20, %v3446_v28  ;;  %v3257_v55 = vrot.slane %v6351_v35, 2  ;;  %v3392_v39 = vrot.slane %v1553_v21, 4 }
 0x28c   : > { %v6384_v4 = vpop.f32.mrf.mxu1  ;;  %v1555_v36 = vpop.f32.mrf.mxu0  ;;  %v3452_v32 = vmax.f32 %v3450_v29, %v3451_v26  ;;  %v3456_v2 = vmax.f32 %v3427_v49, %v3455_v14  ;;  %v3255_v24 = vsel %vm2654_vm2, %v3253_v27, %v3254_v10  ;;  %v6401_v61 = vadd.f32 %v3254_v10, %v3217_v15 }
 0x28d   : > { %v3320_v51 = vrot.slane %v1555_v36, 3  ;;  %v3256_v62 = vrot.slane %v6337_v41, 2  ;;  %v3218_v56 = vadd.f32 %v3186_v53, %v6216_v30  ;;  %v3219_v29 = vadd.f32 %v3185_v22, %v6230_v18 }
 0x28e   : > { %v6392_v60 = vpop.f32.mrf.mxu1  ;;  %v1557_v47 = vpop.f32.mrf.mxu0  ;;  %v3453_v57 = vrot.slane %v3452_v32, 1  ;;  %v3457_v38 = vrot.slane %v3456_v2, 4 }
 0x28f   : > { %v3393_v50 = vrot.slane %v1557_v47, 4  ;;  %v3321_v16 = vsel %vm2982_vm10, %v3319_v13, %v3320_v51  ;;  %v3357_v11 = vadd.f32 %v3320_v51, %v3285_v3  ;;  %v3258_v41 = vsel %vm2654_vm2, %v3256_v62, %v3257_v55 }
 0x290   : > { %v1561_v1 = vpop.f32.mrf.mxu0  ;;  %v1634_v23 = vpop.f32.mrf.mxu1  ;;  %4860 = vmatmul.mubr.msk.bf16.gmra.mxu0 %vm784_vm0, %v5561_v43  ;;  %v3356_v33 = vadd.f32 %v3321_v16, %v3284_v54  ;;  %4898 = vmatmul.mubr.msk.bf16.vlgmr.msra.gmra.mxu1 %vm784_vm0, %v5523_v7  ;;  %v3454_v63 = vmax.f32 %v3452_v32, %v3453_v57  ;;  %v3458_v58 = vmax.f32 %v3456_v2, %v3457_v38  ;;  %v3518_v7 = vmax.f32 %v3510_v46, 0.0 }
 0x291   : > { %v3394_v31 = vsel %vm3382_vm11, %v3392_v39, %v3393_v50  ;;  %4901 = vmatprep.mubr.msk.bf16.mxu1 %vm784_vm0, %v5537_v19  ;;  %v3430_v3 = vadd.f32 %v3393_v50, %v3357_v11  ;;  %2247 = vmatprep.mubr.bf16.mxu0 %v5270_v5  ;;  %v3322_v27 = vrot.slane %v1561_v1, 3  ;;  %v3187_v62 = vrot.slane %v6359_v6, 1 }
 0x292   : > { %v1563_v42 = vpop.f32.mrf.mxu0  ;;  %v1636_v45 = vpop.f32.mrf.mxu1  ;;  %v3429_v54 = vadd.f32 %v3394_v31, %v3356_v33  ;;  %v3511_v21 = vadd.f32 %v6380_v20, %v3454_v63  ;;  %v3459_v28 = vrot.slane %v3458_v58, 2  ;;  %v3288_v63 = vadd.f32 %v3255_v24, %v6387_v8 }
 0x293   : > { %v3463_v0 = vsel %vm3382_vm11, %v3430_v3, -inf  ;;  %v3395_v30 = vrot.slane %v1563_v42, 4  ;;  %v3566_v49 = vrot.slane %v1636_v45, 1  ;;  %v3259_v8 = vrot.slane %v6373_v25, 2 }
 0x294   : > { %v1565_v17 = vpop.f32.mrf.mxu0  ;;  %v1638_v19 = vpop.f32.mrf.mxu1  ;;  %v3519_v18 = vmax.f32 %v3511_v21, 0.0  ;;  %v3460_v22 = vmax.f32 %v3458_v58, %v3459_v28  ;;  %v3464_v26 = vmax.f32 %v3429_v54, %v3463_v0 }
 0x295   : > { %v3323_v15 = vrot.slane %v1565_v17, 3 }
 0x296   : > { %v1567_v36 = vpop.f32.mrf.mxu0  ;;  %v1640_v10 = vpop.f32.mrf.mxu1  ;;  %v3534_v13 = vrot.slane %v3519_v18, 7  ;;  %v3461_v51 = vrot.slane %v3460_v22, 1  ;;  %v3465_v47 = vrot.slane %v3464_v26, 4 }
 0x297   : > { %v3324_v59 = vsel %vm2982_vm10, %v3322_v27, %v3323_v15  ;;  %v3359_v14 = vadd.f32 %v3323_v15, %v6368_v44  ;;  %v3396_v32 = vrot.slane %v1567_v36, 4  ;;  %v3567_v2 = vrot.slane %v1640_v10, 1 }
 0x298   : > { %v3358_v46 = vadd.f32 %v3324_v59, %v6366_v37  ;;  %v1571_v53 = vpop.f32.mrf.mxu0  ;;  %4861 = vmatmul.mubr.msk.bf16.gmra.mxu0 %vm784_vm0, %v5573_v52  ;;  %v1644_v16 = vpop.f32.mrf.mxu1  ;;  %4902 = vmatmul.mubr.msk.bf16.gmra.mxu1 %vm784_vm0, %v5549_v34  ;;  %v3535_v44 = vsel %vm2544_vm3, %v3534_v13, %v3518_v7  ;;  %v3462_v1 = vmax.f32 %v3460_v22, %v3461_v51 }
 0x299   : > { %v3397_v50 = vsel %vm3382_vm11, %v3395_v30, %v3396_v32  ;;  %v3432_v57 = vadd.f32 %v3396_v32, %v3359_v14  ;;  %v3568_v38 = vsel %vm2391_vm1, %v3566_v49, %v3567_v2  ;;  %v6424_v39 = vadd.f32 %v3567_v2, %v1638_v19  ;;  %4905 = vmatprep.mubr.msk.bf16.mxu1 %vm784_vm0, %v5561_v43 }
 0x29a   : > { %v3466_v33 = vmax.f32 %v3464_v26, %v3465_v47  ;;  %v3431_v37 = vadd.f32 %v3397_v50, %v3358_v46  ;;  %v1573_v11 = vpop.f32.mrf.mxu0  ;;  %v6434_v31 = vadd.f32 %v3568_v38, %v1634_v23  ;;  %v1646_v42 = vpop.f32.mrf.mxu1  ;;  %2257 = vmatprep.mubr.bf16.mxu0 %v5270_v5  ;;  %v3291_v34 = vadd.f32 %v3257_v55, %v3219_v29 }
 0x29b   : > { %v3471_v58 = vsel %vm3382_vm11, %v3432_v57, -inf  ;;  %v3512_v45 = vadd.f32 %v6380_v20, %v3462_v1  ;;  %v3290_v7 = vadd.f32 %v3258_v41, %v3218_v56  ;;  %v3325_v24 = vrot.slane %v1571_v53, 3 }
 0x29c   : > { %v3467_v54 = vrot.slane %v3466_v33, 2  ;;  %v3472_v3 = vmax.f32 %v3431_v37, %v3471_v58  ;;  %v1575_v43 = vpop.f32.mrf.mxu0  ;;  %v1648_v21 = vpop.f32.mrf.mxu1  ;;  %v3188_v23 = vrot.slane %v6384_v4, 1  ;;  %v3398_v27 = vrot.slane %v1573_v11, 4 }
 0x29d   : > { %v3326_v6 = vrot.slane %v1575_v43, 3  ;;  %v3520_v28 = vmax.f32 %v3512_v45, 0.0  ;;  %v3569_v26 = vrot.slane %v1646_v42, 1 }
 0x29e   : > { %v3468_v17 = vmax.f32 %v3466_v33, %v3467_v54  ;;  %v3473_v19 = vrot.slane %v3472_v3, 4  ;;  %v1577_v0 = vpop.f32.mrf.mxu0  ;;  %v1650_v30 = vpop.f32.mrf.mxu1  ;;  %v3189_v13 = vsel %vm2391_vm1, %v3187_v62, %v3188_v23 }
 0x29f   : > { %v3327_v35 = vsel %vm2982_vm10, %v3325_v24, %v3326_v6  ;;  %v3361_v55 = vadd.f32 %v3326_v6, %v6401_v61  ;;  %v3399_v29 = vrot.slane %v1577_v0, 4  ;;  %v3536_v15 = vrot.slane %v3520_v28, 6 }
 0x2a0   : > { %v3469_v56 = vrot.slane %v3468_v17, 1  ;;  %v3474_v41 = vmax.f32 %v3472_v3, %v3473_v19  ;;  %v3360_v18 = vadd.f32 %v3327_v35, %v3288_v63  ;;  %v1581_v22 = vpop.f32.mrf.mxu0  ;;  %4862 = vmatmul.mubr.msk.bf16.gmra.mxu0 %vm784_vm0, %v5505_v48  ;;  %v3570_v36 = vrot.slane %v1650_v30, 1  ;;  %v1654_v10 = vpop.f32.mrf.mxu1  ;;  %4906 = vmatmul.mubr.msk.bf16.gmra.mxu1 %vm784_vm0, %v5573_v52 }
 0x2a1   : > { %v3400_v4 = vsel %vm3382_vm11, %v3398_v27, %v3399_v29  ;;  %v3434_v49 = vadd.f32 %v3399_v29, %v3361_v55  ;;  %2267 = vmatprep.mubr.bf16.mxu0 %v5270_v5  ;;  %v3537_v61 = vsel %vm2547_vm4, %v3536_v15, %v3535_v44  ;;  %4909 = vmatprep.mubr.msk.bf16.mxu1 %vm784_vm0, %v5505_v48  ;;  %v3260_v48 = vrot.slane %v6392_v60, 2 }
 0x2a2   : > { %v3470_v59 = vmax.f32 %v3468_v17, %v3469_v56  ;;  %v3475_v14 = vrot.slane %v3474_v41, 2  ;;  %v3433_v32 = vadd.f32 %v3400_v4, %v3360_v18  ;;  %v1583_v2 = vpop.f32.mrf.mxu0  ;;  %v3571_v47 = vsel %vm2391_vm1, %v3569_v26, %v3570_v36  ;;  %v1656_v52 = vpop.f32.mrf.mxu1 }
 0x2a3   : > { %v3479_v51 = vsel %vm3382_vm11, %v3434_v49, -inf  ;;  %v6456_v46 = vadd.f32 %v3570_v36, %v1648_v21  ;;  %v6459_v57 = vadd.f32 %v3571_v47, %v1644_v16  ;;  %v3221_v44 = vadd.f32 %v3188_v23, %v6266_v40 }
 0x2a4   : > { %v3513_v5 = vadd.f32 %v6380_v20, %v3470_v59  ;;  %v3476_v53 = vmax.f32 %v3474_v41, %v3475_v14  ;;  %v3480_v50 = vmax.f32 %v3433_v32, %v3479_v51  ;;  %v1585_v38 = vpop.f32.mrf.mxu0  ;;  %v3328_v1 = vrot.slane %v1581_v22, 3  ;;  %v1658_v37 = vpop.f32.mrf.mxu1 }
 0x2a5   : > { %v3329_v33 = vrot.slane %v1585_v38, 3  ;;  %v3220_v11 = vadd.f32 %v3189_v13, %v6252_v9  ;;  %v3401_v45 = vrot.slane %v1583_v2, 4  ;;  %v3572_v28 = vrot.slane %v1656_v52, 1 }
 0x2a6   : > { %v3521_v63 = vmax.f32 %v3513_v5, 0.0  ;;  %v3477_v62 = vrot.slane %v3476_v53, 1  ;;  %v3481_v58 = vrot.slane %v3480_v50, 4  ;;  %v1587_v42 = vpop.f32.mrf.mxu0  ;;  %v1660_v43 = vpop.f32.mrf.mxu1  ;;  %v3261_v55 = vsel %vm2654_vm2, %v3259_v8, %v3260_v48 }
 0x2a7   : > { %v3330_v54 = vsel %vm2982_vm10, %v3328_v1, %v3329_v33  ;;  %v3363_v3 = vadd.f32 %v3329_v33, %v3291_v34  ;;  %v3402_v16 = vrot.slane %v1587_v42, 4  ;;  %v3573_v17 = vrot.slane %v1660_v43, 1 }
 0x2a8   : > { %v3538_v24 = vrot.slane %v3521_v63, 5  ;;  %v3478_v6 = vmax.f32 %v3476_v53, %v3477_v62  ;;  %v3482_v40 = vmax.f32 %v3480_v50, %v3481_v58  ;;  %v3362_v21 = vadd.f32 %v3330_v54, %v3290_v7  ;;  %v1591_v60 = vpop.f32.mrf.mxu0  ;;  %4863 = vmatmul.mubr.msk.bf16.gmra.mxu0 %vm784_vm0, %v5527_v12  ;;  %v1664_v19 = vpop.f32.mrf.mxu1  ;;  %4910 = vmatmul.mubr.msk.bf16.gmra.mxu1 %vm784_vm0, %v5527_v12 }
 0x2a9   : > { %v3403_v9 = vsel %vm3382_vm11, %v3401_v45, %v3402_v16  ;;  %v3436_v23 = vadd.f32 %v3402_v16, %v3363_v3  ;;  %v3574_v30 = vsel %vm2391_vm1, %v3572_v28, %v3573_v17  ;;  %v6477_v15 = vadd.f32 %v3573_v17, %v1658_v37 }
 0x2aa   : > { %v3539_v34 = vsel %vm2550_vm5, %v3538_v24, %v3537_v61  ;;  %v3514_v0 = vadd.f32 %v6380_v20, %v3478_v6  ;;  %v3483_v27 = vrot.slane %v3482_v40, 2  ;;  %v3435_v35 = vadd.f32 %v3403_v9, %v3362_v21  ;;  %v1593_v7 = vpop.f32.mrf.mxu0  ;;  %v1666_v56 = vpop.f32.mrf.mxu1 }
 0x2ab   : > { %v3487_v29 = vsel %vm3382_vm11, %v3436_v23, -inf  ;;  %v6479_v22 = vadd.f32 %v3574_v30, %v1654_v10  ;;  %v3293_v4 = vadd.f32 %v3260_v48, %v3221_v44  ;;  %v3331_v49 = vrot.slane %v1591_v60, 3 }
 0x2ac   : > { %v3522_v41 = vmax.f32 %v3514_v0, 0.0  ;;  %v3484_v12 = vmax.f32 %v3482_v40, %v3483_v27  ;;  %v3488_v18 = vmax.f32 %v3435_v35, %v3487_v29  ;;  %v1595_v26 = vpop.f32.mrf.mxu0  ;;  %v1668_v61 = vpop.f32.mrf.mxu1  ;;  %v3292_v25 = vadd.f32 %v3261_v55, %v3220_v11 }
 0x2ad   : > { %v3332_v36 = vrot.slane %v1595_v26, 3  ;;  %v3404_v2 = vrot.slane %v1593_v7, 4  ;;  %v3575_v44 = vrot.slane %v1666_v56, 1 }
 0x2ae   : > { %v3540_v59 = vrot.slane %v3522_v41, 4  ;;  %v3485_v8 = vrot.slane %v3484_v12, 1  ;;  %v3489_v14 = vrot.slane %v3488_v18, 4  ;;  %v1597_v32 = vpop.f32.mrf.mxu0  ;;  %v1670_v52 = vpop.f32.mrf.mxu1 }
 0x2af   : > { %v3333_v13 = vsel %vm2982_vm10, %v3331_v49, %v3332_v36  ;;  %v3365_v51 = vadd.f32 %v3332_v36, %v3293_v4  ;;  %v3405_v47 = vrot.slane %v1597_v32, 4  ;;  %v3576_v33 = vrot.slane %v1670_v52, 1 }
 0x2b0   : > { %v3541_v5 = vsel %vm2553_vm6, %v3540_v59, %v3539_v34  ;;  %v3486_v10 = vmax.f32 %v3484_v12, %v3485_v8  ;;  %v3490_v53 = vmax.f32 %v3488_v18, %v3489_v14  ;;  %v3364_v50 = vadd.f32 %v3333_v13, %v3292_v25  ;;  %v1747_v38 = vpop.f32.mrf.mxu0  ;;  %v1674_v37 = vpop.f32.mrf.mxu1 }
 0x2b1   : > { %v3406_v48 = vsel %vm3382_vm11, %v3404_v2, %v3405_v47  ;;  %v3438_v1 = vadd.f32 %v3405_v47, %v3365_v51  ;;  %v3577_v45 = vsel %vm2391_vm1, %v3575_v44, %v3576_v33  ;;  %v6487_v54 = vadd.f32 %v3576_v33, %v1668_v61 }
 0x2b2   : > { %v3515_v11 = vadd.f32 %v6380_v20, %v3486_v10  ;;  %v3491_v63 = vrot.slane %v3490_v53, 2  ;;  %v3437_v62 = vadd.f32 %v3406_v48, %v3364_v50  ;;  %v1749_v58 = vpop.f32.mrf.mxu0  ;;  %v1676_v3 = vpop.f32.mrf.mxu1  ;;  %v6489_v6 = vadd.f32 %v3577_v45, %v1664_v19 }
 0x2b3   : > { %v3495_v42 = vsel %vm3382_vm11, %v3438_v1, -inf  ;;  %v3638_v21 = vrot.slane %v1747_v38, 2  ;;  %v3710_v0 = vrot.slane %v1749_v58, 3  ;;  %v3578_v12 = vrot.slane %v1676_v3, 1 }
 0x2b4   : > { %v3523_v16 = vmax.f32 %v3515_v11, 0.0  ;;  %v3492_v43 = vmax.f32 %v3490_v53, %v3491_v63  ;;  %v3496_v24 = vmax.f32 %v3437_v62, %v3495_v42  ;;  %v1751_v40 = vpop.f32.mrf.mxu0  ;;  %v1678_v60 = vpop.f32.mrf.mxu1 }
 0x2b5   : > { %v3639_v28 = vrot.slane %v1751_v40, 2 }
 0x2b6   : > { %v3542_v9 = vrot.slane %v3523_v16, 3  ;;  %v3493_v23 = vrot.slane %v3492_v43, 1  ;;  %v3497_v17 = vrot.slane %v3496_v24, 4  ;;  %v1753_v34 = vpop.f32.mrf.mxu0  ;;  %v1680_v7 = vpop.f32.mrf.mxu1 }
 0x2b7   : > { %v3640_v27 = vsel %vm2654_vm2, %v3638_v21, %v3639_v28  ;;  %v3679_v35 = vadd.f32 %v3639_v28, %v6424_v39  ;;  %v3711_v55 = vrot.slane %v1753_v34, 3  ;;  %v3579_v18 = vrot.slane %v1680_v7, 1 }
 0x2b8   : > { %v3543_v29 = vsel %vm2556_vm7, %v3542_v9, %v3541_v5  ;;  %v3494_v30 = vmax.f32 %v3492_v43, %v3493_v23  ;;  %v3498_v19 = vmax.f32 %v3496_v24, %v3497_v17  ;;  %v3678_v56 = vadd.f32 %v3640_v27, %v6434_v31  ;;  %v1757_v41 = vpop.f32.mrf.mxu0  ;;  %v1684_v49 = vpop.f32.mrf.mxu1 }
 0x2b9   : > { %v3712_v26 = vsel %vm2982_vm10, %v3710_v0, %v3711_v55  ;;  %v6496_v4 = vadd.f32 %v3711_v55, %v3679_v35  ;;  %v3580_v59 = vsel %vm2391_vm1, %v3578_v12, %v3579_v18  ;;  %v6502_v8 = vadd.f32 %v3579_v18, %v1678_v60 }
 0x2ba   : > { %v3516_v36 = vadd.f32 %v6380_v20, %v3494_v30  ;;  %v3499_v61 = vrot.slane %v3498_v19, 2  ;;  %v6499_v39 = vadd.f32 %v3712_v26, %v3678_v56  ;;  %v1759_v25 = vpop.f32.mrf.mxu0  ;;  %v1686_v14 = vpop.f32.mrf.mxu1  ;;  %v6504_v2 = vadd.f32 %v3580_v59, %v1674_v37 }
 0x2bb   : > { %v3641_v51 = vrot.slane %v1757_v41, 2  ;;  %v3713_v53 = vrot.slane %v1759_v25, 3  ;;  %v3581_v38 = vrot.slane %v1686_v14, 1 }
 0x2bc   : > { %v3524_v31 = vmax.f32 %v3516_v36, 0.0  ;;  %v3500_v32 = vmax.f32 %v3498_v19, %v3499_v61  ;;  %v1761_v13 = vpop.f32.mrf.mxu0  ;;  %v1688_v47 = vpop.f32.mrf.mxu1 }
 0x2bd   : > { %v3642_v52 = vrot.slane %v1761_v13, 2 }
 0x2be   : > { %v3544_v5 = vrot.slane %v3524_v31, 2  ;;  %v3501_v10 = vrot.slane %v3500_v32, 1  ;;  %v1763_v50 = vpop.f32.mrf.mxu0  ;;  %v1690_v1 = vpop.f32.mrf.mxu1 }
 0x2bf   : > { %v3643_v44 = vsel %vm2654_vm2, %v3641_v51, %v3642_v52  ;;  %v3681_v48 = vadd.f32 %v3642_v52, %v6456_v46  ;;  %v3714_v33 = vrot.slane %v1763_v50, 3  ;;  %v3582_v62 = vrot.slane %v1690_v1, 1 }
 0x2c0   : > { %v3545_v11 = vsel %vm2559_vm8, %v3544_v5, %v3543_v29  ;;  %v3502_v63 = vmax.f32 %v3500_v32, %v3501_v10  ;;  %v3680_v37 = vadd.f32 %v3643_v44, %v6459_v57  ;;  %v1767_v58 = vpop.f32.mrf.mxu0  ;;  %v1694_v3 = vpop.f32.mrf.mxu1 }
 0x2c1   : > { %v3715_v42 = vsel %vm2982_vm10, %v3713_v53, %v3714_v33  ;;  %v6511_v45 = vadd.f32 %v3714_v33, %v3681_v48  ;;  %v3583_v43 = vsel %vm2391_vm1, %v3581_v38, %v3582_v62  ;;  %v6515_v46 = vadd.f32 %v3582_v62, %v1688_v47 }
 0x2c2   : > { %v3517_v16 = vadd.f32 %v6380_v20, %v3502_v63  ;;  %v6517_v24 = vadd.f32 %v3715_v42, %v3680_v37  ;;  %v1769_v40 = vpop.f32.mrf.mxu0  ;;  %v6519_v21 = vadd.f32 %v3583_v43, %v1684_v49  ;;  %v1696_v57 = vpop.f32.mrf.mxu1  ;;  %v3644_v14 = vrot.slane %v1767_v58, 2 }
 0x2c3   : > { %v3584_v20 = vrot.slane %v1696_v57, 1  ;;  %v3716_v48 = vrot.slane %v1769_v40, 3 }
 0x2c4   : > { %v3525_v60 = vmax.f32 %v3517_v16, 0.0  ;;  %v1771_v28 = vpop.f32.mrf.mxu0  ;;  %v1698_v9 = vpop.f32.mrf.mxu1 }
 0x2c5   : > { %v3645_v61 = vrot.slane %v1771_v28, 2 }
 0x2c6   : > { %v3546_v23 = vrot.slane %v3525_v60, 1  ;;  %v1773_v17 = vpop.f32.mrf.mxu0  ;;  %v1700_v34 = vpop.f32.mrf.mxu1 }
 0x2c7   : > { %v3585_v27 = vrot.slane %v1700_v34, 1  ;;  %v3646_v47 = vsel %vm2654_vm2, %v3644_v14, %v3645_v61  ;;  %v3717_v52 = vrot.slane %v1773_v17, 3  ;;  %v3683_v1 = vadd.f32 %v3645_v61, %v6477_v15 }
 0x2c8   : > { %v3547_v0 = vsel %vm2562_vm9, %v3546_v23, %v3545_v11  ;;  %v1777_v35 = vpop.f32.mrf.mxu0  ;;  %v6523_v7 = vpop.f32.mrf.mxu1  ;;  %v3682_v63 = vadd.f32 %v3646_v47, %v6479_v22 }
 0x2c9   : > { %3549 = vst [vmem:[%s5888_s23 + $0x18] sm:$0xff] %v3547_v0  ;;  %v3586_v55 = vsel %vm2391_vm1, %v3584_v20, %v3585_v27  ;;  %v3647_v43 = vrot.slane %v1777_v35, 2  ;;  %v6561_v15 = vadd.f32 %v3585_v27, %v1698_v9 }
 0x2ca   : > { %v6526_v29 = vpop.f32.mrf.mxu0  ;;  %v6528_v30 = vadd.f32 %v3586_v55, %v1694_v3  ;;  %v6530_v19 = vpop.f32.mrf.mxu1  ;;  %v3718_v3 = vsel %vm2982_vm10, %v3716_v48, %v3717_v52 }
 0x2cb   : > { %v3754_v28 = vadd.f32 %v3718_v3, %v3682_v63  ;;  %v3719_v47 = vrot.slane %v6526_v29, 3 }
 0x2cc   : > { %v1781_v56 = vpop.f32.mrf.mxu0  ;;  %v6532_v41 = vpop.f32.mrf.mxu1 }
 0x2cd   : > { %v3648_v37 = vrot.slane %v1781_v56, 2 }
 0x2ce   : > { %v6534_v12 = vpop.f32.mrf.mxu0  ;;  %v6536_v18 = vpop.f32.mrf.mxu1 }
 0x2cf   : > { %v3649_v23 = vsel %vm2654_vm2, %v3647_v43, %v3648_v37  ;;  %v3685_v20 = vadd.f32 %v3648_v37, %v6487_v54  ;;  %v3720_v35 = vrot.slane %v6534_v12, 3 }
 0x2d0   : > { %v6538_v26 = vpop.f32.mrf.mxu0  ;;  %v1860_v49 = vpop.f32.mrf.mxu1 }
 0x2d1   : > { %v3782_v32 = vrot.slane %v1860_v49, 4  ;;  %v6585_v48 = vadd.f32 %v3720_v35, %v3685_v20 }
 0x2d2   : > { %v6540_v36 = vpop.f32.mrf.mxu0  ;;  %v1862_v25 = vpop.f32.mrf.mxu1 }
 0x2d3   : > { %v3855_v10 = vrot.slane %v1862_v25, 5 }
 0x2d4   : > { %v6542_v59 = vpop.f32.mrf.mxu0  ;;  %v1864_v31 = vpop.f32.mrf.mxu1 }
 0x2d5   : > { %v3783_v13 = vrot.slane %v1864_v31, 4  ;;  %v3651_v55 = vrot.slane %v6542_v59, 2  ;;  %v3588_v31 = vrot.slane %v6536_v18, 1  ;;  %v3587_v59 = vrot.slane %v6530_v19, 1 }
 0x2d6   : > { %v6544_v51 = vpop.f32.mrf.mxu0  ;;  %v1866_v5 = vpop.f32.mrf.mxu1 }
 0x2d7   : > { %v3784_v53 = vsel %vm3382_vm11, %v3782_v32, %v3783_v13  ;;  %v3823_v50 = vadd.f32 %v3783_v13, %v6496_v4  ;;  %v3856_v38 = vrot.slane %v1866_v5, 5  ;;  %v3650_v32 = vrot.slane %v6538_v26, 2 }
 0x2d8   : > { %v6549_v44 = vpop.f32.mrf.mxu0  ;;  %v3822_v33 = vadd.f32 %v3784_v53, %v6499_v39  ;;  %v1870_v11 = vpop.f32.mrf.mxu1  ;;  %v3755_v39 = vadd.f32 %v3717_v52, %v3683_v1  ;;  %v3723_v53 = vrot.slane %v6544_v51, 3  ;;  %v3589_v1 = vsel %vm2391_vm1, %v3587_v59, %v3588_v31 }
 0x2d9   : > { %v3857_v62 = vsel %vm3854_vm12, %v3855_v10, %v3856_v38  ;;  %v3896_v58 = vadd.f32 %v3856_v38, %v3823_v50  ;;  %v3785_v17 = vrot.slane %v1870_v11, 4  ;;  %v3684_v38 = vadd.f32 %v3649_v23, %v6489_v6 }
 0x2da   : > { %v6555_v42 = vpop.f32.mrf.mxu0  ;;  %v3895_v4 = vadd.f32 %v3857_v62, %v3822_v33  ;;  %v1872_v16 = vpop.f32.mrf.mxu1  ;;  %v3722_v33 = vrot.slane %v6540_v36, 3  ;;  %v3687_v62 = vadd.f32 %v3651_v55, %v6502_v8 }
 0x2db   : > { %v3911_v40 = vsel %vm3854_vm12, %v3896_v58, -inf  ;;  %v3858_v9 = vrot.slane %v1872_v16, 5 }
 0x2dc   : > { %v6559_v57 = vpop.f32.mrf.mxu0  ;;  %v3912_v60 = vmax.f32 %v3895_v4, %v3911_v40  ;;  %v1874_v22 = vpop.f32.mrf.mxu1  ;;  %v6597_v4 = vadd.f32 %v3588_v31, %v6532_v41  ;;  %v3724_v16 = vsel %vm2982_vm10, %v3722_v33, %v3723_v53  ;;  %v3725_v31 = vrot.slane %v6555_v42, 3 }
 0x2dd   : > { %v3786_v34 = vrot.slane %v1874_v22, 4  ;;  %v3654_v43 = vrot.slane %v6559_v57, 2  ;;  %v3653_v22 = vrot.slane %v6549_v44, 2 }
 0x2de   : > { %v6564_v0 = vpop.f32.mrf.mxu0  ;;  %v3913_v56 = vrot.slane %v3912_v60, 4  ;;  %v1876_v49 = vpop.f32.mrf.mxu1 }
 0x2df   : > { %v3787_v27 = vsel %vm3382_vm11, %v3785_v17, %v3786_v34  ;;  %v3825_v61 = vadd.f32 %v3786_v34, %v6511_v45  ;;  %v3859_v25 = vrot.slane %v1876_v49, 5  ;;  %v3652_v45 = vsel %vm2654_vm2, %v3650_v32, %v3651_v55 }
 0x2e0   : > { %v6571_v14 = vpop.f32.mrf.mxu0  ;;  %v3914_v13 = vmax.f32 %v3912_v60, %v3913_v56  ;;  %v3824_v54 = vadd.f32 %v3787_v27, %v6517_v24  ;;  %v1880_v12 = vpop.f32.mrf.mxu1  ;;  %v3721_v24 = vsel %vm2982_vm10, %v3719_v47, %v3720_v35  ;;  %v3686_v37 = vadd.f32 %v3652_v45, %v6504_v2 }
 0x2e1   : > { %v3860_v52 = vsel %vm3854_vm12, %v3858_v9, %v3859_v25  ;;  %v3898_v5 = vadd.f32 %v3859_v25, %v3825_v61  ;;  %v3788_v6 = vrot.slane %v1880_v12, 4  ;;  %v6606_v55 = vadd.f32 %v3589_v1, %v6523_v7 }
 0x2e2   : > { %v6579_v10 = vpop.f32.mrf.mxu0  ;;  %v3915_v18 = vrot.slane %v3914_v13, 2  ;;  %v3897_v50 = vadd.f32 %v3860_v52, %v3824_v54  ;;  %v1882_v26 = vpop.f32.mrf.mxu1  ;;  %v3756_v56 = vadd.f32 %v3721_v24, %v3684_v38  ;;  %v6608_v57 = vadd.f32 %v3724_v16, %v3686_v37  ;;  %v6623_v54 = vld [vmem:[%s6969_s4 + $0x4] ss:$0 sm:$0xff] }
 0x2e3   : > { %v3919_v29 = vsel %vm3854_vm12, %v3898_v5, -inf  ;;  %v3861_v34 = vrot.slane %v1882_v26, 5  ;;  %v6610_v49 = vadd.f32 %v3723_v53, %v3687_v62  ;;  %v3655_v44 = vsel %vm2654_vm2, %v3653_v22, %v3654_v43 }
 0x2e4   : > { %v6588_v19 = vpop.f32.mrf.mxu0  ;;  %v3916_v11 = vmax.f32 %v3914_v13, %v3915_v18  ;;  %v3920_v63 = vmax.f32 %v3897_v50, %v3919_v29  ;;  %v1884_v51 = vpop.f32.mrf.mxu1  ;;  %v3689_v12 = vadd.f32 %v3654_v43, %v6515_v46  ;;  %v3726_v59 = vrot.slane %v6564_v0, 3 }
 0x2e5   : > { %v3789_v58 = vrot.slane %v1884_v51, 4  ;;  %v3657_v27 = vrot.slane %v6588_v19, 2  ;;  %v3656_v52 = vrot.slane %v6571_v14, 2  ;;  %v6629_v45 = vadd.f32 %v3655_v44, %v6519_v21 }
 0x2e6   : > { %v6594_v3 = vpop.f32.mrf.mxu0  ;;  %v3921_v40 = vrot.slane %v3920_v63, 4  ;;  %v1886_v36 = vpop.f32.mrf.mxu1  ;;  %v3917_v60 = vrot.slane %v3916_v11, 1  ;;  %v3727_v62 = vsel %vm2982_vm10, %v3725_v31, %v3726_v59 }
 0x2e7   : > { %v3790_v2 = vsel %vm3382_vm11, %v3788_v6, %v3789_v58  ;;  %v3827_v23 = vadd.f32 %v3789_v58, %v3755_v39  ;;  %v3862_v35 = vrot.slane %v1886_v36, 5  ;;  %v3658_v38 = vsel %vm2654_vm2, %v3656_v52, %v3657_v27 }
 0x2e8   : > { %v6603_v8 = vpop.f32.mrf.mxu0  ;;  %v3922_v17 = vmax.f32 %v3920_v63, %v3921_v40  ;;  %v3826_v20 = vadd.f32 %v3790_v2, %v3754_v28  ;;  %v1890_v41 = vpop.f32.mrf.mxu1  ;;  %v3918_v25 = vmax.f32 %v3916_v11, %v3917_v60  ;;  %v3729_v46 = vrot.slane %v6594_v3, 3 }
 0x2e9   : > { %v3863_v61 = vsel %vm3854_vm12, %v3861_v34, %v3862_v35  ;;  %v3900_v32 = vadd.f32 %v3862_v35, %v3827_v23  ;;  %v3791_v53 = vrot.slane %v1890_v41, 4  ;;  %v6640_v6 = vadd.f32 %v3726_v59, %v3689_v12 }
 0x2ea   : > { %v6612_v9 = vpop.f32.mrf.mxu0  ;;  %v3923_v39 = vrot.slane %v3922_v17, 2  ;;  %v1892_v28 = vpop.f32.mrf.mxu1  ;;  %v3899_v7 = vadd.f32 %v3863_v61, %v3826_v20  ;;  %v3982_v29 = vadd.f32 %v6623_v54, %v3918_v25  ;;  %v3728_v58 = vrot.slane %v6579_v10, 3 }
 0x2eb   : > { %v3927_v42 = vsel %vm3854_vm12, %v3900_v32, -inf  ;;  %v3864_v14 = vrot.slane %v1892_v28, 5  ;;  %v3691_v16 = vadd.f32 %v3657_v27, %v6561_v15  ;;  %v3690_v36 = vadd.f32 %v3658_v38, %v6528_v30 }
 0x2ec   : > { %v6618_v13 = vpop.f32.mrf.mxu0  ;;  %v3924_v47 = vmax.f32 %v3922_v17, %v3923_v39  ;;  %v1894_v5 = vpop.f32.mrf.mxu1  ;;  %v3928_v24 = vmax.f32 %v3899_v7, %v3927_v42  ;;  %v3730_v2 = vsel %vm2982_vm10, %v3728_v58, %v3729_v46  ;;  %v3659_v23 = vrot.slane %v6603_v8, 2 }
 0x2ed   : > { %v3792_v18 = vrot.slane %v1894_v5, 4  ;;  %v3990_v20 = vmax.f32 %v3982_v29, 0.0  ;;  %v3660_v41 = vrot.slane %v6618_v13, 2 }
 0x2ee   : > { %v6632_v50 = vpop.f32.mrf.mxu0  ;;  %v3925_v26 = vrot.slane %v3924_v47, 1  ;;  %v1896_v0 = vpop.f32.mrf.mxu1  ;;  %v3929_v11 = vrot.slane %v3928_v24, 4 }
 0x2ef   : > { %v3793_v19 = vsel %vm3382_vm11, %v3791_v53, %v3792_v18  ;;  %v3829_v21 = vadd.f32 %v3792_v18, %v6585_v48  ;;  %v3865_v51 = vrot.slane %v1896_v0, 5 }
 0x2f0   : > { %v1973_v1 = vpop.f32.mrf.mxu0  ;;  %v3926_v33 = vmax.f32 %v3924_v47, %v3925_v26  ;;  %v3828_v63 = vadd.f32 %v3793_v19, %v3756_v56  ;;  %v1900_v37 = vpop.f32.mrf.mxu1  ;;  %v3930_v48 = vmax.f32 %v3928_v24, %v3929_v11 }
 0x2f1   : > { %v3866_v60 = vsel %vm3854_vm12, %v3864_v14, %v3865_v51  ;;  %v3902_v34 = vadd.f32 %v3865_v51, %v3829_v21  ;;  %v3794_v44 = vrot.slane %v1900_v37, 4  ;;  %v6664_v51 = vadd.f32 %v3730_v2, %v3690_v36 }
 0x2f2   : > { %v1975_v43 = vpop.f32.mrf.mxu0  ;;  %v3983_v40 = vadd.f32 %v6623_v54, %v3926_v33  ;;  %v1902_v22 = vpop.f32.mrf.mxu1  ;;  %v3901_v17 = vadd.f32 %v3866_v60, %v3828_v63  ;;  %v3931_v35 = vrot.slane %v3930_v48, 2  ;;  %v3760_v63 = vadd.f32 %v3727_v62, %v6629_v45 }
 0x2f3   : > { %v3935_v30 = vsel %vm3854_vm12, %v3902_v34, -inf  ;;  %v3867_v39 = vrot.slane %v1902_v22, 5  ;;  %v4038_v32 = vrot.slane %v1975_v43, 1  ;;  %v3732_v22 = vrot.slane %v6632_v50, 3 }
 0x2f4   : > { %v1977_v10 = vpop.f32.mrf.mxu0  ;;  %v3991_v15 = vmax.f32 %v3983_v40, 0.0  ;;  %v1904_v56 = vpop.f32.mrf.mxu1  ;;  %v3932_v25 = vmax.f32 %v3930_v48, %v3931_v35  ;;  %v3936_v31 = vmax.f32 %v3901_v17, %v3935_v30  ;;  %v3661_v40 = vsel %vm2654_vm2, %v3659_v23, %v3660_v41 }
 0x2f5   : > { %v3795_v27 = vrot.slane %v1904_v56, 4 }
 0x2f6   : > { %v1979_v61 = vpop.f32.mrf.mxu0  ;;  %v4006_v28 = vrot.slane %v3991_v15, 7  ;;  %v1906_v7 = vpop.f32.mrf.mxu1  ;;  %v3933_v42 = vrot.slane %v3932_v25, 1  ;;  %v3937_v53 = vrot.slane %v3936_v31, 4 }
 0x2f7   : > { %v4039_v8 = vrot.slane %v1979_v61, 1  ;;  %v3796_v12 = vsel %vm3382_vm11, %v3794_v44, %v3795_v27  ;;  %v3831_v59 = vadd.f32 %v3795_v27, %v6610_v49  ;;  %v3868_v47 = vrot.slane %v1906_v7, 5 }
 0x2f8   : > { %v1983_v52 = vpop.f32.mrf.mxu0  ;;  %v4007_v5 = vsel %vm2544_vm3, %v4006_v28, %v3990_v20  ;;  %v3830_v18 = vadd.f32 %v3796_v12, %v6608_v57  ;;  %v1910_v26 = vpop.f32.mrf.mxu1  ;;  %v3934_v19 = vmax.f32 %v3932_v25, %v3933_v42  ;;  %v3938_v21 = vmax.f32 %v3936_v31, %v3937_v53 }
 0x2f9   : > { %v3869_v38 = vsel %vm3854_vm12, %v3867_v39, %v3868_v47  ;;  %v3904_v24 = vadd.f32 %v3868_v47, %v3831_v59  ;;  %v4040_v0 = vsel %vm2391_vm1, %v4038_v32, %v4039_v8  ;;  %v6659_v29 = vadd.f32 %v4039_v8, %v1977_v10 }
 0x2fa   : > { %v1985_v14 = vpop.f32.mrf.mxu0  ;;  %v3903_v49 = vadd.f32 %v3869_v38, %v3830_v18  ;;  %v6661_v33 = vadd.f32 %v4040_v0, %v1973_v1  ;;  %v1912_v11 = vpop.f32.mrf.mxu1  ;;  %v3763_v57 = vadd.f32 %v3729_v46, %v3691_v16  ;;  %v3984_v43 = vadd.f32 %v6623_v54, %v3934_v19 }
 0x2fb   : > { %v3943_v37 = vsel %vm3854_vm12, %v3904_v24, -inf  ;;  %v3939_v48 = vrot.slane %v3938_v21, 2  ;;  %v3797_v45 = vrot.slane %v1910_v26, 4  ;;  %v3870_v62 = vrot.slane %v1912_v11, 5 }
 0x2fc   : > { %v1987_v58 = vpop.f32.mrf.mxu0  ;;  %v3944_v1 = vmax.f32 %v3903_v49, %v3943_v37  ;;  %v1914_v60 = vpop.f32.mrf.mxu1  ;;  %v3992_v3 = vmax.f32 %v3984_v43, 0.0  ;;  %v4041_v10 = vrot.slane %v1985_v14, 1  ;;  %v3731_v47 = vrot.slane %v6612_v9, 3 }
 0x2fd   : > { %v3798_v36 = vrot.slane %v1914_v60, 4  ;;  %v3940_v46 = vmax.f32 %v3938_v21, %v3939_v48  ;;  %v3693_v42 = vadd.f32 %v3660_v41, %v6597_v4  ;;  %v3692_v38 = vadd.f32 %v3661_v40, %v6606_v55 }
 0x2fe   : > { %v1989_v2 = vpop.f32.mrf.mxu0  ;;  %v3945_v16 = vrot.slane %v3944_v1, 4  ;;  %v1916_v17 = vpop.f32.mrf.mxu1  ;;  %v4008_v56 = vrot.slane %v3992_v3, 6  ;;  %v3733_v9 = vsel %vm2982_vm10, %v3731_v47, %v3732_v22 }
 0x2ff   : > { %v4042_v34 = vrot.slane %v1989_v2, 1  ;;  %v3799_v20 = vsel %vm3382_vm11, %v3797_v45, %v3798_v36  ;;  %v3833_v15 = vadd.f32 %v3798_v36, %v6640_v6  ;;  %v3871_v23 = vrot.slane %v1916_v17, 5 }
 0x300   : > { %v1993_v35 = vpop.f32.mrf.mxu0  ;;  %v3941_v30 = vrot.slane %v3940_v46, 1  ;;  %v3946_v44 = vmax.f32 %v3944_v1, %v3945_v16  ;;  %v3832_v39 = vadd.f32 %v3799_v20, %v3760_v63  ;;  %v1920_v27 = vpop.f32.mrf.mxu1  ;;  %v4009_v8 = vsel %vm2547_vm4, %v4008_v56, %v4007_v5 }
 0x301   : > { %v3872_v61 = vsel %vm3854_vm12, %v3870_v62, %v3871_v23  ;;  %v3906_v28 = vadd.f32 %v3871_v23, %v3833_v15  ;;  %v4043_v25 = vsel %vm2391_vm1, %v4041_v10, %v4042_v34  ;;  %v6678_v31 = vadd.f32 %v4042_v34, %v1987_v58 }
 0x302   : > { %v1995_v7 = vpop.f32.mrf.mxu0  ;;  %v3942_v32 = vmax.f32 %v3940_v46, %v3941_v30  ;;  %v3947_v12 = vrot.slane %v3946_v44, 2  ;;  %v3905_v6 = vadd.f32 %v3872_v61, %v3832_v39  ;;  %v1922_v59 = vpop.f32.mrf.mxu1  ;;  %v6686_v18 = vadd.f32 %v4043_v25, %v1983_v52 }
 0x303   : > { %v3951_v53 = vsel %vm3854_vm12, %v3906_v28, -inf  ;;  %v3800_v19 = vrot.slane %v1920_v27, 4  ;;  %v3873_v21 = vrot.slane %v1922_v59, 5  ;;  %v4044_v37 = vrot.slane %v1995_v7, 1 }
 0x304   : > { %v1997_v26 = vpop.f32.mrf.mxu0  ;;  %v3985_v24 = vadd.f32 %v6623_v54, %v3942_v32  ;;  %v3948_v5 = vmax.f32 %v3946_v44, %v3947_v12  ;;  %v3952_v0 = vmax.f32 %v3905_v6, %v3951_v53  ;;  %v1924_v14 = vpop.f32.mrf.mxu1  ;;  %v3765_v56 = vadd.f32 %v3732_v22, %v3693_v42 }
 0x305   : > { %v3801_v13 = vrot.slane %v1924_v14, 4  ;;  %v3764_v61 = vadd.f32 %v3733_v9, %v3692_v38 }
 0x306   : > { %v1999_v4 = vpop.f32.mrf.mxu0  ;;  %v3993_v41 = vmax.f32 %v3985_v24, 0.0  ;;  %v3949_v49 = vrot.slane %v3948_v5, 1  ;;  %v3953_v52 = vrot.slane %v3952_v0, 4  ;;  %v1926_v11 = vpop.f32.mrf.mxu1 }
 0x307   : > { %v4045_v63 = vrot.slane %v1999_v4, 1  ;;  %v3802_v55 = vsel %vm3382_vm11, %v3800_v19, %v3801_v13  ;;  %v3835_v58 = vadd.f32 %v3801_v13, %v3763_v57  ;;  %v3874_v43 = vrot.slane %v1926_v11, 5 }
 0x308   : > { %v2003_v40 = vpop.f32.mrf.mxu0  ;;  %v4010_v48 = vrot.slane %v3993_v41, 5  ;;  %v3950_v1 = vmax.f32 %v3948_v5, %v3949_v49  ;;  %v3954_v60 = vmax.f32 %v3952_v0, %v3953_v52  ;;  %v3834_v45 = vadd.f32 %v3802_v55, %v6664_v51  ;;  %v1930_v62 = vpop.f32.mrf.mxu1 }
 0x309   : > { %v3875_v36 = vsel %vm3854_vm12, %v3873_v21, %v3874_v43  ;;  %v3908_v2 = vadd.f32 %v3874_v43, %v3835_v58  ;;  %v4046_v3 = vsel %vm2391_vm1, %v4044_v37, %v4045_v63  ;;  %v6697_v46 = vadd.f32 %v4045_v63, %v1997_v26 }
 0x30a   : > { %v2005_v16 = vpop.f32.mrf.mxu0  ;;  %v4011_v17 = vsel %vm2550_vm5, %v4010_v48, %v4009_v8  ;;  %v3986_v57 = vadd.f32 %v6623_v54, %v3950_v1  ;;  %v3955_v34 = vrot.slane %v3954_v60, 2  ;;  %v3907_v10 = vadd.f32 %v3875_v36, %v3834_v45  ;;  %v1932_v20 = vpop.f32.mrf.mxu1 }
 0x30b   : > { %v3959_v15 = vsel %vm3854_vm12, %v3908_v2, -inf  ;;  %v6702_v23 = vadd.f32 %v4046_v3, %v1993_v35  ;;  %v3803_v28 = vrot.slane %v1930_v62, 4  ;;  %v3876_v25 = vrot.slane %v1932_v20, 5 }
 0x30c   : > { %v2007_v51 = vpop.f32.mrf.mxu0  ;;  %v3994_v30 = vmax.f32 %v3986_v57, 0.0  ;;  %v3956_v44 = vmax.f32 %v3954_v60, %v3955_v34  ;;  %v3960_v39 = vmax.f32 %v3907_v10, %v3959_v15  ;;  %v1934_v27 = vpop.f32.mrf.mxu1  ;;  %v4047_v35 = vrot.slane %v2005_v16, 1 }
 0x30d   : > { %v3804_v7 = vrot.slane %v1934_v27, 4 }
 0x30e   : > { %v2009_v8 = vpop.f32.mrf.mxu0  ;;  %v4012_v32 = vrot.slane %v3994_v30, 4  ;;  %v3957_v12 = vrot.slane %v3956_v44, 1  ;;  %v3961_v6 = vrot.slane %v3960_v39, 4  ;;  %v1936_v59 = vpop.f32.mrf.mxu1 }
 0x30f   : > { %v4048_v47 = vrot.slane %v2009_v8, 1  ;;  %v3805_v53 = vsel %vm3382_vm11, %v3803_v28, %v3804_v7  ;;  %v3837_v26 = vadd.f32 %v3804_v7, %v3765_v56  ;;  %v3877_v50 = vrot.slane %v1936_v59, 5 }
 0x310   : > { %v2013_v22 = vpop.f32.mrf.mxu0  ;;  %v4013_v42 = vsel %vm2553_vm6, %v4012_v32, %v4011_v17  ;;  %v3958_v24 = vmax.f32 %v3956_v44, %v3957_v12  ;;  %v3962_v5 = vmax.f32 %v3960_v39, %v3961_v6  ;;  %v3836_v38 = vadd.f32 %v3805_v53, %v3764_v61  ;;  %v2086_v0 = vpop.f32.mrf.mxu1 }
 0x311   : > { %v3878_v14 = vsel %vm3854_vm12, %v3876_v25, %v3877_v50  ;;  %v3910_v9 = vadd.f32 %v3877_v50, %v3837_v26  ;;  %v4049_v19 = vsel %vm2391_vm1, %v4047_v35, %v4048_v47  ;;  %v6710_v21 = vadd.f32 %v4048_v47, %v2007_v51 }
 0x312   : > { %v2015_v13 = vpop.f32.mrf.mxu0  ;;  %v3987_v4 = vadd.f32 %v6623_v54, %v3958_v24  ;;  %v3963_v41 = vrot.slane %v3962_v5, 2  ;;  %v3909_v49 = vadd.f32 %v3878_v14, %v3836_v38  ;;  %v6713_v52 = vadd.f32 %v4049_v19, %v2003_v40  ;;  %v2088_v11 = vpop.f32.mrf.mxu1 }
 0x313   : > { %v3967_v63 = vsel %vm3854_vm12, %v3910_v9, -inf  ;;  %v4110_v1 = vrot.slane %v2086_v0, 2  ;;  %v4050_v60 = vrot.slane %v2015_v13, 1  ;;  %v4182_v57 = vrot.slane %v2088_v11, 3 }
 0x314   : > { %v2017_v37 = vpop.f32.mrf.mxu0  ;;  %v3995_v55 = vmax.f32 %v3987_v4, 0.0  ;;  %v3964_v58 = vmax.f32 %v3962_v5, %v3963_v41  ;;  %v3968_v43 = vmax.f32 %v3909_v49, %v3967_v63  ;;  %v2090_v48 = vpop.f32.mrf.mxu1 }
 0x315   : > { %v4111_v45 = vrot.slane %v2090_v48, 2 }
 0x316   : > { %v2019_v62 = vpop.f32.mrf.mxu0  ;;  %v4014_v36 = vrot.slane %v3995_v55, 3  ;;  %v3965_v2 = vrot.slane %v3964_v58, 1  ;;  %v3969_v3 = vrot.slane %v3968_v43, 4  ;;  %v2092_v17 = vpop.f32.mrf.mxu1 }
 0x317   : > { %v4051_v16 = vrot.slane %v2019_v62, 1  ;;  %v4112_v40 = vsel %vm2654_vm2, %v4110_v1, %v4111_v45  ;;  %v4151_v34 = vadd.f32 %v4111_v45, %v6659_v29  ;;  %v4183_v10 = vrot.slane %v2092_v17, 3 }
 0x318   : > { %v2023_v20 = vpop.f32.mrf.mxu0  ;;  %v4015_v15 = vsel %vm2556_vm7, %v4014_v36, %v4013_v42  ;;  %v3966_v51 = vmax.f32 %v3964_v58, %v3965_v2  ;;  %v3970_v56 = vmax.f32 %v3968_v43, %v3969_v3  ;;  %v4150_v30 = vadd.f32 %v4112_v40, %v6661_v33  ;;  %v2096_v44 = vpop.f32.mrf.mxu1 }
 0x319   : > { %v4052_v39 = vsel %vm2391_vm1, %v4050_v60, %v4051_v16  ;;  %v6721_v27 = vadd.f32 %v4051_v16, %v2017_v37  ;;  %v4184_v61 = vsel %vm2982_vm10, %v4182_v57, %v4183_v10  ;;  %v6724_v28 = vadd.f32 %v4183_v10, %v4151_v34 }
 0x31a   : > { %v2025_v25 = vpop.f32.mrf.mxu0  ;;  %v3988_v29 = vadd.f32 %v6623_v54, %v3966_v51  ;;  %v3971_v7 = vrot.slane %v3970_v56, 2  ;;  %v6727_v8 = vadd.f32 %v4052_v39, %v2013_v22  ;;  %v6729_v32 = vadd.f32 %v4184_v61, %v4150_v30  ;;  %v2098_v12 = vpop.f32.mrf.mxu1 }
 0x31b   : > { %v4113_v35 = vrot.slane %v2096_v44, 2  ;;  %v4053_v24 = vrot.slane %v2025_v25, 1  ;;  %v4185_v0 = vrot.slane %v2098_v12, 3 }
 0x31c   : > { %v2027_v6 = vpop.f32.mrf.mxu0  ;;  %v3996_v33 = vmax.f32 %v3988_v29, 0.0  ;;  %v3972_v59 = vmax.f32 %v3970_v56, %v3971_v7  ;;  %v2100_v47 = vpop.f32.mrf.mxu1 }
 0x31d   : > { %v4114_v53 = vrot.slane %v2100_v47, 2 }
 0x31e   : > { %v2029_v26 = vpop.f32.mrf.mxu0  ;;  %v4016_v50 = vrot.slane %v3996_v33, 2  ;;  %v3973_v42 = vrot.slane %v3972_v59, 1  ;;  %v2102_v38 = vpop.f32.mrf.mxu1 }
 0x31f   : > { %v4054_v5 = vrot.slane %v2029_v26, 1  ;;  %v4115_v14 = vsel %vm2654_vm2, %v4113_v35, %v4114_v53  ;;  %v4153_v22 = vadd.f32 %v4114_v53, %v6678_v31  ;;  %v4186_v9 = vrot.slane %v2102_v38, 3 }
 0x320   : > { %v2033_v19 = vpop.f32.mrf.mxu0  ;;  %v4017_v13 = vsel %vm2559_vm8, %v4016_v50, %v4015_v15  ;;  %v3974_v4 = vmax.f32 %v3972_v59, %v3973_v42  ;;  %v4152_v41 = vadd.f32 %v4115_v14, %v6686_v18  ;;  %v2106_v11 = vpop.f32.mrf.mxu1 }
 0x321   : > { %v4055_v49 = vsel %vm2391_vm1, %v4053_v24, %v4054_v5  ;;  %v6738_v37 = vadd.f32 %v4054_v5, %v2027_v6  ;;  %v4187_v55 = vsel %vm2982_vm10, %v4185_v0, %v4186_v9  ;;  %v6741_v58 = vadd.f32 %v4186_v9, %v4153_v22 }
 0x322   : > { %v6736_v63 = vadd.f32 %v4055_v49, %v2023_v20  ;;  %v2035_v43 = vpop.f32.mrf.mxu0  ;;  %v3989_v31 = vadd.f32 %v6623_v54, %v3974_v4  ;;  %v6744_v48 = vadd.f32 %v4187_v55, %v4152_v41  ;;  %v2108_v1 = vpop.f32.mrf.mxu1  ;;  %v4116_v62 = vrot.slane %v2106_v11, 2 }
 0x323   : > { %v4056_v16 = vrot.slane %v2035_v43, 1  ;;  %v4188_v40 = vrot.slane %v2108_v1, 3 }
 0x324   : > { %v2037_v60 = vpop.f32.mrf.mxu0  ;;  %v3997_v45 = vmax.f32 %v3989_v31, 0.0  ;;  %v2110_v18 = vpop.f32.mrf.mxu1 }
 0x325   : > { %v4117_v36 = vrot.slane %v2110_v18, 2 }
 0x326   : > { %v2039_v2 = vpop.f32.mrf.mxu0  ;;  %v4018_v3 = vrot.slane %v3997_v45, 1  ;;  %v2112_v57 = vpop.f32.mrf.mxu1 }
 0x327   : > { %v4057_v17 = vrot.slane %v2039_v2, 1  ;;  %v4118_v34 = vsel %vm2654_vm2, %v4116_v62, %v4117_v36  ;;  %v4189_v10 = vrot.slane %v2112_v57, 3  ;;  %v4155_v4 = vadd.f32 %v4117_v36, %v6697_v46 }
 0x328   : > { %v2043_v20 = vpop.f32.mrf.mxu0  ;;  %v4019_v54 = vsel %vm2562_vm9, %v4018_v3, %v4017_v13  ;;  %v4154_v15 = vadd.f32 %v4118_v34, %v6702_v23  ;;  %v2116_v56 = vpop.f32.mrf.mxu1 }
 0x329   : > { %v4058_v51 = vsel %vm2391_vm1, %v4056_v16, %v4057_v17  ;;  %4021 = vst [vmem:[%s5888_s23 + $0x20] sm:$0xff] %v4019_v54  ;;  %v4190_v44 = vsel %vm2982_vm10, %v4188_v40, %v4189_v10  ;;  %v4119_v22 = vrot.slane %v2116_v56, 2  ;;  %v4091_v36 = vadd.f32 %v4057_v17, %v2037_v60 }
 0x32a   : > { %v6751_v30 = vadd.f32 %v4058_v51, %v2033_v19  ;;  %v2045_v39 = vpop.f32.mrf.mxu0  ;;  %v6754_v61 = vadd.f32 %v4190_v44, %v4154_v15  ;;  %v2118_v25 = vpop.f32.mrf.mxu1  ;;  %v4227_v40 = vadd.f32 %v4189_v10, %v4155_v4 }
 0x32b   : > { %v4059_v41 = vrot.slane %v2045_v39, 1  ;;  %v4191_v45 = vrot.slane %v2118_v25, 3 }
 0x32c   : > { %v2047_v29 = vpop.f32.mrf.mxu0  ;;  %v2120_v7 = vpop.f32.mrf.mxu1 }
 0x32d   : > { %v4120_v38 = vrot.slane %v2120_v7, 2 }
 0x32e   : > { %v2049_v12 = vpop.f32.mrf.mxu0  ;;  %v2122_v6 = vpop.f32.mrf.mxu1 }
 0x32f   : > { %v4060_v9 = vrot.slane %v2049_v12, 1  ;;  %v4121_v49 = vsel %vm2654_vm2, %v4119_v22, %v4120_v38  ;;  %v4192_v11 = vrot.slane %v2122_v6, 3  ;;  %v4157_v18 = vadd.f32 %v4120_v38, %v6710_v21 }
 0x330   : > { %v2199_v33 = vpop.f32.mrf.mxu0  ;;  %v2126_v59 = vpop.f32.mrf.mxu1  ;;  %v4156_v3 = vadd.f32 %v4121_v49, %v6713_v52 }
 0x331   : > { %v4061_v62 = vsel %vm2391_vm1, %v4059_v41, %v4060_v9  ;;  %v4122_v16 = vrot.slane %v2126_v59, 2  ;;  %v4254_v57 = vrot.slane %v2199_v33, 4  ;;  %v6779_v34 = vadd.f32 %v4060_v9, %v2047_v29 }
 0x332   : > { %v2201_v47 = vpop.f32.mrf.mxu0  ;;  %v6756_v23 = vpop.f32.mrf.mxu1  ;;  %v4193_v54 = vsel %vm2982_vm10, %v4191_v45, %v4192_v11  ;;  %v6784_v51 = vadd.f32 %v4061_v62, %v2043_v20  ;;  %v6788_v39 = vadd.f32 %v4192_v11, %v4157_v18 }
 0x333   : > { %v6793_v29 = vadd.f32 %v4193_v54, %v4156_v3  ;;  %v4194_v20 = vrot.slane %v6756_v23, 3  ;;  %v4326_v7 = vrot.slane %v2201_v47, 5 }
 0x334   : > { %v2203_v35 = vpop.f32.mrf.mxu0  ;;  %v2130_v53 = vpop.f32.mrf.mxu1 }
 0x335   : > { %v4123_v43 = vrot.slane %v2130_v53, 2  ;;  %v4255_v31 = vrot.slane %v2203_v35, 4 }
 0x336   : > { %v2205_v26 = vpop.f32.mrf.mxu0  ;;  %v6758_v50 = vpop.f32.mrf.mxu1 }
 0x337   : > { %v4124_v21 = vsel %vm2654_vm2, %v4122_v16, %v4123_v43  ;;  %v4256_v56 = vsel %vm3382_vm11, %v4254_v57, %v4255_v31  ;;  %v4327_v44 = vrot.slane %v2205_v26, 5  ;;  %v4295_v25 = vadd.f32 %v4255_v31, %v6724_v28 }
 0x338   : > { %v2209_v42 = vpop.f32.mrf.mxu0  ;;  %v2136_v24 = vpop.f32.mrf.mxu1  ;;  %v4195_v60 = vrot.slane %v6758_v50, 3  ;;  %v4158_v33 = vadd.f32 %v4124_v21, %v6727_v8  ;;  %v4159_v59 = vadd.f32 %v4123_v43, %v6721_v27  ;;  %v4294_v35 = vadd.f32 %v4256_v56, %v6729_v32 }
 0x339   : > { %v4257_v28 = vrot.slane %v2209_v42, 4  ;;  %v4328_v26 = vsel %vm3854_vm12, %v4326_v7, %v4327_v44  ;;  %v4125_v50 = vrot.slane %v2136_v24, 2  ;;  %v6802_v47 = vadd.f32 %v4327_v44, %v4295_v25 }
 0x33a   : > { %v6760_v5 = vpop.f32.mrf.mxu0  ;;  %v6762_v0 = vpop.f32.mrf.mxu1  ;;  %v4196_v23 = vsel %vm2982_vm10, %v4194_v20, %v4195_v60  ;;  %v6810_v24 = vadd.f32 %v4195_v60, %v4159_v59 }
 0x33b   : > { %v4197_v49 = vrot.slane %v6762_v0, 3  ;;  %v4329_v11 = vrot.slane %v6760_v5, 5  ;;  %v4230_v20 = vadd.f32 %v4196_v23, %v4158_v33 }
 0x33c   : > { %v6764_v14 = vpop.f32.mrf.mxu0  ;;  %v6766_v19 = vpop.f32.mrf.mxu1 }
 0x33d   : > { %v4258_v17 = vrot.slane %v6764_v14, 4  ;;  %v4126_v12 = vrot.slane %v6766_v19, 2 }
 0x33e   : > { %v6768_v13 = vpop.f32.mrf.mxu0  ;;  %v6772_v55 = vpop.f32.mrf.mxu1 }
 0x33f   : > { %v4259_v9 = vsel %vm3382_vm11, %v4257_v28, %v4258_v17  ;;  %v4330_v8 = vrot.slane %v6768_v13, 5  ;;  %v4127_v27 = vsel %vm2654_vm2, %v4125_v50, %v4126_v12  ;;  %v4198_v32 = vrot.slane %v6772_v55, 3 }
 0x340   : > { %v2219_v1 = vpop.f32.mrf.mxu0  ;;  %v2146_v2 = vpop.f32.mrf.mxu1  ;;  %v4297_v43 = vadd.f32 %v4258_v17, %v6741_v58  ;;  %v4296_v3 = vadd.f32 %v4259_v9, %v6744_v48  ;;  %v4366_v48 = vadd.f32 %v4328_v26, %v4294_v35 }
 0x341   : > { %v4128_v42 = vrot.slane %v2146_v2, 2  ;;  %v4260_v4 = vrot.slane %v2219_v1, 4  ;;  %v4160_v1 = vadd.f32 %v4127_v27, %v6736_v63  ;;  %v4161_v2 = vadd.f32 %v4126_v12, %v6738_v37 }
 0x342   : > { %v6777_v46 = vpop.f32.mrf.mxu0  ;;  %v6782_v15 = vpop.f32.mrf.mxu1  ;;  %v4331_v0 = vsel %vm3854_vm12, %v4329_v11, %v4330_v8  ;;  %v4199_v58 = vsel %vm2982_vm10, %v4197_v49, %v4198_v32 }
 0x343   : > { %v4200_v16 = vrot.slane %v6782_v15, 3  ;;  %v4332_v57 = vrot.slane %v6777_v46, 5  ;;  %v6830_v15 = vadd.f32 %v4198_v32, %v4161_v2  ;;  %v4369_v46 = vadd.f32 %v4330_v8, %v4297_v43 }
 0x344   : > { %v2223_v52 = vpop.f32.mrf.mxu0  ;;  %v2150_v10 = vpop.f32.mrf.mxu1  ;;  %v6832_v12 = vadd.f32 %v4199_v58, %v4160_v1 }
 0x345   : > { %v4129_v38 = vrot.slane %v2150_v10, 2  ;;  %v4261_v14 = vrot.slane %v2223_v52, 4 }
 0x346   : > { %v2225_v6 = vpop.f32.mrf.mxu0  ;;  %v2152_v53 = vpop.f32.mrf.mxu1 }
 0x347   : > { %v4130_v13 = vsel %vm2654_vm2, %v4128_v42, %v4129_v38  ;;  %v4262_v45 = vsel %vm3382_vm11, %v4260_v4, %v4261_v14  ;;  %v4201_v18 = vrot.slane %v2152_v53, 3  ;;  %v4333_v55 = vrot.slane %v2225_v6, 5 }
 0x348   : > { %v2229_v22 = vpop.f32.mrf.mxu0  ;;  %v2156_v19 = vpop.f32.mrf.mxu1  ;;  %v4299_v54 = vadd.f32 %v4261_v14, %v4227_v40  ;;  %v4162_v56 = vadd.f32 %v4130_v13, %v6751_v30  ;;  %v4163_v44 = vadd.f32 %v4129_v38, %v4091_v36  ;;  %v4298_v63 = vadd.f32 %v4262_v45, %v6754_v61 }
 0x349   : > { %v4202_v25 = vsel %vm2982_vm10, %v4200_v16, %v4201_v18  ;;  %v4334_v60 = vsel %vm3854_vm12, %v4332_v57, %v4333_v55  ;;  %v4263_v40 = vrot.slane %v2229_v22, 4  ;;  %v4368_v30 = vadd.f32 %v4331_v0, %v4296_v3 }
 0x34a   : > { %v6808_v41 = vpop.f32.mrf.mxu0  ;;  %v6815_v31 = vpop.f32.mrf.mxu1  ;;  %v6834_v36 = vadd.f32 %v4333_v55, %v4299_v54  ;;  %v4131_v61 = vrot.slane %v2156_v19, 2  ;;  %v6836_v59 = vadd.f32 %v4202_v25, %v4162_v56  ;;  %v6838_v35 = vadd.f32 %v4201_v18, %v4163_v44 }
 0x34b   : > { %v6840_v28 = vadd.f32 %v4334_v60, %v4298_v63  ;;  %v4203_v26 = vrot.slane %v6815_v31, 3  ;;  %v4335_v50 = vrot.slane %v6808_v41, 5 }
 0x34c   : > { %v2233_v62 = vpop.f32.mrf.mxu0  ;;  %v2160_v5 = vpop.f32.mrf.mxu1 }
 0x34d   : > { %v4264_v37 = vrot.slane %v2233_v62, 4  ;;  %v4132_v17 = vrot.slane %v2160_v5, 2 }
 0x34e   : > { %v2235_v21 = vpop.f32.mrf.mxu0  ;;  %v2162_v52 = vpop.f32.mrf.mxu1 }
 0x34f   : > { %v4265_v33 = vsel %vm3382_vm11, %v4263_v40, %v4264_v37  ;;  %v4133_v38 = vsel %vm2654_vm2, %v4131_v61, %v4132_v17  ;;  %v4301_v14 = vadd.f32 %v4264_v37, %v6788_v39  ;;  %v4165_v23 = vadd.f32 %v4132_v17, %v6779_v34 }
 0x350   : > { %v2239_v10 = vpop.f32.mrf.mxu0  ;;  %v4899_v7 = vpop.f32.mrf.mxu1  ;;  %v4336_v9 = vrot.slane %v2235_v21, 5  ;;  %v4300_v32 = vadd.f32 %v4265_v33, %v6793_v29  ;;  %v4204_v42 = vrot.slane %v2162_v52, 3  ;;  %v6850_v43 = vadd.f32 %v4133_v38, %v6784_v51 }
 0x351   : > { %v4266_v8 = vrot.slane %v2239_v10, 4  ;;  %v4402_v4 = vrot.slane %v4899_v7, 6 }
 0x352   : > { %v2241_v6 = vpop.f32.mrf.mxu0  ;;  %v2312_v53 = vpop.f32.mrf.mxu1  ;;  %v4337_v29 = vsel %vm3854_vm12, %v4335_v50, %v4336_v9  ;;  %v4373_v1 = vadd.f32 %v4336_v9, %v4301_v14  ;;  %v6863_v63 = vadd.f32 %v4204_v42, %v4165_v23 }
 0x353   : > { %v4399_v41 = vrot.slane %v2312_v53, 6  ;;  %v4338_v2 = vrot.slane %v2241_v6, 5  ;;  %v4372_v37 = vadd.f32 %v4337_v29, %v4300_v32 }
 0x354   : > { %v2243_v22 = vpop.f32.mrf.mxu0  ;;  %v4900_v27 = vpop.f32.mrf.mxu1 }
 0x355   : > { %v4267_v19 = vrot.slane %v2243_v22, 4  ;;  %v4403_v49 = vrot.slane %v4900_v27, 6 }
 0x356   : > { %v2245_v11 = vpop.f32.mrf.mxu0  ;;  %v2315_v13 = vpop.f32.mrf.mxu1 }
 0x357   : > { %v4268_v31 = vsel %vm3382_vm11, %v4266_v8, %v4267_v19  ;;  %v4339_v39 = vrot.slane %v2245_v11, 5  ;;  %v4303_v34 = vadd.f32 %v4267_v19, %v6810_v24  ;;  %v4404_v45 = vsel %vm4398_vm13, %v4402_v4, %v4403_v49 }
 0x358   : > { %v4442_v18 = vadd.f32 %v4403_v49, %v4369_v46  ;;  %v4400_v55 = vrot.slane %v2315_v13, 6  ;;  %v2249_v62 = vpop.f32.mrf.mxu0  ;;  %v4441_v3 = vadd.f32 %v4404_v45, %v4368_v30  ;;  %v4903_v0 = vpop.f32.mrf.mxu1  ;;  %v4302_v51 = vadd.f32 %v4268_v31, %v4230_v20 }
 0x359   : > { %v6860_v24 = vsel %vm2982_vm10, %v4203_v26, %v4204_v42  ;;  %v4340_v21 = vsel %vm3854_vm12, %v4338_v2, %v4339_v39  ;;  %v6865_v52 = vadd.f32 %v4339_v39, %v4303_v34  ;;  %v4408_v7 = vrot.slane %v4903_v0, 6 }
 0x35a   : > { %v4463_v5 = vsel %vm4398_vm13, %v4442_v18, -inf  ;;  %v4401_v58 = vsel %vm4398_vm13, %v4399_v41, %v4400_v55  ;;  %v4440_v16 = vadd.f32 %v4400_v55, %v6802_v47  ;;  %v2251_v57 = vpop.f32.mrf.mxu0  ;;  %v2328_v44 = vpop.f32.mrf.mxu1  ;;  %v4269_v47 = vrot.slane %v2249_v62, 4 }
 0x35b   : > { %v4464_v54 = vmax.f32 %v4441_v3, %v4463_v5  ;;  %v4439_v56 = vadd.f32 %v4401_v58, %v4366_v48  ;;  %v6868_v40 = vadd.f32 %v4340_v21, %v4302_v51  ;;  %v4341_v30 = vrot.slane %v2251_v57, 5  ;;  %v6882_v5 = vld [vmem:[%s6969_s4 + $0x5] ss:$0 sm:$0xff] }
 0x35c   : > { %v4455_v25 = vsel %vm4398_vm13, %v4440_v16, -inf  ;;  %v2253_v60 = vpop.f32.mrf.mxu0  ;;  %v4904_v46 = vpop.f32.mrf.mxu1  ;;  %v4405_v4 = vrot.slane %v2328_v44, 6 }
 0x35d   : > { %v4465_v17 = vrot.slane %v4464_v54, 4  ;;  %v4456_v10 = vmax.f32 %v4439_v56, %v4455_v25  ;;  %v4270_v20 = vrot.slane %v2253_v60, 4  ;;  %v4409_v61 = vrot.slane %v4904_v46, 6 }
 0x35e   : > { %v2255_v48 = vpop.f32.mrf.mxu0  ;;  %v2331_v50 = vpop.f32.mrf.mxu1 }
 0x35f   : > { %v4466_v6 = vmax.f32 %v4464_v54, %v4465_v17  ;;  %v4457_v33 = vrot.slane %v4456_v10, 4  ;;  %v4271_v53 = vsel %vm3382_vm11, %v4269_v47, %v4270_v20  ;;  %v4305_v26 = vadd.f32 %v4270_v20, %v6830_v15 }
 0x360   : > { %v4304_v38 = vadd.f32 %v4271_v53, %v6832_v12  ;;  %v4410_v14 = vsel %vm4398_vm13, %v4408_v7, %v4409_v61  ;;  %v4446_v22 = vadd.f32 %v4409_v61, %v4373_v1  ;;  %v4342_v23 = vrot.slane %v2255_v48, 5  ;;  %v2259_v9 = vpop.f32.mrf.mxu0  ;;  %v4907_v42 = vpop.f32.mrf.mxu1 }
 0x361   : > { %v4467_v8 = vrot.slane %v4466_v6, 2  ;;  %v4458_v19 = vmax.f32 %v4456_v10, %v4457_v33  ;;  %v4445_v27 = vadd.f32 %v4410_v14, %v4372_v37  ;;  %v4406_v32 = vrot.slane %v2331_v50, 6 }
 0x362   : > { %v4479_v49 = vsel %vm4398_vm13, %v4446_v22, -inf  ;;  %v4343_v11 = vsel %vm3854_vm12, %v4341_v30, %v4342_v23  ;;  %v4377_v41 = vadd.f32 %v4342_v23, %v4305_v26  ;;  %v2261_v15 = vpop.f32.mrf.mxu0  ;;  %v4272_v13 = vrot.slane %v2259_v9, 4  ;;  %v2344_v34 = vpop.f32.mrf.mxu1 }
 0x363   : > { %v4468_v31 = vmax.f32 %v4466_v6, %v4467_v8  ;;  %v4459_v39 = vrot.slane %v4458_v19, 2  ;;  %v4480_v12 = vmax.f32 %v4445_v27, %v4479_v49  ;;  %v4376_v45 = vadd.f32 %v4343_v11, %v4304_v38 }
 0x364   : > { %v4407_v18 = vsel %vm4398_vm13, %v4405_v4, %v4406_v32  ;;  %v4444_v55 = vadd.f32 %v4406_v32, %v6834_v36  ;;  %v4414_v62 = vrot.slane %v4907_v42, 6  ;;  %v2263_v29 = vpop.f32.mrf.mxu0  ;;  %v4908_v51 = vpop.f32.mrf.mxu1  ;;  %v4344_v16 = vrot.slane %v2261_v15, 5 }
 0x365   : > { %v4469_v1 = vrot.slane %v4468_v31, 1  ;;  %v4460_v2 = vmax.f32 %v4458_v19, %v4459_v39  ;;  %v4481_v3 = vrot.slane %v4480_v12, 4  ;;  %v4443_v0 = vadd.f32 %v4407_v18, %v6840_v28 }
 0x366   : > { %v4471_v58 = vsel %vm4398_vm13, %v4444_v55, -inf  ;;  %v4273_v57 = vrot.slane %v2263_v29, 4  ;;  %v4415_v54 = vrot.slane %v4908_v51, 6  ;;  %v2265_v21 = vpop.f32.mrf.mxu0  ;;  %v2347_v25 = vpop.f32.mrf.mxu1  ;;  %v4411_v60 = vrot.slane %v2344_v34, 6 }
 0x367   : > { %v4470_v36 = vmax.f32 %v4468_v31, %v4469_v1  ;;  %v4461_v56 = vrot.slane %v4460_v2, 1  ;;  %v4482_v44 = vmax.f32 %v4480_v12, %v4481_v3  ;;  %v4472_v37 = vmax.f32 %v4443_v0, %v4471_v58 }
 0x368   : > { %v4274_v28 = vsel %vm3382_vm11, %v4272_v13, %v4273_v57  ;;  %v4416_v17 = vsel %vm4398_vm13, %v4414_v62, %v4415_v54  ;;  %v4450_v10 = vadd.f32 %v4415_v54, %v4377_v41  ;;  %v2269_v47 = vpop.f32.mrf.mxu0  ;;  %v6888_v61 = vpop.f32.mrf.mxu1  ;;  %v4307_v48 = vadd.f32 %v4273_v57, %v6838_v35 }
 0x369   : > { %v4527_v20 = vadd.f32 %v6882_v5, %v4470_v36  ;;  %v4462_v46 = vmax.f32 %v4460_v2, %v4461_v56  ;;  %v4483_v7 = vrot.slane %v4482_v44, 2  ;;  %v4473_v30 = vrot.slane %v4472_v37, 4 }
 0x36a   : > { %v4449_v6 = vadd.f32 %v4416_v17, %v4376_v45  ;;  %v4495_v33 = vsel %vm4398_vm13, %v4450_v10, -inf  ;;  %v4345_v53 = vrot.slane %v2265_v21, 5  ;;  %v2271_v26 = vpop.f32.mrf.mxu0  ;;  %v2360_v23 = vpop.f32.mrf.mxu1  ;;  %v4306_v9 = vadd.f32 %v4274_v28, %v6836_v59 }
 0x36b   : > { %v4535_v50 = vmax.f32 %v4527_v20, 0.0  ;;  %v4526_v38 = vadd.f32 %v6882_v5, %v4462_v46  ;;  %v4484_v14 = vmax.f32 %v4482_v44, %v4483_v7  ;;  %v4474_v22 = vmax.f32 %v4472_v37, %v4473_v30 }
 0x36c   : > { %v4496_v8 = vmax.f32 %v4449_v6, %v4495_v33  ;;  %v4346_v19 = vsel %vm3854_vm12, %v4344_v16, %v4345_v53  ;;  %v4412_v27 = vrot.slane %v2347_v25, 6  ;;  %v2273_v32 = vpop.f32.mrf.mxu0  ;;  %v4236_v11 = vadd.f32 %v6860_v24, %v6850_v43  ;;  %v4912_v34 = vpop.f32.mrf.mxu1 }
 0x36d   : > { %v4550_v42 = vrot.slane %v4535_v50, 7  ;;  %v4534_v35 = vmax.f32 %v4526_v38, 0.0  ;;  %v4485_v4 = vrot.slane %v4484_v14, 1  ;;  %v4475_v49 = vrot.slane %v4474_v22, 2 }
 0x36e   : > { %v4497_v41 = vrot.slane %v4496_v8, 4  ;;  %v4413_v15 = vsel %vm4398_vm13, %v4411_v60, %v4412_v27  ;;  %v4448_v31 = vadd.f32 %v4412_v27, %v6865_v52  ;;  %v4378_v18 = vadd.f32 %v4346_v19, %v4306_v9  ;;  %v2275_v29 = vpop.f32.mrf.mxu0  ;;  %v2363_v54 = vpop.f32.mrf.mxu1 }
 0x36f   : > { %v4551_v39 = vsel %vm2544_vm3, %v4550_v42, %v4534_v35  ;;  %v4486_v59 = vmax.f32 %v4484_v14, %v4485_v4  ;;  %v4476_v12 = vmax.f32 %v4474_v22, %v4475_v49  ;;  %v4447_v13 = vadd.f32 %v4413_v15, %v6868_v40 }
 0x370   : > { %v4498_v45 = vmax.f32 %v4496_v8, %v4497_v41  ;;  %v4379_v55 = vadd.f32 %v4345_v53, %v4307_v48  ;;  %v4487_v62 = vsel %vm4398_vm13, %v4448_v31, -inf  ;;  %v4275_v2 = vrot.slane %v2269_v47, 4 }
 0x371   : > { %v4529_v43 = vadd.f32 %v6882_v5, %v4486_v59  ;;  %v4477_v24 = vrot.slane %v4476_v12, 1  ;;  %v4488_v1 = vmax.f32 %v4447_v13, %v4487_v62  ;;  %v4420_v52 = vrot.slane %v6888_v61, 6 }
 0x372   : > { %v4499_v3 = vrot.slane %v4498_v45, 2  ;;  %v4347_v0 = vrot.slane %v2271_v26, 5  ;;  %v4276_v51 = vrot.slane %v2273_v32, 4  ;;  %v4421_v40 = vrot.slane %v4912_v34, 6 }
 0x373   : > { %v4478_v58 = vmax.f32 %v4476_v12, %v4477_v24  ;;  %v4489_v16 = vrot.slane %v4488_v1, 4  ;;  %v4348_v57 = vrot.slane %v2275_v29, 5  ;;  %v4417_v36 = vrot.slane %v2360_v23, 6 }
 0x374   : > { %v4500_v21 = vmax.f32 %v4498_v45, %v4499_v3  ;;  %v4277_v56 = vsel %vm3382_vm11, %v4275_v2, %v4276_v51  ;;  %v4309_v44 = vadd.f32 %v4276_v51, %v6863_v63  ;;  %v4537_v37 = vmax.f32 %v4529_v43, 0.0 }
 0x375   : > { %v4528_v25 = vadd.f32 %v6882_v5, %v4478_v58  ;;  %v4490_v60 = vmax.f32 %v4488_v1, %v4489_v16  ;;  %v4308_v28 = vadd.f32 %v4277_v56, %v4236_v11  ;;  %v4349_v10 = vsel %vm3854_vm12, %v4347_v0, %v4348_v57 }
 0x376   : > { %v4501_v17 = vrot.slane %v4500_v21, 1  ;;  %v4381_v47 = vadd.f32 %v4348_v57, %v4309_v44  ;;  %v4418_v20 = vrot.slane %v2363_v54, 6  ;;  %v4422_v30 = vsel %vm4398_vm13, %v4420_v52, %v4421_v40 }
 0x377   : > { %v4536_v46 = vmax.f32 %v4528_v25, 0.0  ;;  %v4491_v7 = vrot.slane %v4490_v60, 2  ;;  %v4380_v61 = vadd.f32 %v4349_v10, %v4308_v28  ;;  %v4554_v14 = vrot.slane %v4537_v37, 5 }
 0x378   : > { %v4502_v48 = vmax.f32 %v4500_v21, %v4501_v17  ;;  %v4454_v6 = vadd.f32 %v4421_v40, %v4381_v47  ;;  %v4419_v33 = vsel %vm4398_vm13, %v4417_v36, %v4418_v20  ;;  %v4452_v63 = vadd.f32 %v4418_v20, %v4379_v55 }
 0x379   : > { %v4552_v53 = vrot.slane %v4536_v46, 6  ;;  %v4492_v26 = vmax.f32 %v4490_v60, %v4491_v7  ;;  %v4453_v50 = vadd.f32 %v4422_v30, %v4380_v61  ;;  %v4451_v38 = vadd.f32 %v4419_v33, %v4378_v18 }
 0x37a   : > { %v4511_v22 = vsel %vm4398_vm13, %v4454_v6, -inf  ;;  %v4503_v23 = vsel %vm4398_vm13, %v4452_v63, -inf  ;;  %v4531_v32 = vadd.f32 %v6882_v5, %v4502_v48 }
 0x37b   : > { %v4553_v9 = vsel %vm2547_vm4, %v4552_v53, %v4551_v39  ;;  %v4493_v8 = vrot.slane %v4492_v26, 1  ;;  %v4512_v19 = vmax.f32 %v4453_v50, %v4511_v22  ;;  %v4504_v27 = vmax.f32 %v4451_v38, %v4503_v23 }
 0x37c   : > { %v4555_v42 = vsel %vm2550_vm5, %v4554_v14, %v4553_v9  ;;  %v4539_v31 = vmax.f32 %v4531_v32, 0.0 }
 0x37d   : > { %v4494_v35 = vmax.f32 %v4492_v26, %v4493_v8  ;;  %v4513_v4 = vrot.slane %v4512_v19, 4  ;;  %v4505_v49 = vrot.slane %v4504_v27, 4 }
 0x37e   : > { %v4558_v18 = vrot.slane %v4539_v31, 3 }
 0x37f   : > { %v4530_v11 = vadd.f32 %v6882_v5, %v4494_v35  ;;  %v4514_v41 = vmax.f32 %v4512_v19, %v4513_v4  ;;  %v4506_v15 = vmax.f32 %v4504_v27, %v4505_v49 }
 0x381   : > { %v4538_v59 = vmax.f32 %v4530_v11, 0.0  ;;  %v4515_v12 = vrot.slane %v4514_v41, 2  ;;  %v4507_v13 = vrot.slane %v4506_v15, 2 }
 0x383   : > { %v4556_v39 = vrot.slane %v4538_v59, 4  ;;  %v4516_v34 = vmax.f32 %v4514_v41, %v4515_v12  ;;  %v4508_v45 = vmax.f32 %v4506_v15, %v4507_v13 }
 0x385   : > { %v4557_v55 = vsel %vm2553_vm6, %v4556_v39, %v4555_v42  ;;  %v4517_v62 = vrot.slane %v4516_v34, 1  ;;  %v4509_v29 = vrot.slane %v4508_v45, 1 }
 0x386   : > { %v4559_v43 = vsel %vm2556_vm7, %v4558_v18, %v4557_v55 }
 0x387   : > { %v4518_v24 = vmax.f32 %v4516_v34, %v4517_v62  ;;  %v4510_v1 = vmax.f32 %v4508_v45, %v4509_v29 }
 0x389   : > { %v4533_v2 = vadd.f32 %v6882_v5, %v4518_v24  ;;  %v4532_v3 = vadd.f32 %v6882_v5, %v4510_v1 }
 0x38b   : > { %v4541_v52 = vmax.f32 %v4533_v2, 0.0  ;;  %v4540_v0 = vmax.f32 %v4532_v3, 0.0 }
 0x38d   : > { %v4562_v51 = vrot.slane %v4541_v52, 1  ;;  %v4560_v58 = vrot.slane %v4540_v0, 2 }
 0x38f   : > { %v4561_v16 = vsel %vm2559_vm8, %v4560_v58, %v4559_v43 }
 0x390   : > { %v4563_v40 = vsel %vm2562_vm9, %v4562_v51, %v4561_v16 }
 0x391   : > { %4565 = vst [vmem:[%s5888_s23 + $0x28] sm:$0xff] %v4563_v40 }
 0x392   : > { %5197 = shalt.err (!%p5194_p13)
}
 0x393   : > { %s5198_s23 = scalar_lea.hbm %s6926_s26, 768  ;;  %s5202_s16 = scalar_lea.hbm %s6970_s5, 1536 }
 0x394   : > { %p5199_p3 = scmp.ne.s32.totalorder %s6926_s26, %s5198_s23  ;;  %p5203_p11 = scmp.lt.s32.totalorder %s6926_s26, %s6970_s5 }
 0x395   : > { %p5204_p1 = scmp.lt.s32.totalorder %s5202_s16, %s5198_s23 }
 0x396   : > { %p5200_p10 = pnand %p5199_p3, %p7005_p4 }
 0x397   : > { %p5205_p6 = por %p5204_p1, %p5203_p11 }
 0x398   : > { %p5201_p2 = pneg %p5200_p10 }
 0x39a   : > { %p5206_p12 = pnand %p5205_p6, %p5201_p2 }
 0x39c   : > { %5209 = shalt.err (!%p5206_p12)
}
 0x39d   : > { %4931 = dma.vmem_to_hbm [thread:$0]  (%p7005_p4), %s4582_s27, 768, %s6926_s26, %s4567_s24  }
 0x39e PF: > { %s4593_s0 = sand.u32 1, %s5248_s18   ;;  %p7006_p8 = scmp.ne.s32.totalorder %s6985_s25, 0 }
 0x39f   : > { %p7007_p7 = scmp.ge.s32.totalorder %s5260_s21, 2  ;;  %s4594_s28 = scalar_lea.sflag [#allocation4], %s4593_s0 }
 0x3a1   : > { %p4948_p0 = pnand %p7007_p7, %p7006_p8 }
 0x3a3   : > { %p4949_p5 = pneg %p4948_p0 }
 0x3a5   : > { %5243 = dma.done.wait (%p4949_p5), %s4594_s28, 768  }
 0x3a6   : > { %5245 = vsyncadd (%p4949_p5), %s4594_s28, 4294966528  ;;  %s7008_s21 = sld [smem:[#allocation15_spill]]  ;;  %s7010_s18 = smov %s5252_s19 }
 0x3a7   : > { %s7009_s7 = sld [smem:[#allocation16_spill]]  ;;  %s7011_s19 = smov %s5256_s20 }
 0x3ac   : > { %p19_p9 = scmp.ge.s32.totalorder %s7008_s21, 4  }
 0x3ad   : > { %s7012_s20 = smov %s7009_s7 }
 0x3ae   :  { %21 = sbr.rel (!%p19_p9) target bundleno = 9 (0x9), region = 104 }
 0x3b3   :  { %4599 = vsyncpa [#allocation3], 1 }
 0x3b4   :  { %4601 = vsyncpa [#allocation3 + $0x1], 1 }
 0x3b5   :  { %4602 = vsyncpa [#allocation6], 1 }
 0x3b6   :  { %4603 = vsyncpa [#allocation4], 1 }
 0x3b7   :  { %4605 = vsyncpa [#allocation4 + $0x1], 1 }

</bundles_post_ra>
